<compile_context>
chip_gen: v5e
topology: v5e:2x2
jax: 0.10.0
libtpu: 0.0.40
codegen_flags: <defaults>
</compile_context>

<pallas_src>
import math

import jax
import jax.numpy as jnp
from jax import lax
from jax.experimental import pallas as pl
from jax.experimental.pallas import tpu as pltpu

NULL_IDX = 0


# ----------------------------------------------------------------------------
# Glue (plain JAX): to_bert_input + embedding lookup (gather)
# ----------------------------------------------------------------------------
def to_bert_input(token_idx, null_idx):
    """token_idx is (B, S) int32. Returns token_idx, segment_idx, mask."""
    segment_idx = token_idx * 0
    mask = token_idx != null_idx
    token_idx = token_idx * mask.astype(token_idx.dtype)
    return token_idx, segment_idx, mask


def embed_tokens(token_idx, segment_idx, tok_emb, pos_emb, seg_emb):
    # (B, S, H) = token emb + position emb + segment emb (gather stays in XLA)
    x = tok_emb[token_idx] + pos_emb[None, :, :] + seg_emb[segment_idx]
    return x.astype(jnp.float32)


# ----------------------------------------------------------------------------
# In-kernel helpers (f32 elementwise math)
# ----------------------------------------------------------------------------
def _layernorm(x, g, b, eps=1e-12):
    mu = jnp.mean(x, axis=-1, keepdims=True)
    var = jnp.mean((x - mu) ** 2, axis=-1, keepdims=True)
    return (x - mu) * lax.rsqrt(var + eps) * g + b


def _gelu(x):
    c = 0.7978845608028654  # sqrt(2/pi)
    return 0.5 * x * (1.0 + jnp.tanh(c * (x + 0.044715 * x * x * x)))


# ----------------------------------------------------------------------------
# Fused dual-encoder kernel: grid = (encoder in {ctxt, cand}, batch tile)
# ----------------------------------------------------------------------------
def fused_encoder_kernel(x_ref, bias_ref,
                         wq_ref, bq_ref, wk_ref, bk_ref, wv_ref, bv_ref,
                         wo_ref, bo_ref, ln1g_ref, ln1b_ref,
                         w1_ref, b1_ref, w2_ref, b2_ref, ln2g_ref, ln2b_ref,
                         pw_ref, pb_ref,
                         out_ref):
    """One transformer layer + CLS pooling + linear proj for one batch tile."""
    x = x_ref[0]          # (TB, S, H) f32 activations
    bias = bias_ref[0]    # (TB, S)    f32 additive key mask (0 or -1e9)
    TB, S, H = x.shape
    scale = 1.0 / math.sqrt(H)

    # Flatten per-token projections to 2D matmuls: fill the MXU M dimension.
    x2 = x.reshape(TB * S, H)                  # f32 residual stream
    xb = x2.astype(jnp.bfloat16)               # bf16 MXU operand, f32 accum

    q = jnp.dot(xb, wq_ref[0], preferred_element_type=jnp.float32) + bq_ref[0]
    k = jnp.dot(xb, wk_ref[0], preferred_element_type=jnp.float32) + bk_ref[0]
    v = jnp.dot(xb, wv_ref[0], preferred_element_type=jnp.float32) + bv_ref[0]

    qh = q.reshape(TB, S, H).astype(jnp.bfloat16)
    kh = k.reshape(TB, S, H).astype(jnp.bfloat16)
    vh = v.reshape(TB, S, H).astype(jnp.bfloat16)

    # Attention: bf16 score matmul, f32 softmax (so -1e9 bias stays safe).
    att = jnp.einsum('bqh,bkh->bqk', qh, kh,
                     preferred_element_type=jnp.float32) * scale
    att = att + bias[:, None, :]                       # hoisted mask bias
    att = att - jnp.max(att, axis=-1, keepdims=True)
    e = jnp.exp(att)
    p = e * pl.reciprocal(jnp.sum(e, axis=-1, keepdims=True), approx=True)
    ctx = jnp.einsum('bqk,bkh->bqh', p.astype(jnp.bfloat16), vh,
                     preferred_element_type=jnp.float32)

    attn_out = jnp.dot(ctx.reshape(TB * S, H).astype(jnp.bfloat16), wo_ref[0],
                       preferred_element_type=jnp.float32) + bo_ref[0]
    h1 = _layernorm(x2 + attn_out, ln1g_ref[0], ln1b_ref[0])

    # FFN (flat 2D). TODO(synk): chunk the (TB*S, F) intermediate over S for
    # BERT-base sized F on v7x's 64 MiB VMEM; unnecessary at these tile sizes.
    ffn = _gelu(jnp.dot(h1.astype(jnp.bfloat16), w1_ref[0],
                        preferred_element_type=jnp.float32) + b1_ref[0])
    ffn = jnp.dot(ffn.astype(jnp.bfloat16), w2_ref[0],
                  preferred_element_type=jnp.float32) + b2_ref[0]
    h2 = _layernorm(h1 + ffn, ln2g_ref[0], ln2b_ref[0])

    # CLS pooling (position 0 is always a real token) + additional_linear.
    cls = h2.reshape(TB, S, H)[:, 0, :]                # (TB, H)
    out = jnp.dot(cls.astype(jnp.bfloat16), pw_ref[0],
                  preferred_element_type=jnp.float32) + pb_ref[0]
    out_ref[0] = out                                   # (TB, D)


def run_biencoder(x_stacked, bias_stacked, stacked_weights, out_dim, *, tb):
    """x_stacked: (2, B, S, H) f32; bias_stacked: (2, B, S) f32."""
    NE, B, S, H = x_stacked.shape
    assert B % tb == 0, "batch must be divisible by the batch tile"
    grid = (NE, B // tb)

    in_specs = [
        pl.BlockSpec((1, tb, S, H), lambda e, b: (e, b, 0, 0)),   # activations
        pl.BlockSpec((1, tb, S), lambda e, b: (e, b, 0)),          # mask bias
    ]
    # Weights: select encoder e, constant along batch axis -> DMA'd once per e.
    for w in stacked_weights:
        in_specs.append(
            pl.BlockSpec((1,) + w.shape[1:], lambda e, b: (e, 0, 0)))

    return pl.pallas_call(
        fused_encoder_kernel,
        out_shape=jax.ShapeDtypeStruct((NE, B, out_dim), jnp.float32),
        grid=grid,
        in_specs=in_specs,
        out_specs=pl.BlockSpec((1, tb, out_dim), lambda e, b: (e, b, 0)),
        compiler_params=pltpu.CompilerParams(
            dimension_semantics=("parallel", "parallel"),
            vmem_limit_bytes=48 * 1024 * 1024),
    )(x_stacked, bias_stacked, *stacked_weights)


# ----------------------------------------------------------------------------
# Score + cross-entropy kernel (scalar loss lives in SMEM)
# ----------------------------------------------------------------------------
def score_loss_kernel(ctxt_ref, cand_ref, scores_ref, loss_ref):
    """scores = ctxt @ cand.T ; loss = mean CE(scores, arange(bs))."""
    ctxt = ctxt_ref[...]                                           # (B, D)
    cand = cand_ref[...]                                           # (B, D)
    scores = jnp.dot(ctxt, cand.T, preferred_element_type=jnp.float32)
    scores_ref[...] = scores                                       # (B, B)

    m = jnp.max(scores, axis=-1, keepdims=True)
    lse = m + jnp.log(jnp.sum(jnp.exp(scores - m), axis=-1, keepdims=True))
    row = lax.broadcasted_iota(jnp.int32, scores.shape, 0)
    col = lax.broadcasted_iota(jnp.int32, scores.shape, 1)
    diag = jnp.sum(jnp.where(row == col, scores, 0.0), axis=-1, keepdims=True)
    loss_ref[0, 0] = jnp.mean(lse - diag)


def run_score_loss(ctxt_emb, cand_emb):
    B = ctxt_emb.shape[0]
    scores, loss = pl.pallas_call(
        score_loss_kernel,
        out_shape=(jax.ShapeDtypeStruct((B, B), jnp.float32),
                   jax.ShapeDtypeStruct((1, 1), jnp.float32)),
        in_specs=[pl.BlockSpec(memory_space=pltpu.MemorySpace.VMEM)] * 2,
        out_specs=(pl.BlockSpec(memory_space=pltpu.MemorySpace.VMEM),
                   pl.BlockSpec(memory_space=pltpu.MemorySpace.SMEM)),
        compiler_params=pltpu.CompilerParams(
            vmem_limit_bytes=16 * 1024 * 1024),
    )(ctxt_emb, cand_emb)
    return scores, loss[0, 0]


# ----------------------------------------------------------------------------
# Parameter init + ranker
# ----------------------------------------------------------------------------
def init_encoder_params(key, vocab, seq, hidden, ffn, out_dim):
    ks = jax.random.split(key, 10)

    def w(k, shape, scale=0.02):
        return (scale * jax.random.normal(k, shape)).astype(jnp.float32)

    emb = dict(
        tok_emb=w(ks[0], (vocab, hidden)),
        pos_emb=w(ks[1], (seq, hidden)),
        seg_emb=w(ks[2], (2, hidden)),
    )
    bf = jnp.bfloat16
    zeros_h = jnp.zeros((1, hidden), jnp.float32)
    ones_h = jnp.ones((1, hidden), jnp.float32)
    layer = (
        w(ks[3], (hidden, hidden)).astype(bf), zeros_h,                  # wq,bq
        w(ks[4], (hidden, hidden)).astype(bf), zeros_h,                  # wk,bk
        w(ks[5], (hidden, hidden)).astype(bf), zeros_h,                  # wv,bv
        w(ks[6], (hidden, hidden)).astype(bf), zeros_h,                  # wo,bo
        ones_h, zeros_h,                                                 # ln1
        w(ks[7], (hidden, ffn)).astype(bf), jnp.zeros((1, ffn), jnp.float32),
        w(ks[8], (ffn, hidden)).astype(bf), zeros_h,                     # w2,b2
        ones_h, zeros_h,                                                 # ln2
        w(ks[9], (hidden, out_dim)).astype(bf),                          # proj W
        jnp.zeros((1, out_dim), jnp.float32),                            # proj b
    )
    return emb, layer


class BiEncoderRankerPallas:
    """JAX/Pallas re-implementation of BiEncoderRanker.forward (random_negs)."""

    def __init__(self, vocab=64, seq=16, hidden=128, ffn=512, out_dim=128,
                 seed=0, batch_tile=8):
        key = jax.random.PRNGKey(seed)
        k_ctxt, k_cand = jax.random.split(key)
        self.out_dim = out_dim
        self.batch_tile = batch_tile
        # Two independent encoders (ctxt_bert / cand_bert); stack their weights
        # along a leading axis of 2 so one fused pallas_call handles both.
        self.ctxt_emb, ctxt_layer = init_encoder_params(
            k_ctxt, vocab, seq, hidden, ffn, out_dim)
        self.cand_emb, cand_layer = init_encoder_params(
            k_cand, vocab, seq, hidden, ffn, out_dim)
        self.stacked_layer = tuple(
            jnp.stack([c, d], axis=0) for c, d in zip(ctxt_layer, cand_layer))

    def forward(self, context_input, cand_input, label_input=None):
        # label_input is None -> random in-batch negatives (flag=True path)
        tok_c, seg_c, mask_c = to_bert_input(context_input, NULL_IDX)
        tok_k, seg_k, mask_k = to_bert_input(cand_input, NULL_IDX)
        x_c = embed_tokens(tok_c, seg_c, self.ctxt_emb['tok_emb'],
                           self.ctxt_emb['pos_emb'], self.ctxt_emb['seg_emb'])
        x_k = embed_tokens(tok_k, seg_k, self.cand_emb['tok_emb'],
                           self.cand_emb['pos_emb'], self.cand_emb['seg_emb'])
        x_stacked = jnp.stack([x_c, x_k], axis=0)          # (2, B, S, H) f32
        # Hoisted additive key mask (f32-safe -1e9; attention math stays f32).
        bias_c = (1.0 - mask_c.astype(jnp.float32)) * (-1e9)
        bias_k = (1.0 - mask_k.astype(jnp.float32)) * (-1e9)
        bias_stacked = jnp.stack([bias_c, bias_k], axis=0)  # (2, B, S)

        emb = run_biencoder(x_stacked, bias_stacked, self.stacked_layer,
                            self.out_dim, tb=self.batch_tile)
        emb_ctxt, emb_cand = emb[0], emb[1]
        scores, loss = run_score_loss(emb_ctxt, emb_cand)
        return loss, scores


# ----------------------------------------------------------------------------
if __name__ == "__main__":
    B, S, V = 8, 16, 64
    H, F, D = 128, 512, 128      # lane-dense: multiples of 128; S multiple of 8
    key = jax.random.PRNGKey(0)
    k1, k2 = jax.random.split(key)
    # token ids in [1, V); column 0 acts as [CLS]; sprinkle some NULL (0) pads
    context_input = jax.random.randint(k1, (B, S), 1, V, dtype=jnp.int32)
    cand_input = jax.random.randint(k2, (B, S), 1, V, dtype=jnp.int32)
    context_input = context_input.at[:, -3:].set(0)   # padding -> masked keys
    cand_input = cand_input.at[:, -2:].set(0)

    ranker = BiEncoderRankerPallas(vocab=V, seq=S, hidden=H, ffn=F, out_dim=D,
                                   seed=0, batch_tile=8)
    loss, scores = ranker.forward(context_input, cand_input)
    jax.block_until_ready((loss, scores))
    assert scores.shape == (B, B)
    assert bool(jnp.isfinite(loss))
    assert bool(jnp.all(jnp.isfinite(scores)))
    print("KERNEL_OK")
</pallas_src>

<mosaic_0001>
module attributes {stable_mosaic.version = 11 : i64} {
  func.func @fused_encoder_kernel(%arg0: i32, %arg1: i32, %arg2: memref<1x8x16x128xf32, #tpu.memory_space<vmem>>, %arg3: memref<1x8x16xf32, #tpu.memory_space<vmem>>, %arg4: memref<1x128x128xbf16, #tpu.memory_space<vmem>>, %arg5: memref<1x1x128xf32, #tpu.memory_space<vmem>>, %arg6: memref<1x128x128xbf16, #tpu.memory_space<vmem>>, %arg7: memref<1x1x128xf32, #tpu.memory_space<vmem>>, %arg8: memref<1x128x128xbf16, #tpu.memory_space<vmem>>, %arg9: memref<1x1x128xf32, #tpu.memory_space<vmem>>, %arg10: memref<1x128x128xbf16, #tpu.memory_space<vmem>>, %arg11: memref<1x1x128xf32, #tpu.memory_space<vmem>>, %arg12: memref<1x1x128xf32, #tpu.memory_space<vmem>>, %arg13: memref<1x1x128xf32, #tpu.memory_space<vmem>>, %arg14: memref<1x128x512xbf16, #tpu.memory_space<vmem>>, %arg15: memref<1x1x512xf32, #tpu.memory_space<vmem>>, %arg16: memref<1x512x128xbf16, #tpu.memory_space<vmem>>, %arg17: memref<1x1x128xf32, #tpu.memory_space<vmem>>, %arg18: memref<1x1x128xf32, #tpu.memory_space<vmem>>, %arg19: memref<1x1x128xf32, #tpu.memory_space<vmem>>, %arg20: memref<1x128x128xbf16, #tpu.memory_space<vmem>>, %arg21: memref<1x1x128xf32, #tpu.memory_space<vmem>>, %arg22: memref<1x8x128xf32, #tpu.memory_space<vmem>>) attributes {dimension_semantics = [#tpu.dimension_semantics<parallel>, #tpu.dimension_semantics<parallel>], iteration_bounds = array<i64: 2, 1>, scalar_prefetch = 0 : i64, scratch_operands = 0 : i64, tpu.core_type = #tpu.core_type<tc>, window_params = [{transform_indices = @transform_0, window_bounds = array<i64: 1, 8, 16, 128>}, {transform_indices = @transform_1, window_bounds = array<i64: 1, 8, 16>}, {transform_indices = @transform_2, window_bounds = array<i64: 1, 128, 128>}, {transform_indices = @transform_3, window_bounds = array<i64: 1, 1, 128>}, {transform_indices = @transform_4, window_bounds = array<i64: 1, 128, 128>}, {transform_indices = @transform_5, window_bounds = array<i64: 1, 1, 128>}, {transform_indices = @transform_6, window_bounds = array<i64: 1, 128, 128>}, {transform_indices = @transform_7, window_bounds = array<i64: 1, 1, 128>}, {transform_indices = @transform_8, window_bounds = array<i64: 1, 128, 128>}, {transform_indices = @transform_9, window_bounds = array<i64: 1, 1, 128>}, {transform_indices = @transform_10, window_bounds = array<i64: 1, 1, 128>}, {transform_indices = @transform_11, window_bounds = array<i64: 1, 1, 128>}, {transform_indices = @transform_12, window_bounds = array<i64: 1, 128, 512>}, {transform_indices = @transform_13, window_bounds = array<i64: 1, 1, 512>}, {transform_indices = @transform_14, window_bounds = array<i64: 1, 512, 128>}, {transform_indices = @transform_15, window_bounds = array<i64: 1, 1, 128>}, {transform_indices = @transform_16, window_bounds = array<i64: 1, 1, 128>}, {transform_indices = @transform_17, window_bounds = array<i64: 1, 1, 128>}, {transform_indices = @transform_18, window_bounds = array<i64: 1, 128, 128>}, {transform_indices = @transform_19, window_bounds = array<i64: 1, 1, 128>}, {transform_indices = @transform_20, window_bounds = array<i64: 1, 8, 128>}]} {
    %c0 = arith.constant 0 : index
    %c0_0 = arith.constant 0 : index
    %c0_1 = arith.constant 0 : index
    %c0_2 = arith.constant 0 : index
    %0 = vector.load %arg2[%c0, %c0_0, %c0_1, %c0_2] : memref<1x8x16x128xf32, #tpu.memory_space<vmem>>, vector<1x8x16x128xf32>
    %1 = vector.shape_cast %0 : vector<1x8x16x128xf32> to vector<8x16x128xf32>
    %c0_3 = arith.constant 0 : index
    %c0_4 = arith.constant 0 : index
    %c0_5 = arith.constant 0 : index
    %2 = vector.load %arg3[%c0_3, %c0_4, %c0_5] : memref<1x8x16xf32, #tpu.memory_space<vmem>>, vector<1x8x16xf32>
    %3 = vector.shape_cast %2 : vector<1x8x16xf32> to vector<8x16xf32>
    %4 = vector.shape_cast %1 : vector<8x16x128xf32> to vector<128x128xf32>
    %5 = arith.truncf %4 : vector<128x128xf32> to vector<128x128xbf16>
    %c0_6 = arith.constant 0 : index
    %c0_7 = arith.constant 0 : index
    %c0_8 = arith.constant 0 : index
    %6 = vector.load %arg4[%c0_6, %c0_7, %c0_8] : memref<1x128x128xbf16, #tpu.memory_space<vmem>>, vector<1x128x128xbf16>
    %7 = vector.shape_cast %6 : vector<1x128x128xbf16> to vector<128x128xbf16>
    %cst = arith.constant dense<0.000000e+00> : vector<128x128xf32>
    %8 = tpu.matmul %5, %7, %cst {dimension_numbers = #tpu.dot_dimension_numbers<[1], [0], [0], [1], [0, 0, 1, 1], [], []>} : vector<128x128xbf16>, vector<128x128xbf16>, vector<128x128xf32> -> vector<128x128xf32>
    %c0_9 = arith.constant 0 : index
    %c0_10 = arith.constant 0 : index
    %c0_11 = arith.constant 0 : index
    %9 = vector.load %arg5[%c0_9, %c0_10, %c0_11] : memref<1x1x128xf32, #tpu.memory_space<vmem>>, vector<1x1x128xf32>
    %10 = vector.shape_cast %9 : vector<1x1x128xf32> to vector<1x128xf32>
    %11 = vector.broadcast %10 : vector<1x128xf32> to vector<128x128xf32>
    %12 = arith.addf %8, %11 : vector<128x128xf32>
    %c0_12 = arith.constant 0 : index
    %c0_13 = arith.constant 0 : index
    %c0_14 = arith.constant 0 : index
    %13 = vector.load %arg6[%c0_12, %c0_13, %c0_14] : memref<1x128x128xbf16, #tpu.memory_space<vmem>>, vector<1x128x128xbf16>
    %14 = vector.shape_cast %13 : vector<1x128x128xbf16> to vector<128x128xbf16>
    %cst_15 = arith.constant dense<0.000000e+00> : vector<128x128xf32>
    %15 = tpu.matmul %5, %14, %cst_15 {dimension_numbers = #tpu.dot_dimension_numbers<[1], [0], [0], [1], [0, 0, 1, 1], [], []>} : vector<128x128xbf16>, vector<128x128xbf16>, vector<128x128xf32> -> vector<128x128xf32>
    %c0_16 = arith.constant 0 : index
    %c0_17 = arith.constant 0 : index
    %c0_18 = arith.constant 0 : index
    %16 = vector.load %arg7[%c0_16, %c0_17, %c0_18] : memref<1x1x128xf32, #tpu.memory_space<vmem>>, vector<1x1x128xf32>
    %17 = vector.shape_cast %16 : vector<1x1x128xf32> to vector<1x128xf32>
    %18 = vector.broadcast %17 : vector<1x128xf32> to vector<128x128xf32>
    %19 = arith.addf %15, %18 : vector<128x128xf32>
    %c0_19 = arith.constant 0 : index
    %c0_20 = arith.constant 0 : index
    %c0_21 = arith.constant 0 : index
    %20 = vector.load %arg8[%c0_19, %c0_20, %c0_21] : memref<1x128x128xbf16, #tpu.memory_space<vmem>>, vector<1x128x128xbf16>
    %21 = vector.shape_cast %20 : vector<1x128x128xbf16> to vector<128x128xbf16>
    %cst_22 = arith.constant dense<0.000000e+00> : vector<128x128xf32>
    %22 = tpu.matmul %5, %21, %cst_22 {dimension_numbers = #tpu.dot_dimension_numbers<[1], [0], [0], [1], [0, 0, 1, 1], [], []>} : vector<128x128xbf16>, vector<128x128xbf16>, vector<128x128xf32> -> vector<128x128xf32>
    %c0_23 = arith.constant 0 : index
    %c0_24 = arith.constant 0 : index
    %c0_25 = arith.constant 0 : index
    %23 = vector.load %arg9[%c0_23, %c0_24, %c0_25] : memref<1x1x128xf32, #tpu.memory_space<vmem>>, vector<1x1x128xf32>
    %24 = vector.shape_cast %23 : vector<1x1x128xf32> to vector<1x128xf32>
    %25 = vector.broadcast %24 : vector<1x128xf32> to vector<128x128xf32>
    %26 = arith.addf %22, %25 : vector<128x128xf32>
    %27 = vector.shape_cast %12 : vector<128x128xf32> to vector<8x16x128xf32>
    %28 = arith.truncf %27 : vector<8x16x128xf32> to vector<8x16x128xbf16>
    %29 = vector.shape_cast %19 : vector<128x128xf32> to vector<8x16x128xf32>
    %30 = arith.truncf %29 : vector<8x16x128xf32> to vector<8x16x128xbf16>
    %31 = vector.shape_cast %26 : vector<128x128xf32> to vector<8x16x128xf32>
    %32 = arith.truncf %31 : vector<8x16x128xf32> to vector<8x16x128xbf16>
    "tpu.trace_start"() <{level = 10 : i32, message = "bqh,bkh->bqk"}> : () -> ()
    %cst_26 = arith.constant dense<0.000000e+00> : vector<8x16x16xf32>
    %33 = tpu.matmul %28, %30, %cst_26 {dimension_numbers = #tpu.dot_dimension_numbers<[2], [2], [1], [1], [0, 0, 0, 1, 1, 1], [0], [0]>} : vector<8x16x128xbf16>, vector<8x16x128xbf16>, vector<8x16x16xf32> -> vector<8x16x16xf32>
    "tpu.trace_stop"() : () -> ()
    %cst_27 = arith.constant 0.0883883461 : f32
    %34 = vector.broadcast %cst_27 : f32 to vector<8x16x16xf32>
    %35 = arith.mulf %33, %34 : vector<8x16x16xf32>
    %36 = vector.shape_cast %3 : vector<8x16xf32> to vector<8x1x16xf32>
    %37 = vector.broadcast %36 : vector<8x1x16xf32> to vector<8x16x16xf32>
    %38 = arith.addf %35, %37 : vector<8x16x16xf32>
    %cst_28 = arith.constant dense<0xFF800000> : vector<8x16xf32>
    %39 = vector.multi_reduction <maximumf>, %38, %cst_28 [2] : vector<8x16x16xf32> to vector<8x16xf32>
    %40 = vector.shape_cast %39 : vector<8x16xf32> to vector<8x16x1xf32>
    %41 = vector.broadcast %40 : vector<8x16x1xf32> to vector<8x16x16xf32>
    %42 = arith.subf %38, %41 : vector<8x16x16xf32>
    %43 = math.exp %42 : vector<8x16x16xf32>
    %cst_29 = arith.constant dense<0.000000e+00> : vector<8x16xf32>
    %44 = vector.multi_reduction <add>, %43, %cst_29 [2] : vector<8x16x16xf32> to vector<8x16xf32>
    %45 = vector.shape_cast %44 : vector<8x16xf32> to vector<8x16x1xf32>
    %46 = tpu.reciprocal %45 {approx = true} : vector<8x16x1xf32> -> vector<8x16x1xf32>
    %47 = vector.broadcast %46 : vector<8x16x1xf32> to vector<8x16x16xf32>
    %48 = arith.mulf %43, %47 : vector<8x16x16xf32>
    %49 = arith.truncf %48 : vector<8x16x16xf32> to vector<8x16x16xbf16>
    "tpu.trace_start"() <{level = 10 : i32, message = "bqk,bkh->bqh"}> : () -> ()
    %cst_30 = arith.constant dense<0.000000e+00> : vector<8x16x128xf32>
    %50 = tpu.matmul %49, %32, %cst_30 {dimension_numbers = #tpu.dot_dimension_numbers<[2], [1], [1], [2], [0, 0, 0, 1, 1, 2], [0], [0]>} : vector<8x16x16xbf16>, vector<8x16x128xbf16>, vector<8x16x128xf32> -> vector<8x16x128xf32>
    "tpu.trace_stop"() : () -> ()
    %51 = vector.shape_cast %50 : vector<8x16x128xf32> to vector<128x128xf32>
    %52 = arith.truncf %51 : vector<128x128xf32> to vector<128x128xbf16>
    %c0_31 = arith.constant 0 : index
    %c0_32 = arith.constant 0 : index
    %c0_33 = arith.constant 0 : index
    %53 = vector.load %arg10[%c0_31, %c0_32, %c0_33] : memref<1x128x128xbf16, #tpu.memory_space<vmem>>, vector<1x128x128xbf16>
    %54 = vector.shape_cast %53 : vector<1x128x128xbf16> to vector<128x128xbf16>
    %cst_34 = arith.constant dense<0.000000e+00> : vector<128x128xf32>
    %55 = tpu.matmul %52, %54, %cst_34 {dimension_numbers = #tpu.dot_dimension_numbers<[1], [0], [0], [1], [0, 0, 1, 1], [], []>} : vector<128x128xbf16>, vector<128x128xbf16>, vector<128x128xf32> -> vector<128x128xf32>
    %c0_35 = arith.constant 0 : index
    %c0_36 = arith.constant 0 : index
    %c0_37 = arith.constant 0 : index
    %56 = vector.load %arg11[%c0_35, %c0_36, %c0_37] : memref<1x1x128xf32, #tpu.memory_space<vmem>>, vector<1x1x128xf32>
    %57 = vector.shape_cast %56 : vector<1x1x128xf32> to vector<1x128xf32>
    %58 = vector.broadcast %57 : vector<1x128xf32> to vector<128x128xf32>
    %59 = arith.addf %55, %58 : vector<128x128xf32>
    %60 = arith.addf %4, %59 : vector<128x128xf32>
    %c0_38 = arith.constant 0 : index
    %c0_39 = arith.constant 0 : index
    %c0_40 = arith.constant 0 : index
    %61 = vector.load %arg12[%c0_38, %c0_39, %c0_40] : memref<1x1x128xf32, #tpu.memory_space<vmem>>, vector<1x1x128xf32>
    %62 = vector.shape_cast %61 : vector<1x1x128xf32> to vector<1x128xf32>
    %c0_41 = arith.constant 0 : index
    %c0_42 = arith.constant 0 : index
    %c0_43 = arith.constant 0 : index
    %63 = vector.load %arg13[%c0_41, %c0_42, %c0_43] : memref<1x1x128xf32, #tpu.memory_space<vmem>>, vector<1x1x128xf32>
    %64 = vector.shape_cast %63 : vector<1x1x128xf32> to vector<1x128xf32>
    %cst_44 = arith.constant dense<0.000000e+00> : vector<128xf32>
    %65 = vector.multi_reduction <add>, %60, %cst_44 [1] : vector<128x128xf32> to vector<128xf32>
    %66 = vector.shape_cast %65 : vector<128xf32> to vector<128x1xf32>
    %cst_45 = arith.constant 1.280000e+02 : f32
    %67 = vector.broadcast %cst_45 : f32 to vector<128x1xf32>
    %68 = arith.divf %66, %67 : vector<128x1xf32>
    %69 = vector.broadcast %68 : vector<128x1xf32> to vector<128x128xf32>
    %70 = arith.subf %60, %69 : vector<128x128xf32>
    %71 = arith.mulf %70, %70 : vector<128x128xf32>
    %cst_46 = arith.constant dense<0.000000e+00> : vector<128xf32>
    %72 = vector.multi_reduction <add>, %71, %cst_46 [1] : vector<128x128xf32> to vector<128xf32>
    %73 = vector.shape_cast %72 : vector<128xf32> to vector<128x1xf32>
    %cst_47 = arith.constant 1.280000e+02 : f32
    %74 = vector.broadcast %cst_47 : f32 to vector<128x1xf32>
    %75 = arith.divf %73, %74 : vector<128x1xf32>
    %76 = vector.broadcast %68 : vector<128x1xf32> to vector<128x128xf32>
    %77 = arith.subf %60, %76 : vector<128x128xf32>
    %cst_48 = arith.constant 9.99999996E-13 : f32
    %78 = vector.broadcast %cst_48 : f32 to vector<128x1xf32>
    %79 = arith.addf %75, %78 : vector<128x1xf32>
    %80 = math.rsqrt %79 : vector<128x1xf32>
    %81 = vector.broadcast %80 : vector<128x1xf32> to vector<128x128xf32>
    %82 = arith.mulf %77, %81 : vector<128x128xf32>
    %83 = vector.broadcast %62 : vector<1x128xf32> to vector<128x128xf32>
    %84 = arith.mulf %82, %83 : vector<128x128xf32>
    %85 = vector.broadcast %64 : vector<1x128xf32> to vector<128x128xf32>
    %86 = arith.addf %84, %85 : vector<128x128xf32>
    %87 = arith.truncf %86 : vector<128x128xf32> to vector<128x128xbf16>
    %c0_49 = arith.constant 0 : index
    %c0_50 = arith.constant 0 : index
    %c0_51 = arith.constant 0 : index
    %88 = vector.load %arg14[%c0_49, %c0_50, %c0_51] : memref<1x128x512xbf16, #tpu.memory_space<vmem>>, vector<1x128x512xbf16>
    %89 = vector.shape_cast %88 : vector<1x128x512xbf16> to vector<128x512xbf16>
    %cst_52 = arith.constant dense<0.000000e+00> : vector<128x512xf32>
    %90 = tpu.matmul %87, %89, %cst_52 {dimension_numbers = #tpu.dot_dimension_numbers<[1], [0], [0], [1], [0, 0, 1, 1], [], []>} : vector<128x128xbf16>, vector<128x512xbf16>, vector<128x512xf32> -> vector<128x512xf32>
    %c0_53 = arith.constant 0 : index
    %c0_54 = arith.constant 0 : index
    %c0_55 = arith.constant 0 : index
    %91 = vector.load %arg15[%c0_53, %c0_54, %c0_55] : memref<1x1x512xf32, #tpu.memory_space<vmem>>, vector<1x1x512xf32>
    %92 = vector.shape_cast %91 : vector<1x1x512xf32> to vector<1x512xf32>
    %93 = vector.broadcast %92 : vector<1x512xf32> to vector<128x512xf32>
    %94 = arith.addf %90, %93 : vector<128x512xf32>
    %cst_56 = arith.constant 5.000000e-01 : f32
    %95 = vector.broadcast %cst_56 : f32 to vector<128x512xf32>
    %96 = arith.mulf %95, %94 : vector<128x512xf32>
    %cst_57 = arith.constant 4.471500e-02 : f32
    %97 = vector.broadcast %cst_57 : f32 to vector<128x512xf32>
    %98 = arith.mulf %97, %94 : vector<128x512xf32>
    %99 = arith.mulf %98, %94 : vector<128x512xf32>
    %100 = arith.mulf %99, %94 : vector<128x512xf32>
    %101 = arith.addf %94, %100 : vector<128x512xf32>
    %cst_58 = arith.constant 0.797884583 : f32
    %102 = vector.broadcast %cst_58 : f32 to vector<128x512xf32>
    %103 = arith.mulf %102, %101 : vector<128x512xf32>
    %104 = math.tanh %103 : vector<128x512xf32>
    %cst_59 = arith.constant 1.000000e+00 : f32
    %105 = vector.broadcast %cst_59 : f32 to vector<128x512xf32>
    %106 = arith.addf %105, %104 : vector<128x512xf32>
    %107 = arith.mulf %96, %106 : vector<128x512xf32>
    %108 = arith.truncf %107 : vector<128x512xf32> to vector<128x512xbf16>
    %c0_60 = arith.constant 0 : index
    %c0_61 = arith.constant 0 : index
    %c0_62 = arith.constant 0 : index
    %109 = vector.load %arg16[%c0_60, %c0_61, %c0_62] : memref<1x512x128xbf16, #tpu.memory_space<vmem>>, vector<1x512x128xbf16>
    %110 = vector.shape_cast %109 : vector<1x512x128xbf16> to vector<512x128xbf16>
    %cst_63 = arith.constant dense<0.000000e+00> : vector<128x128xf32>
    %111 = tpu.matmul %108, %110, %cst_63 {dimension_numbers = #tpu.dot_dimension_numbers<[1], [0], [0], [1], [0, 0, 1, 1], [], []>} : vector<128x512xbf16>, vector<512x128xbf16>, vector<128x128xf32> -> vector<128x128xf32>
    %c0_64 = arith.constant 0 : index
    %c0_65 = arith.constant 0 : index
    %c0_66 = arith.constant 0 : index
    %112 = vector.load %arg17[%c0_64, %c0_65, %c0_66] : memref<1x1x128xf32, #tpu.memory_space<vmem>>, vector<1x1x128xf32>
    %113 = vector.shape_cast %112 : vector<1x1x128xf32> to vector<1x128xf32>
    %114 = vector.broadcast %113 : vector<1x128xf32> to vector<128x128xf32>
    %115 = arith.addf %111, %114 : vector<128x128xf32>
    %116 = arith.addf %86, %115 : vector<128x128xf32>
    %c0_67 = arith.constant 0 : index
    %c0_68 = arith.constant 0 : index
    %c0_69 = arith.constant 0 : index
    %117 = vector.load %arg18[%c0_67, %c0_68, %c0_69] : memref<1x1x128xf32, #tpu.memory_space<vmem>>, vector<1x1x128xf32>
    %118 = vector.shape_cast %117 : vector<1x1x128xf32> to vector<1x128xf32>
    %c0_70 = arith.constant 0 : index
    %c0_71 = arith.constant 0 : index
    %c0_72 = arith.constant 0 : index
    %119 = vector.load %arg19[%c0_70, %c0_71, %c0_72] : memref<1x1x128xf32, #tpu.memory_space<vmem>>, vector<1x1x128xf32>
    %120 = vector.shape_cast %119 : vector<1x1x128xf32> to vector<1x128xf32>
    %cst_73 = arith.constant dense<0.000000e+00> : vector<128xf32>
    %121 = vector.multi_reduction <add>, %116, %cst_73 [1] : vector<128x128xf32> to vector<128xf32>
    %122 = vector.shape_cast %121 : vector<128xf32> to vector<128x1xf32>
    %cst_74 = arith.constant 1.280000e+02 : f32
    %123 = vector.broadcast %cst_74 : f32 to vector<128x1xf32>
    %124 = arith.divf %122, %123 : vector<128x1xf32>
    %125 = vector.broadcast %124 : vector<128x1xf32> to vector<128x128xf32>
    %126 = arith.subf %116, %125 : vector<128x128xf32>
    %127 = arith.mulf %126, %126 : vector<128x128xf32>
    %cst_75 = arith.constant dense<0.000000e+00> : vector<128xf32>
    %128 = vector.multi_reduction <add>, %127, %cst_75 [1] : vector<128x128xf32> to vector<128xf32>
    %129 = vector.shape_cast %128 : vector<128xf32> to vector<128x1xf32>
    %cst_76 = arith.constant 1.280000e+02 : f32
    %130 = vector.broadcast %cst_76 : f32 to vector<128x1xf32>
    %131 = arith.divf %129, %130 : vector<128x1xf32>
    %132 = vector.broadcast %124 : vector<128x1xf32> to vector<128x128xf32>
    %133 = arith.subf %116, %132 : vector<128x128xf32>
    %cst_77 = arith.constant 9.99999996E-13 : f32
    %134 = vector.broadcast %cst_77 : f32 to vector<128x1xf32>
    %135 = arith.addf %131, %134 : vector<128x1xf32>
    %136 = math.rsqrt %135 : vector<128x1xf32>
    %137 = vector.broadcast %136 : vector<128x1xf32> to vector<128x128xf32>
    %138 = arith.mulf %133, %137 : vector<128x128xf32>
    %139 = vector.broadcast %118 : vector<1x128xf32> to vector<128x128xf32>
    %140 = arith.mulf %138, %139 : vector<128x128xf32>
    %141 = vector.broadcast %120 : vector<1x128xf32> to vector<128x128xf32>
    %142 = arith.addf %140, %141 : vector<128x128xf32>
    %143 = vector.shape_cast %142 : vector<128x128xf32> to vector<8x16x128xf32>
    %144 = vector.extract_strided_slice %143 {offsets = [0, 0, 0], sizes = [8, 1, 128], strides = [1, 1, 1]} : vector<8x16x128xf32> to vector<8x1x128xf32>
    %145 = vector.shape_cast %144 : vector<8x1x128xf32> to vector<8x128xf32>
    %146 = arith.truncf %145 : vector<8x128xf32> to vector<8x128xbf16>
    %c0_78 = arith.constant 0 : index
    %c0_79 = arith.constant 0 : index
    %c0_80 = arith.constant 0 : index
    %147 = vector.load %arg20[%c0_78, %c0_79, %c0_80] : memref<1x128x128xbf16, #tpu.memory_space<vmem>>, vector<1x128x128xbf16>
    %148 = vector.shape_cast %147 : vector<1x128x128xbf16> to vector<128x128xbf16>
    %cst_81 = arith.constant dense<0.000000e+00> : vector<8x128xf32>
    %149 = tpu.matmul %146, %148, %cst_81 {dimension_numbers = #tpu.dot_dimension_numbers<[1], [0], [0], [1], [0, 0, 1, 1], [], []>} : vector<8x128xbf16>, vector<128x128xbf16>, vector<8x128xf32> -> vector<8x128xf32>
    %c0_82 = arith.constant 0 : index
    %c0_83 = arith.constant 0 : index
    %c0_84 = arith.constant 0 : index
    %150 = vector.load %arg21[%c0_82, %c0_83, %c0_84] : memref<1x1x128xf32, #tpu.memory_space<vmem>>, vector<1x1x128xf32>
    %151 = vector.shape_cast %150 : vector<1x1x128xf32> to vector<1x128xf32>
    %152 = vector.broadcast %151 : vector<1x128xf32> to vector<8x128xf32>
    %153 = arith.addf %149, %152 : vector<8x128xf32>
    %c0_85 = arith.constant 0 : index
    %c0_86 = arith.constant 0 : index
    %c0_87 = arith.constant 0 : index
    %154 = vector.load %arg22[%c0_85, %c0_86, %c0_87] : memref<1x8x128xf32, #tpu.memory_space<vmem>>, vector<1x8x128xf32>
    %155 = vector.shape_cast %154 : vector<1x8x128xf32> to vector<8x128xf32>
    %156 = vector.shape_cast %153 : vector<8x128xf32> to vector<1x8x128xf32>
    tpu.vector_store %arg22[%c0_85, %c0_86, %c0_87], %156 {strides = array<i32>} : memref<1x8x128xf32, #tpu.memory_space<vmem>>, vector<1x8x128xf32>,
    return
  }
  func.func @transform_0(%arg0: i32, %arg1: i32) -> (i32, i32, i32, i32) {
    %c0_i32 = arith.constant 0 : i32
    %c0_i32_0 = arith.constant 0 : i32
    %c0_i32_1 = arith.constant 0 : i32
    return %arg0, %arg1, %c0_i32, %c0_i32_0 : i32, i32, i32, i32
  }
  func.func @transform_1(%arg0: i32, %arg1: i32) -> (i32, i32, i32) {
    %c0_i32 = arith.constant 0 : i32
    %c0_i32_0 = arith.constant 0 : i32
    return %arg0, %arg1, %c0_i32 : i32, i32, i32
  }
  func.func @transform_2(%arg0: i32, %arg1: i32) -> (i32, i32, i32) {
    %c0_i32 = arith.constant 0 : i32
    %c0_i32_0 = arith.constant 0 : i32
    %c0_i32_1 = arith.constant 0 : i32
    return %arg0, %c0_i32, %c0_i32_0 : i32, i32, i32
  }
  func.func @transform_3(%arg0: i32, %arg1: i32) -> (i32, i32, i32) {
    %c0_i32 = arith.constant 0 : i32
    %c0_i32_0 = arith.constant 0 : i32
    %c0_i32_1 = arith.constant 0 : i32
    return %arg0, %c0_i32, %c0_i32_0 : i32, i32, i32
  }
  func.func @transform_4(%arg0: i32, %arg1: i32) -> (i32, i32, i32) {
    %c0_i32 = arith.constant 0 : i32
    %c0_i32_0 = arith.constant 0 : i32
    %c0_i32_1 = arith.constant 0 : i32
    return %arg0, %c0_i32, %c0_i32_0 : i32, i32, i32
  }
  func.func @transform_5(%arg0: i32, %arg1: i32) -> (i32, i32, i32) {
    %c0_i32 = arith.constant 0 : i32
    %c0_i32_0 = arith.constant 0 : i32
    %c0_i32_1 = arith.constant 0 : i32
    return %arg0, %c0_i32, %c0_i32_0 : i32, i32, i32
  }
  func.func @transform_6(%arg0: i32, %arg1: i32) -> (i32, i32, i32) {
    %c0_i32 = arith.constant 0 : i32
    %c0_i32_0 = arith.constant 0 : i32
    %c0_i32_1 = arith.constant 0 : i32
    return %arg0, %c0_i32, %c0_i32_0 : i32, i32, i32
  }
  func.func @transform_7(%arg0: i32, %arg1: i32) -> (i32, i32, i32) {
    %c0_i32 = arith.constant 0 : i32
    %c0_i32_0 = arith.constant 0 : i32
    %c0_i32_1 = arith.constant 0 : i32
    return %arg0, %c0_i32, %c0_i32_0 : i32, i32, i32
  }
  func.func @transform_8(%arg0: i32, %arg1: i32) -> (i32, i32, i32) {
    %c0_i32 = arith.constant 0 : i32
    %c0_i32_0 = arith.constant 0 : i32
    %c0_i32_1 = arith.constant 0 : i32
    return %arg0, %c0_i32, %c0_i32_0 : i32, i32, i32
  }
  func.func @transform_9(%arg0: i32, %arg1: i32) -> (i32, i32, i32) {
    %c0_i32 = arith.constant 0 : i32
    %c0_i32_0 = arith.constant 0 : i32
    %c0_i32_1 = arith.constant 0 : i32
    return %arg0, %c0_i32, %c0_i32_0 : i32, i32, i32
  }
  func.func @transform_10(%arg0: i32, %arg1: i32) -> (i32, i32, i32) {
    %c0_i32 = arith.constant 0 : i32
    %c0_i32_0 = arith.constant 0 : i32
    %c0_i32_1 = arith.constant 0 : i32
    return %arg0, %c0_i32, %c0_i32_0 : i32, i32, i32
  }
  func.func @transform_11(%arg0: i32, %arg1: i32) -> (i32, i32, i32) {
    %c0_i32 = arith.constant 0 : i32
    %c0_i32_0 = arith.constant 0 : i32
    %c0_i32_1 = arith.constant 0 : i32
    return %arg0, %c0_i32, %c0_i32_0 : i32, i32, i32
  }
  func.func @transform_12(%arg0: i32, %arg1: i32) -> (i32, i32, i32) {
    %c0_i32 = arith.constant 0 : i32
    %c0_i32_0 = arith.constant 0 : i32
    %c0_i32_1 = arith.constant 0 : i32
    return %arg0, %c0_i32, %c0_i32_0 : i32, i32, i32
  }
  func.func @transform_13(%arg0: i32, %arg1: i32) -> (i32, i32, i32) {
    %c0_i32 = arith.constant 0 : i32
    %c0_i32_0 = arith.constant 0 : i32
    %c0_i32_1 = arith.constant 0 : i32
    return %arg0, %c0_i32, %c0_i32_0 : i32, i32, i32
  }
  func.func @transform_14(%arg0: i32, %arg1: i32) -> (i32, i32, i32) {
    %c0_i32 = arith.constant 0 : i32
    %c0_i32_0 = arith.constant 0 : i32
    %c0_i32_1 = arith.constant 0 : i32
    return %arg0, %c0_i32, %c0_i32_0 : i32, i32, i32
  }
  func.func @transform_15(%arg0: i32, %arg1: i32) -> (i32, i32, i32) {
    %c0_i32 = arith.constant 0 : i32
    %c0_i32_0 = arith.constant 0 : i32
    %c0_i32_1 = arith.constant 0 : i32
    return %arg0, %c0_i32, %c0_i32_0 : i32, i32, i32
  }
  func.func @transform_16(%arg0: i32, %arg1: i32) -> (i32, i32, i32) {
    %c0_i32 = arith.constant 0 : i32
    %c0_i32_0 = arith.constant 0 : i32
    %c0_i32_1 = arith.constant 0 : i32
    return %arg0, %c0_i32, %c0_i32_0 : i32, i32, i32
  }
  func.func @transform_17(%arg0: i32, %arg1: i32) -> (i32, i32, i32) {
    %c0_i32 = arith.constant 0 : i32
    %c0_i32_0 = arith.constant 0 : i32
    %c0_i32_1 = arith.constant 0 : i32
    return %arg0, %c0_i32, %c0_i32_0 : i32, i32, i32
  }
  func.func @transform_18(%arg0: i32, %arg1: i32) -> (i32, i32, i32) {
    %c0_i32 = arith.constant 0 : i32
    %c0_i32_0 = arith.constant 0 : i32
    %c0_i32_1 = arith.constant 0 : i32
    return %arg0, %c0_i32, %c0_i32_0 : i32, i32, i32
  }
  func.func @transform_19(%arg0: i32, %arg1: i32) -> (i32, i32, i32) {
    %c0_i32 = arith.constant 0 : i32
    %c0_i32_0 = arith.constant 0 : i32
    %c0_i32_1 = arith.constant 0 : i32
    return %arg0, %c0_i32, %c0_i32_0 : i32, i32, i32
  }
  func.func @transform_20(%arg0: i32, %arg1: i32) -> (i32, i32, i32) {
    %c0_i32 = arith.constant 0 : i32
    %c0_i32_0 = arith.constant 0 : i32
    return %arg0, %arg1, %c0_i32 : i32, i32, i32
  }
}

</mosaic_0001>

<bundles_post_ra>
// kernel: tpu_custom_call.1
= control target key start
LH: loop header
LB: loop body
LE: loop exit
PB: predicated region body
PF: predicated region fallthrough
CT: control target
= control target key end

     0   :  { %s8798_s0 = inlined_call_operand.hbm [shape: f32[2,8,16,128], index: 0, kind: input, shape index: {}]   ;;  %s8799_s1 = inlined_call_operand.hbm [shape: f32[2,8,16], index: 1, kind: input, shape index: {}]   ;;  %s8800_s2 = inlined_call_operand.hbm [shape: bf16[2,128,128], index: 2, kind: input, shape index: {}]   ;;  %s8801_s3 = inlined_call_operand.vmem [shape: f32[2,1,128], index: 3, kind: input, shape index: {}]   ;;  %s8802_s4 = inlined_call_operand.hbm [shape: bf16[2,128,128], index: 4, kind: input, shape index: {}]   ;;  %s8803_s5 = inlined_call_operand.vmem [shape: f32[2,1,128], index: 5, kind: input, shape index: {}]   ;;  %s8804_s6 = inlined_call_operand.hbm [shape: bf16[2,128,128], index: 6, kind: input, shape index: {}]   ;;  %s8805_s7 = inlined_call_operand.hbm [shape: f32[2,1,128], index: 7, kind: input, shape index: {}]   ;;  %s8806_s8 = inlined_call_operand.hbm [shape: bf16[2,128,128], index: 8, kind: input, shape index: {}]   ;;  %s8807_s9 = inlined_call_operand.hbm [shape: f32[2,1,128], index: 9, kind: input, shape index: {}]   ;;  %s8808_s10 = inlined_call_operand.hbm [shape: f32[2,1,128], index: 10, kind: input, shape index: {}]   ;;  %s8809_s11 = inlined_call_operand.hbm [shape: f32[2,1,128], index: 11, kind: input, shape index: {}]   ;;  %s8810_s12 = inlined_call_operand.hbm [shape: bf16[2,128,512], index: 12, kind: input, shape index: {}]   ;;  %s8811_s13 = inlined_call_operand.vmem [shape: f32[2,1,512], index: 13, kind: input, shape index: {}]   ;;  %s8812_s14 = inlined_call_operand.hbm [shape: bf16[2,512,128], index: 14, kind: input, shape index: {}]   ;;  %s8813_s15 = inlined_call_operand.vmem [shape: f32[2,1,128], index: 15, kind: input, shape index: {}]   ;;  %s8814_s16 = inlined_call_operand.hbm [shape: f32[2,1,128], index: 16, kind: input, shape index: {}]   ;;  %s8815_s17 = inlined_call_operand.vmem [shape: f32[2,1,128], index: 17, kind: input, shape index: {}]   ;;  %s8816_s18 = inlined_call_operand.hbm [shape: bf16[2,128,128], index: 18, kind: input, shape index: {}]   ;;  %s8817_s19 = inlined_call_operand.vmem [shape: f32[2,1,128], index: 19, kind: input, shape index: {}]   ;;  %s8818_s20 = inlined_call_operand.hbm [shape: f32[2,8,128], index: 20, kind: output, shape index: {}]  }
   0x1   :  { %8856 = sst [smem:[#allocation54_spill]] %s8798_s0 }
   0x2   :  { %8857 = sst [smem:[#allocation55_spill]] %s8799_s1 }
   0x3   :  { %8858 = sst [smem:[#allocation56_spill]] %s8800_s2 }
   0x4   :  { %8859 = sst [smem:[#allocation57_spill]] %s8801_s3 }
   0x5   :  { %8860 = sst [smem:[#allocation58_spill]] %s8802_s4 }
   0x6   :  { %8861 = sst [smem:[#allocation59_spill]] %s8803_s5 }
   0x7   :  { %8862 = sst [smem:[#allocation60_spill]] %s8804_s6 }
   0x8   :  { %8863 = sst [smem:[#allocation61_spill]] %s8805_s7 }
   0x9   :  { %8864 = sst [smem:[#allocation62_spill]] %s8806_s8 }
   0xa   :  { %8865 = sst [smem:[#allocation63_spill]] %s8807_s9 }
   0xb   :  { %8866 = sst [smem:[#allocation64_spill]] %s8809_s11 }
   0xc   :  { %8867 = sst [smem:[#allocation65_spill]] %s8810_s12 }
   0xd   :  { %8868 = sst [smem:[#allocation66_spill]] %s8811_s13 }
   0xe   :  { %8869 = sst [smem:[#allocation67_spill]] %s8812_s14 }
   0xf   :  { %8870 = sst [smem:[#allocation68_spill]] %s8813_s15 }
  0x10   :  { %8871 = sst [smem:[#allocation69_spill]] %s8815_s17 }
  0x11   :  { %8872 = sst [smem:[#allocation70_spill]] %s8817_s19 }
  0x12   :  { %8873 = sst [smem:[#allocation71_spill]] %s8818_s20 }
  0x13   :  { %25 = vsyncpa [#allocation3], 0 }
  0x14   :  { %27 = vsyncpa [#allocation3 + $0x1], 0 }
  0x15   :  { %28 = vsyncpa [#allocation6], 0 }
  0x16   :  { %30 = vsyncpa [#allocation6 + $0x1], 0 }
  0x17   :  { %31 = vsyncpa [#allocation9], 0 }
  0x18   :  { %33 = vsyncpa [#allocation9 + $0x1], 0 }
  0x19   :  { %34 = vsyncpa [#allocation12], 0 }
  0x1a   :  { %36 = vsyncpa [#allocation12 + $0x1], 0 }
  0x1b   :  { %37 = vsyncpa [#allocation15], 0 }
  0x1c   :  { %39 = vsyncpa [#allocation15 + $0x1], 0 }
  0x1d   :  { %40 = vsyncpa [#allocation18], 0 }
  0x1e   :  { %42 = vsyncpa [#allocation18 + $0x1], 0 }
  0x1f   :  { %43 = vsyncpa [#allocation21], 0 }
  0x20   :  { %45 = vsyncpa [#allocation21 + $0x1], 0 }
  0x21   :  { %46 = vsyncpa [#allocation24], 0 }
  0x22   :  { %48 = vsyncpa [#allocation24 + $0x1], 0 }
  0x23   :  { %49 = vsyncpa [#allocation4], 0 }
  0x24   :  { %51 = vsyncpa [#allocation4 + $0x1], 0  ;;  %s6615_s1 = smov 0   ;;  %s6617_s22 = smov 0  }
  0x25   :  { %s6619_s23 = smov 0   ;;  %s6621_s24 = smov 0  }
  0x26   :  { %s6623_s2 = smov 0   ;;  %s6625_s25 = smov 0  }
  0x27 LB: > { %8874 = sst [smem:[#allocation35_spill]] %s6481_s1  ;;  %s6646_s3 = sadd.s32 4294967295, %s6501_s25   ;;  %s6501_s25 = sphi %s6625_s25, %s57_s25   ;;  %s6497_s2 = sphi %s6623_s2, %s8966_s2   ;;  %s6493_s24 = sphi %s6621_s24, %s8965_s24   ;;  %s6489_s23 = sphi %s6619_s23, %s8961_s23   ;;  %s6485_s22 = sphi %s6617_s22, %s8964_s22   ;;  %s6481_s1 = sphi %s6615_s1, %s8963_s1  }
  0x28   : > { %8875 = sst [smem:[#allocation36_spill]] %s6489_s23  ;;  %s5042_s26 = sadd.s32 4294967294, %s6501_s25  }
  0x29   : > { %8876 = sst [smem:[#allocation37_spill]] %s6493_s24  ;;  %s69_s27 = sadd.s32 1, %s6497_s2 }
  0x2a   : > { %8877 = sst [smem:[#allocation38_spill]] %s6646_s3  ;;  %s78_s28 = sadd.s32 1, %s6489_s23 }
  0x2b   : > { %p71_p0 = scmp.ge.s32.totalorder %s69_s27, 2  ;;  %p85_p1 = scmp.ne.s32.totalorder %s6489_s23, %s6485_s22 }
  0x2c   : > { %p86_p2 = scmp.eq.s32.totalorder %s6501_s25, 0  ;;  %p91_p3 = scmp.ne.s32.totalorder %s6485_s22, %s6481_s1 }
  0x2d   : > { %s8968_s27 = smov (%p71_p0, %s69_s27), 0  ;;  %p92_p5 = scmp.eq.s32.totalorder %s6646_s3, 0 }
  0x2e   : > { %8878 = sst [smem:[#allocation39_spill]] %s8968_s27  ;;  %p6658_p4 = por %p86_p2, %p85_p1 }
  0x2f   : > { %s73_s29 = ssub.s32 %s6497_s2, %s8968_s27  ;;  %p613_p6 = scmp.eq.s32.totalorder %s6646_s3, 1 }
  0x30   : > { %p76_p7 = scmp.eq.s32.totalorder %s73_s29, 0  ;;  %p6666_p8 = por %p92_p5, %p91_p3 }
  0x31   : > { %p6670_p9 = por %p613_p6, %p85_p1  ;;  %p619_p10 = scmp.eq.s32.totalorder %s5042_s26, 1 }
  0x32   : > { %s8880_s30 = scalar_select %p6666_p8, 1, 0 }
  0x33   : > { %s8882_s0 = scalar_select %p6670_p9, 1, 0 }
  0x34   : > { %8881 = sst [smem:[#allocation40_spill]] %s8880_s30  ;;  %p6677_p11 = por %p619_p10, %p91_p3 }
  0x35   : > { %8883 = sst [smem:[#allocation41_spill]] %s8882_s0  ;;  %p5044_p12 = scmp.ge.s32.totalorder %s6501_s25, 2 }
  0x36   : > { %s6675_s21 = scalar_select %p76_p7, %s6489_s23, %s78_s28  }
  0x37   : > { %s8885_s1 = scalar_select %p6677_p11, 1, 0 }
  0x38   : > { %8884 = sst [smem:[#allocation42_spill]] %s6675_s21  ;;  %635 = sbr.rel (%p5044_p12) target bundleno = 122 (0x7a), region = 16 }
  0x39   : > { %8886 = sst [smem:[#allocation43_spill]] %s8885_s1  ;;  %s6685_s29 = sand.u32 (!%p5044_p12), 1, %s6489_s23  }
  0x3a   : > { %s6688_s26 = sand.u32 (!%p5044_p12), 1, %s6501_s25   ;;  %s5048_s28 = sshll.u32 (!%p5044_p12), %s6685_s29, 3 }
  0x3b   : > { %s5049_s27 = sshll.u32 (!%p5044_p12), %s6497_s2, 3  ;;  %s8887_s0 = sld [smem:[#allocation55_spill]] (!%p5044_p12) }
  0x3c   : > { %s668_s19 = scalar_lea.vmem (!%p5044_p12), [#allocation5], %s5048_s28  ;;  %s6696_s23 = sshll.u32 (!%p5044_p12), %s6685_s29, 6 }
  0x3d   : > { %s677_s17 = sshll.u32 %s668_s19, 4  ;;  %s8832_s13 = scalar_lea.sflag [#allocation6], %s6688_s26  ;;  %s678_s17 = int_to_ptr.vmem [resolvable:$true] %s677_s17 }
  0x3e   : > { %s6704_s5 = sshll.u32 %s6497_s2, 6  ;;  %s8888_s19 = sld [smem:[#allocation58_spill]] }
  0x3f   : > { %s716_s21 = scalar_lea.vmem [#allocation8], %s6696_s23  ;;  %s8835_s24 = scalar_lea.sflag [#allocation9], %s6688_s26 }
  0x40   : > { %s724_s28 = sshll.u32 %s716_s21, 4  ;;  %s8836_s3 = smov 64   ;;  %s725_s28 = int_to_ptr.vmem [resolvable:$true] %s724_s28 }
  0x41   : > { %s673_s20 = scalar_lea.hbm %s8887_s0, %s5049_s27  ;;  %s8889_s7 = sld [smem:[#allocation61_spill]] }
  0x42   : > { %s675_s15 = sshll.u32 %s673_s20, 4  ;;  %s8890_s9 = sld [smem:[#allocation63_spill]]  ;;  %s676_s15 = int_to_ptr.hbm [resolvable:$true] %s675_s15 }
  0x43   : > { %5640 = dma.hbm_to_vmem [thread:$0]  (%p6658_p4), %s676_s15, 128, %s678_s17, %s8832_s13  }
  0x44   : > { %s721_s20 = scalar_lea.hbm %s8888_s19, %s6704_s5  ;;  %s8840_s15 = smov 4  }
  0x45   : > { %s722_s0 = sshll.u32 %s721_s20, 4  ;;  %s765_s19 = scalar_lea.vmem [#allocation11], %s6685_s29  ;;  %s723_s0 = int_to_ptr.hbm [resolvable:$true] %s722_s0 }
  0x46   : > { %5642 = dma.hbm_to_vmem [thread:$0]  (%p6658_p4), %s723_s0, 1024, %s725_s28, %s8835_s24, %s8836_s3, %s8836_s3, %s8840_s15  }
  0x47   : > { %s768_s27 = scalar_lea.hbm %s8889_s7, %s6497_s2  ;;  %s772_s20 = sshll.u32 %s765_s19, 4  ;;  %s773_s20 = int_to_ptr.vmem [resolvable:$true] %s772_s20 }
  0x48   : > { %s770_s21 = sshll.u32 %s768_s27, 4  ;;  %s8839_s13 = scalar_lea.sflag [#allocation12], %s6688_s26  ;;  %s771_s21 = int_to_ptr.hbm [resolvable:$true] %s770_s21 }
  0x49   : > { %5644 = dma.hbm_to_vmem [thread:$0]  (%p6658_p4), %s771_s21, 16, %s773_s20, %s8839_s13  }
  0x4a   : > { %s807_s28 = scalar_lea.hbm %s8890_s9, %s6497_s2  ;;  %s804_s1 = scalar_lea.vmem [#allocation14], %s6685_s29 }
  0x4b   : > { %s809_s17 = sshll.u32 %s807_s28, 4  ;;  %s811_s24 = sshll.u32 %s804_s1, 4  ;;  %s810_s17 = int_to_ptr.hbm [resolvable:$true] %s809_s17  ;;  %s812_s24 = int_to_ptr.vmem [resolvable:$true] %s811_s24 }
  0x4c   : > { %s8838_s27 = scalar_lea.sflag [#allocation15], %s6688_s26  ;;  %s8891_s11 = sld [smem:[#allocation64_spill]] }
  0x4d   : > { %5646 = dma.hbm_to_vmem [thread:$0]  (%p6658_p4), %s810_s17, 16, %s812_s24, %s8838_s27  }
  0x4e   : > { %s838_s21 = scalar_lea.vmem [#allocation17], %s6685_s29  ;;  %s5062_s28 = sshll.u32 %s6685_s29, 8 }
  0x4f   : > { %s845_s30 = sshll.u32 %s838_s21, 4  ;;  %s8842_s1 = scalar_lea.sflag [#allocation18], %s6688_s26  ;;  %s846_s30 = int_to_ptr.vmem [resolvable:$true] %s845_s30 }
  0x50   : > { %s5516_s24 = sshll.u32 %s6497_s2, 8  ;;  %s8892_s12 = sld [smem:[#allocation65_spill]] }
  0x51   : > { %s6756_s19 = scalar_lea.vmem [#allocation19], %s5062_s28  ;;  %s8893_s14 = sld [smem:[#allocation67_spill]] }
  0x52   : > { %s841_s20 = scalar_lea.hbm %s8891_s11, %s6497_s2  ;;  %s885_s11 = scalar_lea.vmem [#allocation20], %s5062_s28 }
  0x53   : > { %s843_s0 = sshll.u32 %s841_s20, 4  ;;  %s882_s27 = scalar_lea.sflag [#allocation21], %s6688_s26  ;;  %s844_s0 = int_to_ptr.hbm [resolvable:$true] %s843_s0 }
  0x54   : > { %5648 = dma.hbm_to_vmem [thread:$0]  (%p6658_p4), %s844_s0, 16, %s846_s30, %s8842_s1  }
  0x55   : > { %s893_s30 = sshll.u32 %s885_s11, 4  ;;  %s8894_s0 = smov 4   ;;  %s894_s30 = int_to_ptr.vmem [resolvable:$true] %s893_s30 }
  0x56   : > { %s6754_s3 = scalar_lea.hbm %s8892_s12, %s5516_s24  ;;  %s8895_s17 = smov 64  }
  0x57   : > { %s890_s7 = scalar_lea.hbm %s8893_s14, %s5516_s24  ;;  %s5045_s1 = sshll.u32 %s6685_s29, 7 }
  0x58   : > { %s891_s9 = sshll.u32 %s890_s7, 4  ;;  %s5511_s20 = sshll.u32 %s6497_s2, 7  ;;  %s892_s9 = int_to_ptr.hbm [resolvable:$true] %s891_s9 }
  0x59   : > { %5650 = dma.hbm_to_vmem [thread:$0]  (%p6658_p4), %s892_s9, 4096, %s894_s30, %s882_s27, %s8895_s17, %s8895_s17, %s8894_s0  }
  0x5a   : > { %s8896_s24 = sld [smem:[#allocation54_spill]]  ;;  %s643_s11 = scalar_lea.vmem [#allocation2], %s5045_s1 }
  0x5b   : > { %s654_s28 = sshll.u32 %s643_s11, 4  ;;  %s640_s12 = scalar_lea.sflag [#allocation3], %s6685_s29  ;;  %s655_s28 = int_to_ptr.vmem [resolvable:$true] %s654_s28 }
  0x5c   : > { %s6505_s14 = smov 128   ;;  %s6506_s9 = smov 8  }
  0x5d   : > { %s688_s1 = scalar_lea.vmem [#allocation7], %s6696_s23  ;;  %s8899_s6 = sld [smem:[#allocation60_spill]] }
  0x5e   : > { %s8900_s13 = scalar_lea.sflag [#allocation9], %s6688_s26  ;;  %s8901_s8 = sld [smem:[#allocation62_spill]] }
  0x60   : > { %s651_s7 = scalar_lea.hbm %s8896_s24, %s5511_s20  ;;  %s8897_s20 = sld [smem:[#allocation56_spill]] }
  0x61   : > { %s652_s21 = sshll.u32 %s651_s7, 4  ;;  %s696_s24 = sshll.u32 %s688_s1, 4  ;;  %s653_s21 = int_to_ptr.hbm [resolvable:$true] %s652_s21  ;;  %s697_s24 = int_to_ptr.vmem [resolvable:$true] %s696_s24 }
  0x62   : > { %5639 = dma.hbm_to_vmem [thread:$0]  (%p6658_p4), %s653_s21, 2048, %s655_s28, %s640_s12, %s6505_s14, %s6505_s14, %s6506_s9  }
  0x63   : > { %s8898_s7 = scalar_lea.sflag [#allocation6], %s6688_s26  ;;  %s749_s21 = scalar_lea.hbm %s8899_s6, %s6704_s5 }
  0x64   : > { %s744_s28 = scalar_lea.vmem [#allocation10], %s6696_s23  ;;  %s750_s30 = sshll.u32 %s749_s21, 4  ;;  %s751_s30 = int_to_ptr.hbm [resolvable:$true] %s750_s30 }
  0x65   : > { %s752_s9 = sshll.u32 %s744_s28, 4  ;;  %s788_s1 = scalar_lea.hbm %s8901_s8, %s6704_s5  ;;  %s753_s9 = int_to_ptr.vmem [resolvable:$true] %s752_s9 }
  0x66   : > { %s693_s15 = scalar_lea.hbm %s8897_s20, %s6704_s5  ;;  %s8902_s12 = scalar_lea.sflag [#allocation12], %s6688_s26 }
  0x67   : > { %s694_s11 = sshll.u32 %s693_s15, 4  ;;  %s824_s28 = scalar_lea.hbm %s8808_s10, %s6497_s2  ;;  %s695_s11 = int_to_ptr.hbm [resolvable:$true] %s694_s11 }
  0x68   : > { %5641 = dma.hbm_to_vmem [thread:$0]  (%p6658_p4), %s695_s11, 1024, %s697_s24, %s8898_s7, %s8895_s17, %s8895_s17, %s8894_s0  }
  0x69   : > { %5643 = dma.hbm_to_vmem [thread:$0]  (%p6658_p4), %s751_s30, 1024, %s753_s9, %s8900_s13, %s8895_s17, %s8895_s17, %s8894_s0  }
  0x6a   : > { %s783_s24 = scalar_lea.vmem [#allocation13], %s6696_s23  ;;  %s789_s7 = sshll.u32 %s788_s1, 4  ;;  %s790_s7 = int_to_ptr.hbm [resolvable:$true] %s789_s7 }
  0x6b   : > { %s791_s11 = sshll.u32 %s783_s24, 4  ;;  %s821_s9 = scalar_lea.vmem [#allocation16], %s6685_s29  ;;  %s792_s11 = int_to_ptr.vmem [resolvable:$true] %s791_s11 }
  0x6c   : > { %5645 = dma.hbm_to_vmem [thread:$0]  (%p6658_p4), %s790_s7, 1024, %s792_s11, %s8902_s12, %s8895_s17, %s8895_s17, %s8894_s0  }
  0x6d   : > { %s828_s30 = sshll.u32 %s821_s9, 4  ;;  %s826_s13 = sshll.u32 %s824_s28, 4  ;;  %s829_s30 = int_to_ptr.vmem [resolvable:$true] %s828_s30  ;;  %s827_s13 = int_to_ptr.hbm [resolvable:$true] %s826_s13 }
  0x6e   : > { %s8903_s20 = sshll.u32 %s6754_s3, 4  ;;  %s8904_s15 = scalar_lea.sflag [#allocation15], %s6688_s26  ;;  %s863_s20 = int_to_ptr.hbm [resolvable:$true] %s8903_s20 }
  0x6f   : > { %5647 = dma.hbm_to_vmem [thread:$0]  (%p6658_p4), %s827_s13, 16, %s829_s30, %s8904_s15  }
  0x70   : > { %s8905_s1 = sshll.u32 %s6756_s19, 4  ;;  %s6507_s24 = smov 256   ;;  %s865_s1 = int_to_ptr.vmem [resolvable:$true] %s8905_s1 }
  0x71   : > { %s6508_s11 = smov 16   ;;  %s8906_s7 = scalar_lea.sflag [#allocation18], %s6688_s26 }
  0x72   : > { %5649 = dma.hbm_to_vmem [thread:$0]  (%p6658_p4), %s863_s20, 4096, %s865_s1, %s8906_s7, %s6507_s24, %s6507_s24, %s6508_s11  }
  0x73   : > { %s915_s21 = scalar_lea.hbm %s8814_s16, %s6497_s2  ;;  %s912_s28 = scalar_lea.vmem [#allocation22], %s6685_s29 }
  0x74   : > { %s919_s3 = sshll.u32 %s912_s28, 4  ;;  %s917_s9 = sshll.u32 %s915_s21, 4  ;;  %s920_s3 = int_to_ptr.vmem [resolvable:$true] %s919_s3  ;;  %s918_s9 = int_to_ptr.hbm [resolvable:$true] %s917_s9 }
  0x75   : > { %5651 = dma.hbm_to_vmem [thread:$0]  (%p6658_p4), %s918_s9, 16, %s920_s3, %s882_s27  }
  0x76   : > { %s941_s13 = scalar_lea.hbm %s8816_s18, %s6704_s5  ;;  %s936_s6 = scalar_lea.vmem [#allocation23], %s6696_s23 }
  0x77   : > { %s942_s15 = sshll.u32 %s941_s13, 4  ;;  %s944_s8 = sshll.u32 %s936_s6, 4  ;;  %s943_s15 = int_to_ptr.hbm [resolvable:$true] %s942_s15  ;;  %s945_s8 = int_to_ptr.vmem [resolvable:$true] %s944_s8 }
  0x78   : > { %s933_s20 = scalar_lea.sflag [#allocation24], %s6685_s29 }
  0x79   : > { %5652 = dma.hbm_to_vmem [thread:$0]  (%p6658_p4), %s943_s15, 1024, %s945_s8, %s933_s20, %s8895_s17, %s8895_s17, %s8894_s0  }
  0x7a PF: > { %p5071_p13 = scmp.ge.s32.totalorder %s6501_s25, 1  ;;  %p958_p0 = scmp.lt.s32.totalorder %s6501_s25, 3 }
  0x7c   : > { %p959_p1 = pnand %p5071_p13, %p958_p0 }
  0x7e   : > { %962 = sbr.rel (%p959_p1) target bundleno = 2333 (0x91d), region = 100 }
  0x83   : > { %s6855_s26 = sand.u32 1, %s6485_s22  }
  0x84   : > { %s5072_s6 = sshll.u32 %s6855_s26, 7  ;;  %s965_s23 = scalar_lea.sflag [#allocation3], %s6855_s26 }
  0x85   : > { %s6859_s4 = scalar_lea.vmem [#allocation2], %s5072_s6 }
  0x86   : > { %6444 = dma.done.wait (%p6666_p8), %s965_s23, 2048  }
  0x87   : > { %6446 = vsyncadd (%p6666_p8), %s965_s23, 4294965248  ;;  %s8908_s8 = sld [smem:[#allocation38_spill]]  ;;  %s5073_s27 = sshll.u32 %s6855_s26, 3 }
  0x88   : > { %s6872_s17 = scalar_lea.vmem [#allocation5], %s5073_s27 }
  0x8d   : > { %s6866_s29 = sand.u32 1, %s8908_s8  }
  0x8e   : > { %s975_s0 = scalar_lea.sflag [#allocation6], %s6866_s29 }
  0x8f   : > { %6448 = dma.done.wait (%p6666_p8), %s975_s0, 1152  }
  0x90   : > { %6450 = vsyncadd (%p6666_p8), %s975_s0, 4294966144  ;;  %s5074_s1 = sshll.u32 %s6855_s26, 6  ;;  %s995_s11 = scalar_lea.sflag [#allocation9], %s6866_s29 }
  0x91   : > { %s6879_s24 = scalar_lea.vmem [#allocation7], %s5074_s1  ;;  %s6882_s7 = scalar_lea.vmem [#allocation8], %s5074_s1 }
  0x92   : > { %6452 = dma.done.wait (%p6666_p8), %s995_s11, 2048  }
  0x93   : > { %6454 = vsyncadd (%p6666_p8), %s995_s11, 4294965248  ;;  %s6888_s12 = scalar_lea.vmem [#allocation10], %s5074_s1  ;;  %s1015_s14 = scalar_lea.sflag [#allocation12], %s6866_s29 }
  0x94   : > { %s1017_s21 = scalar_lea.vmem [#allocation11], %s6855_s26 }
  0x95   : > { %6456 = dma.done.wait (%p6666_p8), %s1015_s14, 1040  }
  0x96   : > { %6458 = vsyncadd (%p6666_p8), %s1015_s14, 4294966256  ;;  %s6896_s28 = scalar_lea.vmem [#allocation13], %s5074_s1  ;;  %s1034_s3 = scalar_lea.sflag [#allocation15], %s6866_s29 }
  0x97   : > { %s1036_s9 = scalar_lea.vmem [#allocation14], %s6855_s26 }
  0x98   : > { %6460 = dma.done.wait (%p6666_p8), %s1034_s3, 32  }
  0x99   : > { %6462 = vsyncadd (%p6666_p8), %s1034_s3, 4294967264  ;;  %s1045_s19 = scalar_lea.vmem [#allocation16], %s6855_s26  ;;  %s1052_s30 = scalar_lea.sflag [#allocation18], %s6866_s29 }
  0x9a   : > { %s1054_s13 = scalar_lea.vmem [#allocation17], %s6855_s26 }
  0x9b   : > { %6464 = dma.done.wait (%p6666_p8), %s1052_s30, 4112  }
  0x9c   : > { %6466 = vsyncadd (%p6666_p8), %s1052_s30, 4294963184  ;;  %s5078_s15 = sshll.u32 %s6855_s26, 8  ;;  %s1071_s6 = scalar_lea.sflag [#allocation21], %s6866_s29 }
  0x9d   : > { %s6912_s20 = scalar_lea.vmem [#allocation19], %s5078_s15  ;;  %s6915_s23 = scalar_lea.vmem [#allocation20], %s5078_s15 }
  0x9e   : > { %6468 = dma.done.wait (%p6666_p8), %s1071_s6, 4112  }
  0x9f   : > { %6470 = vsyncadd (%p6666_p8), %s1071_s6, 4294963184  ;;  %s1083_s8 = scalar_lea.vmem [#allocation22], %s6855_s26  ;;  %s1090_s0 = scalar_lea.sflag [#allocation24], %s6855_s26 }
  0xa0   : > { %s6923_s11 = scalar_lea.vmem [#allocation23], %s5074_s1 }
  0xa1   : > { %6472 = dma.done.wait (%p6666_p8), %s1090_s0, 1024  }
  0xa2   : > { %6474 = vsyncadd (%p6666_p8), %s1090_s0, 4294966272  ;;  %s8909_s29 = sld [smem:[#allocation37_spill]]  ;;  %v5526_v0 = vld [vmem:[%s6879_s24 + $0x38] sm:$0xff]  ;;  %v5525_v1 = vld [vmem:[%s6879_s24 + $0x30] sm:$0xff]  ;;  %vm1939_vm0 = vcmask 130048  }
  0xa3   : > { %5623 = vmatpush.bf16.msra.mxu1 %v5526_v0  ;;  %1344 = vmatpush.bf16.msra.mxu0 %v5526_v0  ;;  %v5524_v2 = vld [vmem:[%s6879_s24 + $0x28] sm:$0xff]  ;;  %v5523_v3 = vld [vmem:[%s6879_s24 + $0x20] sm:$0xff]  ;;  %v5522_v4 = vld [vmem:[%s6879_s24 + $0x18] sm:$0xff]  ;;  %s8910_s3 = sld [smem:[#allocation57_spill]] }
  0xa4   : > { %v5521_v5 = vld [vmem:[%s6879_s24 + $0x10] sm:$0xff]  ;;  %v5520_v6 = vld [vmem:[%s6879_s24 + $0x8] sm:$0xff]  ;;  %v5519_v7 = vld [vmem:[%s6879_s24] sm:$0xff]  ;;  %s8911_s6 = sld [smem:[#allocation59_spill]] }
  0xa5   : > { %v1261_v8 = vld [vmem:[%s6859_s4 + $0x50] sm:$0xff]  ;;  %v1262_v9 = vld [vmem:[%s6859_s4 + $0x58] sm:$0xff]  ;;  %v5534_v10 = vld [vmem:[%s6882_s7 + $0x38] sm:$0xff]  ;;  %s8943_s15 = sld [smem:[#allocation69_spill]] }
  0xa6   : > { %v6948_v11 = vpack.c.bf16 %v1262_v9, %v1261_v8  ;;  %v5533_v12 = vld [vmem:[%s6882_s7 + $0x30] sm:$0xff]  ;;  %v1252_v14 = vld [vmem:[%s6859_s4 + $0x8] sm:$0xff]  ;;  %v5532_v15 = vld [vmem:[%s6882_s7 + $0x28] sm:$0xff]  ;;  %s8946_s1 = sld [smem:[#allocation70_spill]] }
  0xa7   : > { %5624 = vmatpush.bf16.msra.mxu1 %v5525_v1  ;;  %1345 = vmatpush.bf16.msra.mxu0 %v5525_v1  ;;  %v1251_v13 = vld [vmem:[%s6859_s4] sm:$0xff]  ;;  %v5531_v17 = vld [vmem:[%s6882_s7 + $0x20] sm:$0xff]  ;;  %v1264_v19 = vld [vmem:[%s6859_s4 + $0x68] sm:$0xff] }
  0xa8   : > { %p1231_p2 = scmp.lt.s32.totalorder %s8909_s29, 1  ;;  %v6955_v16 = vpack.c.bf16 %v1252_v14, %v1251_v13  ;;  %v1263_v18 = vld [vmem:[%s6859_s4 + $0x60] sm:$0xff]  ;;  %v5530_v20 = vld [vmem:[%s6882_s7 + $0x18] sm:$0xff]  ;;  %v1253_v23 = vld [vmem:[%s6859_s4 + $0x10] sm:$0xff] }
  0xa9   : > { %v6962_v21 = vpack.c.bf16 %v1264_v19, %v1263_v18  ;;  %v5529_v22 = vld [vmem:[%s6882_s7 + $0x10] sm:$0xff]  ;;  %v1254_v24 = vld [vmem:[%s6859_s4 + $0x18] sm:$0xff]  ;;  %v5527_v27 = vld [vmem:[%s6882_s7] sm:$0xff] }
  0xaa   : > { %s6937_s5 = scalar_select %p1231_p2, %s8909_s29, 1  ;;  %v5528_v25 = vld [vmem:[%s6882_s7 + $0x8] sm:$0xff]  ;;  %v6969_v26 = vpack.c.bf16 %v1254_v24, %v1253_v23  ;;  %v1265_v28 = vld [vmem:[%s6859_s4 + $0x70] sm:$0xff]  ;;  %v1255_v31 = vld [vmem:[%s6859_s4 + $0x20] sm:$0xff] }
  0xab   : > { %5625 = vmatpush.bf16.msra.mxu1 %v5524_v2  ;;  %1346 = vmatpush.bf16.msra.mxu0 %v5524_v2  ;;  %v1266_v29 = vld [vmem:[%s6859_s4 + $0x78] sm:$0xff]  ;;  %v1256_v32 = vld [vmem:[%s6859_s4 + $0x28] sm:$0xff]  ;;  %v1257_v34 = vld [vmem:[%s6859_s4 + $0x30] sm:$0xff] }
  0xac   : > { %s1233_s30 = scalar_lea.vmem %s8910_s3, %s6937_s5  ;;  %v6975_v30 = vpack.c.bf16 %v1266_v29, %v1265_v28  ;;  %v6980_v33 = vpack.c.bf16 %v1256_v32, %v1255_v31  ;;  %s1236_s0 = scalar_lea.vmem %s8911_s6, %s6937_s5  ;;  %v1258_v35 = vld [vmem:[%s6859_s4 + $0x38] sm:$0xff]  ;;  %v1259_v37 = vld [vmem:[%s6859_s4 + $0x40] sm:$0xff]  ;;  %v1260_v38 = vld [vmem:[%s6859_s4 + $0x48] sm:$0xff] }
  0xad   : > { %v6990_v36 = vpack.c.bf16 %v1258_v35, %v1257_v34  ;;  %v6996_v39 = vpack.c.bf16 %v1260_v38, %v1259_v37  ;;  %v7017_v50 = vld [vmem:[%s1236_s0] ss:$0 sm:$0xff]  ;;  %s1246_s6 = scalar_lea.vmem %s8943_s15, %s6937_s5 }
  0xae   : > { %v7025_v52 = vld [vmem:[%s1233_s30] ss:$0 sm:$0xff]  ;;  %s1229_s30 = scalar_lea.vmem [#allocation25], %s5073_s27 }
  0xaf   : > { %5626 = vmatpush.bf16.msra.mxu1 %v5523_v3  ;;  %1347 = vmatpush.bf16.msra.mxu0 %v5523_v3  ;;  %s4637_s24 = sshll.u32 %s1229_s30, 4  ;;  %s4638_s24 = int_to_ptr.vmem [resolvable:$true] %s4637_s24 }
  0xb3   : > { %5627 = vmatpush.bf16.msra.mxu1 %v5522_v4  ;;  %1348 = vmatpush.bf16.msra.mxu0 %v5522_v4 }
  0xb7   : > { %5628 = vmatpush.bf16.msra.mxu1 %v5521_v5  ;;  %1349 = vmatpush.bf16.msra.mxu0 %v5521_v5 }
  0xbb   : > { %5629 = vmatpush.bf16.msra.mxu1 %v5520_v6  ;;  %1350 = vmatpush.bf16.msra.mxu0 %v5520_v6 }
  0xbf   : > { %5630 = vmatpush.bf16.msra.mxu1 %v5519_v7  ;;  %1351 = vmatpush.bf16.msra.mxu0 %v5519_v7 }
  0xc2   : > { %1377 = vmatmul.bf16.vlgmr.msra.gmra.mxu1 %v6948_v11  ;;  %1352 = vmatmul.bf16.vlgmr.msra.gmra.mxu0 %v6955_v16 }
  0xc3   : > { %1461 = vmatpush.bf16.msrb.mxu1 %v5534_v10 }
  0xc7   : > { %1462 = vmatpush.bf16.msrb.mxu1 %v5533_v12 }
  0xcb   : > { %1463 = vmatpush.bf16.msrb.mxu1 %v5532_v15 }
  0xcf   : > { %1464 = vmatpush.bf16.msrb.mxu1 %v5531_v17 }
  0xd2   : > { %1382 = vmatmul.bf16.gmra.mxu1 %v6962_v21  ;;  %1357 = vmatmul.bf16.gmra.mxu0 %v6969_v26 }
  0xd3   : > { %1465 = vmatpush.bf16.msrb.mxu1 %v5530_v20 }
  0xd7   : > { %1466 = vmatpush.bf16.msrb.mxu1 %v5529_v22 }
  0xdb   : > { %1467 = vmatpush.bf16.msrb.mxu1 %v5528_v25 }
  0xdf   : > { %1468 = vmatpush.bf16.msrb.mxu1 %v5527_v27 }
  0xe2   : > { %1387 = vmatmul.bf16.gmra.mxu1 %v6975_v30  ;;  %1362 = vmatmul.bf16.gmra.mxu0 %v6980_v33 }
  0xf2   : > { %1469 = vmatmul.bf16.vlgmr.msrb.gmra.mxu1 %v6955_v16  ;;  %1367 = vmatmul.bf16.gmra.mxu0 %v6990_v36 }
 0x102   : > { %1474 = vmatmul.bf16.gmra.mxu1 %v6969_v26  ;;  %1372 = vmatmul.bf16.gmra.mxu0 %v6996_v39 }
 0x112   : > { %1479 = vmatmul.bf16.gmra.mxu1 %v6980_v33 }
 0x122   : > { %1484 = vmatmul.bf16.gmra.mxu1 %v6990_v36 }
 0x132   : > { %1489 = vmatmul.bf16.gmra.mxu1 %v6996_v39 }
 0x13f   : > { %v7002_v40 = vpop.f32.mrf.mxu1  ;;  %v1353_v44 = vpop.f32.mrf.mxu0 }
 0x140   : > { %v1354_v57 = vadd.f32 %v7025_v52, %v1353_v44 }
 0x142   : > { %1494 = vmatmul.bf16.gmra.mxu1 %v6948_v11  ;;  %v1627_v62 = vpack.c.bf16 %v1354_v57, %v1354_v57 }
 0x144   : > { %v1677_v2 = vunpack.c.l.b16 %v1627_v62 }
 0x147   : > { %v7005_v41 = vpop.f32.mrf.mxu1  ;;  %v1355_v46 = vpop.f32.mrf.mxu0 }
 0x148   : > { %v1356_v58 = vadd.f32 %v7025_v52, %v1355_v46 }
 0x14a   : > { %v1628_v63 = vpack.c.bf16 %v1356_v58, %v1356_v58 }
 0x14c   : > { %v1678_v3 = vunpack.c.l.b16 %v1628_v63 }
 0x14e   : > { %v1679_v6 = vpack.c.b16 %v1678_v3, %v1677_v2 }
 0x14f   : > { %v7007_v42 = vpop.f32.mrf.mxu1  ;;  %v1358_v48 = vpop.f32.mrf.mxu0 }
 0x150   : > { %v1359_v8 = vadd.f32 %v7025_v52, %v1358_v48 }
 0x152   : > { %1499 = vmatmul.bf16.gmra.mxu1 %v6962_v21  ;;  %v1629_v15 = vpack.c.bf16 %v1359_v8, %v1359_v8 }
 0x154   : > { %v1703_v22 = vunpack.c.l.b16 %v1629_v15 }
 0x157   : > { %v7010_v43 = vpop.f32.mrf.mxu1  ;;  %v1360_v56 = vpop.f32.mrf.mxu0 }
 0x158   : > { %v1361_v10 = vadd.f32 %v7025_v52, %v1360_v56 }
 0x15a   : > { %v1630_v17 = vpack.c.bf16 %v1361_v10, %v1361_v10 }
 0x15c   : > { %v1704_v23 = vunpack.c.l.b16 %v1630_v17 }
 0x15e   : > { %v1705_v27 = vpack.c.b16 %v1704_v23, %v1703_v22 }
 0x15f   : > { %v7012_v45 = vpop.f32.mrf.mxu1  ;;  %v1363_v5 = vpop.f32.mrf.mxu0 }
 0x160   : > { %v1364_v31 = vadd.f32 %v7025_v52, %v1363_v5 }
 0x162   : > { %1504 = vmatmul.bf16.gmra.mxu1 %v6975_v30  ;;  %v1631_v44 = vpack.c.bf16 %v1364_v31, %v1364_v31 }
 0x167   : > { %v7015_v47 = vpop.f32.mrf.mxu1  ;;  %v1365_v19 = vpop.f32.mrf.mxu0 }
 0x168   : > { %v1366_v34 = vadd.f32 %v7025_v52, %v1365_v19 }
 0x16a   : > { %v1632_v46 = vpack.c.bf16 %v1366_v34, %v1366_v34 }
 0x16f   : > { %v1470_v49 = vpop.f32.mrf.mxu1  ;;  %v1368_v29 = vpop.f32.mrf.mxu0 }
 0x170   : > { %v1471_v51 = vadd.f32 %v7017_v50, %v1470_v49 }
 0x172   : > { %v1643_v54 = vpack.c.bf16 %v1471_v51, %v1471_v51  ;;  %v1729_v51 = vunpack.c.l.b16 %v1631_v44 }
 0x174   : > { %v1683_v60 = vunpack.c.l.b16 %v1643_v54 }
 0x177   : > { %v1472_v53 = vpop.f32.mrf.mxu1 }
 0x178   : > { %v1473_v55 = vadd.f32 %v7017_v50, %v1472_v53  ;;  %v1730_v53 = vunpack.c.l.b16 %v1632_v46 }
 0x17a   : > { %v1644_v59 = vpack.c.bf16 %v1473_v55, %v1473_v55  ;;  %v1370_v55 = vpop.f32.mrf.mxu0  ;;  %v1731_v57 = vpack.c.b16 %v1730_v53, %v1729_v51 }
 0x17c   : > { %v1684_v61 = vunpack.c.l.b16 %v1644_v59  ;;  %v1369_v59 = vadd.f32 %v7025_v52, %v1368_v29 }
 0x17e   : > { %v1685_v0 = vpack.c.b16 %v1684_v61, %v1683_v60  ;;  %v1371_v61 = vadd.f32 %v7025_v52, %v1370_v55  ;;  %v1633_v2 = vpack.c.bf16 %v1369_v59, %v1369_v59 }
 0x17f   : > { %v1475_v1 = vpop.f32.mrf.mxu1 }
 0x180   : > { %1694 = vmatpush.bf16.xpose.msra.mxu3 %v1685_v0  ;;  %v1476_v4 = vadd.f32 %v7017_v50, %v1475_v1  ;;  %v1634_v3 = vpack.c.bf16 %v1371_v61, %v1371_v61 }
 0x182   : > { %v1645_v7 = vpack.c.bf16 %v1476_v4, %v1476_v4  ;;  %v1373_v1 = vpop.f32.mrf.mxu0 }
 0x184   : > { %v1709_v13 = vunpack.c.l.b16 %v1645_v7  ;;  %v1756_v7 = vunpack.c.l.b16 %v1634_v3 }
 0x187   : > { %v1477_v9 = vpop.f32.mrf.mxu1  ;;  %1695 = vmatmul.bf16.vlgmr.msra.gmra.mxu3 %v1679_v6  ;;  %v1755_v6 = vunpack.c.l.b16 %v1633_v2 }
 0x188   : > { %v1478_v12 = vadd.f32 %v7017_v50, %v1477_v9 }
 0x189   : > { %v1757_v10 = vpack.c.b16 %v1756_v7, %v1755_v6 }
 0x18a   : > { %v1646_v14 = vpack.c.bf16 %v1478_v12, %v1478_v12  ;;  %v1375_v12 = vpop.f32.mrf.mxu0 }
 0x18b   : > { %v1376_v17 = vadd.f32 %v7025_v52, %v1375_v12 }
 0x18c   : > { %v1710_v18 = vunpack.c.l.b16 %v1646_v14  ;;  %v1374_v14 = vadd.f32 %v7025_v52, %v1373_v1 }
 0x18d   : > { %v1636_v23 = vpack.c.bf16 %v1376_v17, %v1376_v17 }
 0x18e   : > { %v1711_v20 = vpack.c.b16 %v1710_v18, %v1709_v13  ;;  %v1635_v22 = vpack.c.bf16 %v1374_v14, %v1374_v14 }
 0x18f   : > { %v1480_v24 = vpop.f32.mrf.mxu1 }
 0x190   : > { %1720 = vmatpush.bf16.xpose.msrb.mxu3 %v1711_v20  ;;  %v1481_v25 = vadd.f32 %v7017_v50, %v1480_v24 }
 0x192   : > { %v1647_v28 = vpack.c.bf16 %v1481_v25, %v1481_v25 }
 0x194   : > { %v1735_v37 = vunpack.c.l.b16 %v1647_v28  ;;  %v1782_v28 = vunpack.c.l.b16 %v1636_v23 }
 0x197   : > { %v1482_v32 = vpop.f32.mrf.mxu1  ;;  %1721 = vmatmul.bf16.vlgmr.msrb.gmra.mxu3 %v1705_v27  ;;  %v1781_v27 = vunpack.c.l.b16 %v1635_v22 }
 0x198   : > { %v1483_v35 = vadd.f32 %v7017_v50, %v1482_v32 }
 0x199   : > { %v1783_v32 = vpack.c.b16 %v1782_v28, %v1781_v27 }
 0x19a   : > { %v1648_v38 = vpack.c.bf16 %v1483_v35, %v1483_v35 }
 0x19c   : > { %v1736_v48 = vunpack.c.l.b16 %v1648_v38  ;;  %v1381_v38 = vadd.f32 %v7025_v52, %v7005_v41 }
 0x19e   : > { %v1737_v49 = vpack.c.b16 %v1736_v48, %v1735_v37  ;;  %v1379_v48 = vadd.f32 %v7025_v52, %v7002_v40  ;;  %v1638_v51 = vpack.c.bf16 %v1381_v38, %v1381_v38 }
 0x19f   : > { %v1485_v54 = vpop.f32.mrf.mxu1 }
 0x1a0   : > { %1746 = vmatpush.bf16.xpose.msra.mxu3 %v1737_v49  ;;  %v1486_v56 = vadd.f32 %v7017_v50, %v1485_v54  ;;  %v1637_v54 = vpack.c.bf16 %v1379_v48, %v1379_v48 }
 0x1a2   : > { %v1649_v58 = vpack.c.bf16 %v1486_v56, %v1486_v56  ;;  %v1808_v56 = vunpack.c.l.b16 %v1638_v51 }
 0x1a4   : > { %v1761_v63 = vunpack.c.l.b16 %v1649_v58  ;;  %v1807_v58 = vunpack.c.l.b16 %v1637_v54 }
 0x1a6   : > { %v1809_v59 = vpack.c.b16 %v1808_v56, %v1807_v58 }
 0x1a7   : > { %v1487_v60 = vpop.f32.mrf.mxu1  ;;  %1747 = vmatmul.bf16.vlgmr.msra.gmra.mxu3 %v1731_v57 }
 0x1a8   : > { %v1488_v62 = vadd.f32 %v7017_v50, %v1487_v60 }
 0x1aa   : > { %v1650_v0 = vpack.c.bf16 %v1488_v62, %v1488_v62  ;;  %v1386_v62 = vadd.f32 %v7025_v52, %v7010_v43 }
 0x1ac   : > { %v1762_v4 = vunpack.c.l.b16 %v1650_v0  ;;  %v1384_v0 = vadd.f32 %v7025_v52, %v7007_v42  ;;  %v1640_v2 = vpack.c.bf16 %v1386_v62, %v1386_v62  ;;  %v1391_v42 = vadd.f32 %v7025_v52, %v7015_v47 }
 0x1ae   : > { %v1763_v5 = vpack.c.b16 %v1762_v4, %v1761_v63  ;;  %v1639_v4 = vpack.c.bf16 %v1384_v0, %v1384_v0  ;;  %v1834_v6 = vunpack.c.l.b16 %v1640_v2 }
 0x1af   : > { %v1490_v8 = vpop.f32.mrf.mxu1 }
 0x1b0   : > { %1772 = vmatpush.bf16.xpose.msrb.mxu3 %v1763_v5  ;;  %v1491_v9 = vadd.f32 %v7017_v50, %v1490_v8  ;;  %v1833_v8 = vunpack.c.l.b16 %v1639_v4 }
 0x1b2   : > { %v1651_v13 = vpack.c.bf16 %v1491_v9, %v1491_v9  ;;  %v1835_v9 = vpack.c.b16 %v1834_v6, %v1833_v8 }
 0x1b4   : > { %v1787_v19 = vunpack.c.l.b16 %v1651_v13 }
 0x1b7   : > { %v1492_v15 = vpop.f32.mrf.mxu1  ;;  %1773 = vmatmul.bf16.vlgmr.msrb.gmra.mxu3 %v1757_v10 }
 0x1b8   : > { %v1493_v18 = vadd.f32 %v7017_v50, %v1492_v15  ;;  %v1389_v15 = vadd.f32 %v7025_v52, %v7012_v45 }
 0x1ba   : > { %v1652_v20 = vpack.c.bf16 %v1493_v18, %v1493_v18  ;;  %v1642_v18 = vpack.c.bf16 %v1391_v42, %v1391_v42 }
 0x1bc   : > { %v1788_v24 = vunpack.c.l.b16 %v1652_v20  ;;  %v1641_v20 = vpack.c.bf16 %v1389_v15, %v1389_v15  ;;  %v1860_v22 = vunpack.c.l.b16 %v1642_v18 }
 0x1be   : > { %v1789_v25 = vpack.c.b16 %v1788_v24, %v1787_v19  ;;  %v1859_v23 = vunpack.c.l.b16 %v1641_v20 }
 0x1bf   : > { %v1495_v29 = vpop.f32.mrf.mxu1 }
 0x1c0   : > { %1798 = vmatpush.bf16.xpose.msra.mxu3 %v1789_v25  ;;  %v1496_v31 = vadd.f32 %v7017_v50, %v1495_v29  ;;  %v1861_v24 = vpack.c.b16 %v1860_v22, %v1859_v23  ;;  %v7065_v25 = vld [vmem:[%s6872_s17] sm:$0xff]  ;;  %v5535_v22 = vld [vmem:[%s6888_s12] sm:$0xff]  ;;  %s1249_s17 = scalar_lea.vmem %s8946_s1, %s6937_s5 }
 0x1c2   : > { %v1653_v34 = vpack.c.bf16 %v1496_v31, %v1496_v31 }
 0x1c4   : > { %v1813_v44 = vunpack.c.l.b16 %v1653_v34 }
 0x1c7   : > { %v1497_v35 = vpop.f32.mrf.mxu1  ;;  %1799 = vmatmul.bf16.vlgmr.msra.gmra.mxu3 %v1783_v32  ;;  %v1900_v32 = vrot.slane %v7065_v25, 1 }
 0x1c8   : > { %v1498_v37 = vadd.f32 %v7017_v50, %v1497_v35 }
 0x1c9   : > { %v1908_v35 = vperm.slane %v1900_v32, 0 }
 0x1ca   : > { %v1654_v46 = vpack.c.bf16 %v1498_v37, %v1498_v37 }
 0x1cc   : > { %v1814_v49 = vunpack.c.l.b16 %v1654_v46 }
 0x1ce   : > { %v1815_v53 = vpack.c.b16 %v1814_v49, %v1813_v44  ;;  %v5542_v44 = vld [vmem:[%s6888_s12 + $0x38] sm:$0xff] }
 0x1cf   : > { %v1500_v55 = vpop.f32.mrf.mxu1  ;;  %1578 = vmatpush.bf16.msrb.mxu0 %v5542_v44  ;;  %5631 = vmatpush.bf16.msra.mxu2 %v5542_v44 }
 0x1d0   : > { %1824 = vmatpush.bf16.xpose.msrb.mxu3 %v1815_v53  ;;  %v1501_v57 = vadd.f32 %v7017_v50, %v1500_v55  ;;  %v5541_v53 = vld [vmem:[%s6888_s12 + $0x30] sm:$0xff]  ;;  %v1901_v55 = vrot.slane %v7065_v25, 2 }
 0x1d2   : > { %v1655_v60 = vpack.c.bf16 %v1501_v57, %v1501_v57  ;;  %v1909_v57 = vperm.slane %v1901_v55, 0 }
 0x1d3   : > { %1579 = vmatpush.bf16.msrb.mxu0 %v5541_v53  ;;  %5632 = vmatpush.bf16.msra.mxu2 %v5541_v53 }
 0x1d4   : > { %v1839_v40 = vunpack.c.l.b16 %v1655_v60  ;;  %v5540_v60 = vld [vmem:[%s6888_s12 + $0x28] sm:$0xff] }
 0x1d7   : > { %v1502_v61 = vpop.f32.mrf.mxu1  ;;  %1825 = vmatmul.bf16.vlgmr.msrb.gmra.mxu3 %v1809_v59  ;;  %1580 = vmatpush.bf16.msrb.mxu0 %v5540_v60 }
 0x1d8   : > { %v1503_v41 = vadd.f32 %v7017_v50, %v1502_v61  ;;  %5633 = vmatpush.bf16.msra.mxu2 %v5540_v60 }
 0x1da   : > { %v1656_v63 = vpack.c.bf16 %v1503_v41, %v1503_v41 }
 0x1dc   : > { %v1840_v1 = vunpack.c.l.b16 %v1656_v63  ;;  %v5539_v63 = vld [vmem:[%s6888_s12 + $0x20] sm:$0xff] }
 0x1dd   : > { %1581 = vmatpush.bf16.msrb.mxu0 %v5539_v63  ;;  %5634 = vmatpush.bf16.msra.mxu2 %v5539_v63 }
 0x1de   : > { %v1841_v3 = vpack.c.b16 %v1840_v1, %v1839_v40  ;;  %v1902_v1 = vrot.slane %v7065_v25, 3 }
 0x1df   : > { %v1505_v5 = vpop.f32.mrf.mxu1 }
 0x1e0   : > { %1850 = vmatpush.bf16.xpose.msra.mxu3 %v1841_v3  ;;  %v1506_v7 = vadd.f32 %v7017_v50, %v1505_v5  ;;  %v1910_v3 = vperm.slane %v1902_v1, 0 }
 0x1e2   : > { %v1657_v10 = vpack.c.bf16 %v1506_v7, %v1506_v7 }
 0x1e4   : > { %v1865_v13 = vunpack.c.l.b16 %v1657_v10  ;;  %v5538_v10 = vld [vmem:[%s6888_s12 + $0x18] sm:$0xff] }
 0x1e5   : > { %1582 = vmatpush.bf16.msrb.mxu0 %v5538_v10  ;;  %5635 = vmatpush.bf16.msra.mxu2 %v5538_v10 }
 0x1e7   : > { %v1507_v12 = vpop.f32.mrf.mxu1  ;;  %1851 = vmatmul.bf16.vlgmr.msra.gmra.mxu3 %v1835_v9 }
 0x1e8   : > { %v1508_v43 = vadd.f32 %v7017_v50, %v1507_v12  ;;  %v1907_v50 = vperm.slane %v7065_v25, 0 }
 0x1ea   : > { %v1658_v14 = vpack.c.bf16 %v1508_v43, %v1508_v43  ;;  %v1903_v43 = vrot.slane %v7065_v25, 4 }
 0x1ec   : > { %v1866_v17 = vunpack.c.l.b16 %v1658_v14 }
 0x1ee   : > { %v1867_v19 = vpack.c.b16 %v1866_v17, %v1865_v13  ;;  %v1911_v13 = vperm.slane %v1903_v43, 0  ;;  %v5537_v17 = vld [vmem:[%s6888_s12 + $0x10] sm:$0xff] }
 0x1ef   : > { %1583 = vmatpush.bf16.msrb.mxu0 %v5537_v17  ;;  %5636 = vmatpush.bf16.msra.mxu2 %v5537_v17 }
 0x1f0   : > { %1876 = vmatpush.bf16.xpose.msrb.mxu3 %v1867_v19  ;;  %v5536_v19 = vld [vmem:[%s6888_s12 + $0x8] sm:$0xff]  ;;  %s5508_s12 = sshll.u32 %s8909_s29, 3  ;;  %s4624_s29 = scalar_lea.sflag [#allocation4], %s6855_s26 }
 0x1f3   : > { %1584 = vmatpush.bf16.msrb.mxu0 %v5536_v19  ;;  %5637 = vmatpush.bf16.msra.mxu2 %v5536_v19 }
 0x1f7   : > { %1877 = vmatmul.bf16.vlgmr.msrb.gmra.mxu3 %v1861_v24  ;;  %1585 = vmatpush.bf16.msrb.mxu0 %v5535_v22 }
 0x1f8   : > { %5638 = vmatpush.bf16.msra.mxu2 %v5535_v22 }
 0x1fa   : > { %1586 = vmatmul.bf16.vlgmr.msrb.gmra.mxu0 %v6955_v16 }
 0x1fb   : > { %1611 = vmatmul.bf16.vlgmr.msra.gmra.mxu2 %v6948_v11 }
 0x20a   : > { %v1696_v47 = vpop.f32.mrf.mxu3  ;;  %1591 = vmatmul.bf16.gmra.mxu0 %v6969_v26 }
 0x20b   : > { %v1883_v27 = vmul.f32 0.088388346, %v1696_v47  ;;  %1616 = vmatmul.bf16.gmra.mxu2 %v6962_v21 }
 0x20d   : > { %v7068_v28 = vadd.f32 %v1907_v50, %v1883_v27 }
 0x20f   : > { %v1940_v45 = vsel %vm1939_vm0, %v7068_v28, -inf }
 0x210   : > { %1941 = vmax.xlane.f32.xlu0 %v1940_v45 }
 0x212   : > { %v1698_v52 = vpop.f32.mrf.mxu3 }
 0x213   : > { %v1884_v29 = vmul.f32 0.088388346, %v1698_v52  ;;  %v1904_v52 = vrot.slane %v7065_v25, 5 }
 0x215   : > { %v7072_v31 = vadd.f32 %v1907_v50, %v1884_v29 }
 0x217   : > { %v1943_v34 = vsel %vm1939_vm0, %v7072_v31, -inf }
 0x218   : > { %1944 = vmax.xlane.f32.xlu0 %v1943_v34 }
 0x21a   : > { %v1722_v37 = vpop.f32.mrf.mxu3  ;;  %1596 = vmatmul.bf16.gmra.mxu0 %v6980_v33 }
 0x21b   : > { %v1885_v38 = vmul.f32 0.088388346, %v1722_v37  ;;  %1621 = vmatmul.bf16.gmra.mxu2 %v6975_v30  ;;  %v1912_v37 = vperm.slane %v1904_v52, 0 }
 0x21d   : > { %v7078_v46 = vadd.f32 %v1908_v35, %v1885_v38 }
 0x21f   : > { %v1946_v48 = vsel %vm1939_vm0, %v7078_v46, -inf }
 0x220   : > { %1947 = vmax.xlane.f32.xlu1 %v1946_v48 }
 0x222   : > { %v1724_v49 = vpop.f32.mrf.mxu3 }
 0x223   : > { %v1886_v51 = vmul.f32 0.088388346, %v1724_v49 }
 0x225   : > { %v7083_v54 = vadd.f32 %v1908_v35, %v1886_v51 }
 0x227   : > { %v1949_v56 = vsel %vm1939_vm0, %v7083_v54, -inf }
 0x228   : > { %1950 = vmax.xlane.f32.xlu1 %v1949_v56 }
 0x22a   : > { %v1748_v58 = vpop.f32.mrf.mxu3  ;;  %1601 = vmatmul.bf16.gmra.mxu0 %v6990_v36 }
 0x22b   : > { %v1887_v59 = vmul.f32 0.088388346, %v1748_v58 }
 0x22d   : > { %v7089_v61 = vadd.f32 %v1909_v57, %v1887_v59 }
 0x22f   : > { %v1952_v41 = vsel %vm1939_vm0, %v7089_v61, -inf }
 0x230   : > { %1953 = vmax.xlane.f32.xlu2 %v1952_v41 }
 0x232   : > { %v1750_v62 = vpop.f32.mrf.mxu3 }
 0x233   : > { %v1888_v40 = vmul.f32 0.088388346, %v1750_v62 }
 0x235   : > { %v7094_v0 = vadd.f32 %v1909_v57, %v1888_v40 }
 0x237   : > { %v1955_v2 = vsel %vm1939_vm0, %v7094_v0, -inf }
 0x238   : > { %1956 = vmax.xlane.f32.xlu2 %v1955_v2 }
 0x23a   : > { %v1774_v4 = vpop.f32.mrf.mxu3  ;;  %1606 = vmatmul.bf16.gmra.mxu0 %v6996_v39 }
 0x23b   : > { %v1889_v5 = vmul.f32 0.088388346, %v1774_v4  ;;  %v1905_v4 = vrot.slane %v7065_v25, 6 }
 0x23d   : > { %v7099_v6 = vadd.f32 %v1910_v3, %v1889_v5  ;;  %v1913_v10 = vperm.slane %v1905_v4, 0 }
 0x23f   : > { %v1958_v7 = vsel %vm1939_vm0, %v7099_v6, -inf }
 0x240   : > { %1959 = vmax.xlane.f32.xlu0 %v1958_v7 }
 0x242   : > { %v1776_v8 = vpop.f32.mrf.mxu3 }
 0x243   : > { %v1890_v9 = vmul.f32 0.088388346, %v1776_v8 }
 0x245   : > { %v7104_v12 = vadd.f32 %v1910_v3, %v1890_v9 }
 0x247   : > { %v1961_v42 = vsel %vm1939_vm0, %v7104_v12, -inf }
 0x248   : > { %1962 = vmax.xlane.f32.xlu1 %v1961_v42 }
 0x24a   : > { %v1800_v14 = vpop.f32.mrf.mxu3 }
 0x24b   : > { %v1891_v15 = vmul.f32 0.088388346, %v1800_v14 }
 0x24d   : > { %v7110_v18 = vadd.f32 %v1911_v13, %v1891_v15 }
 0x24f   : > { %v1964_v20 = vsel %vm1939_vm0, %v7110_v18, -inf }
 0x250   : > { %1965 = vmax.xlane.f32.xlu1 %v1964_v20 }
 0x252   : > { %v1802_v47 = vpop.f32.mrf.mxu3 }
 0x253   : > { %v1892_v45 = vmul.f32 0.088388346, %v1802_v47 }
 0x25a   : > { %v1826_v30 = vpop.f32.mrf.mxu3 }
 0x25b   : > { %v1893_v32 = vmul.f32 0.088388346, %v1826_v30 }
 0x25d   : > { %v7140_v44 = vadd.f32 %v1912_v37, %v1893_v32  ;;  %v7200_v32 = vld [vmem:[%s1017_s21] ss:$0 sm:$0xff]  ;;  %s8924_s21 = sld [smem:[#allocation66_spill]] }
 0x25f   : > { %v1970_v56 = vsel %vm1939_vm0, %v7140_v44, -inf }
 0x283   : > { %v1942_v23 = vpop.xlane.xlu0 %1941 }
 0x284   : > { %v1988_v24 = vsub.f32 %v7068_v28, %v1942_v23  ;;  %v7129_v28 = vadd.f32 %v1911_v13, %v1892_v45 }
 0x286   : > { %v2004_v50 = vmul.f32 1.442695, %v1988_v24  ;;  %v1967_v35 = vsel %vm1939_vm0, %v7129_v28, -inf }
 0x288   : > { %5739 = vpow2.f32 %v2004_v50  ;;  %v1906_v50 = vrot.slane %v7065_v25, 7 }
 0x28b   : > { %v1945_v27 = vpop.xlane.xlu0 %1944 }
 0x28c   : > { %v1989_v16 = vsub.f32 %v7072_v31, %v1945_v27 }
 0x28e   : > { %v7125_v11 = vpop.eup %5739  ;;  %v2006_v26 = vmul.f32 1.442695, %v1989_v16 }
 0x28f   : > { %v2036_v21 = vsel %vm1939_vm0, %v7125_v11, 0.0 }
 0x290   : > { %5741 = vpow2.f32 %v2006_v26  ;;  %2037 = vadd.xlane.f32.xlu2 %v2036_v21  ;;  %v1914_v21 = vperm.slane %v1906_v50, 0 }
 0x293   : > { %v1948_v33 = vpop.xlane.xlu1 %1947 }
 0x294   : > { %v1990_v36 = vsub.f32 %v7078_v46, %v1948_v33  ;;  %v1828_v46 = vpop.f32.mrf.mxu3 }
 0x295   : > { %v1894_v53 = vmul.f32 0.088388346, %v1828_v46 }
 0x296   : > { %v7133_v29 = vpop.eup %5741  ;;  %v2008_v31 = vmul.f32 1.442695, %v1990_v36 }
 0x297   : > { %v2039_v34 = vsel %vm1939_vm0, %v7133_v29, 0.0  ;;  %v7149_v57 = vadd.f32 %v1912_v37, %v1894_v53 }
 0x298   : > { %5743 = vpow2.f32 %v2008_v31  ;;  %2040 = vadd.xlane.f32.xlu0 %v2039_v34  ;;  %1968 = vmax.xlane.f32.xlu2 %v1967_v35  ;;  %v1587_v34 = vpop.f32.mrf.mxu0 }
 0x299   : > { %v1973_v41 = vsel %vm1939_vm0, %v7149_v57, -inf  ;;  %v1588_v37 = vadd.f32 %v7200_v32, %v1587_v34 }
 0x29b   : > { %v1951_v38 = vpop.xlane.xlu1 %1950 }
 0x29c   : > { %v1991_v48 = vsub.f32 %v7083_v54, %v1951_v38  ;;  %v1852_v1 = vpop.f32.mrf.mxu3  ;;  %v1659_v38 = vpack.c.bf16 %v1588_v37, %v1588_v37 }
 0x29d   : > { %v1895_v9 = vmul.f32 0.088388346, %v1852_v1 }
 0x29e   : > { %v7143_v49 = vpop.eup %5743  ;;  %v2010_v51 = vmul.f32 1.442695, %v1991_v48 }
 0x29f   : > { %v2042_v55 = vsel %vm1939_vm0, %v7143_v49, 0.0  ;;  %v7169_v13 = vadd.f32 %v1913_v10, %v1895_v9 }
 0x2a0   : > { %5745 = vpow2.f32 %v2010_v51  ;;  %2043 = vadd.xlane.f32.xlu0 %v2042_v55  ;;  %1971 = vmax.xlane.f32.xlu2 %v1970_v56  ;;  %v1589_v46 = vpop.f32.mrf.mxu0  ;;  %v2139_v51 = vunpack.c.l.b16 %v1659_v38 }
 0x2a1   : > { %v1976_v20 = vsel %vm1939_vm0, %v7169_v13, -inf  ;;  %v1590_v48 = vadd.f32 %v7200_v32, %v1589_v46 }
 0x2a3   : > { %v1954_v39 = vpop.xlane.xlu2 %1953  ;;  %v1660_v53 = vpack.c.bf16 %v1590_v48, %v1590_v48 }
 0x2a4   : > { %v1992_v58 = vsub.f32 %v7089_v61, %v1954_v39  ;;  %v1854_v43 = vpop.f32.mrf.mxu3 }
 0x2a5   : > { %v2140_v55 = vunpack.c.l.b16 %v1660_v53 }
 0x2a6   : > { %v7152_v59 = vpop.eup %5745  ;;  %v2012_v54 = vmul.f32 1.442695, %v1992_v58 }
 0x2a7   : > { %v2045_v60 = vsel %vm1939_vm0, %v7152_v59, 0.0  ;;  %v2141_v56 = vpack.c.b16 %v2140_v55, %v2139_v51 }
 0x2a8   : > { %5747 = vpow2.f32 %v2012_v54  ;;  %2046 = vadd.xlane.f32.xlu1 %v2045_v60  ;;  %1974 = vmax.xlane.f32.xlu0 %v1973_v41  ;;  %v1592_v39 = vpop.f32.mrf.mxu0 }
 0x2a9   : > { %2153 = vmatpush.bf16.msra.mxu3 %v2141_v56  ;;  %v1593_v58 = vadd.f32 %v7200_v32, %v1592_v39 }
 0x2ab   : > { %v1957_v62 = vpop.xlane.xlu2 %1956  ;;  %v1661_v41 = vpack.c.bf16 %v1593_v58, %v1593_v58 }
 0x2ac   : > { %v1993_v40 = vsub.f32 %v7094_v0, %v1957_v62  ;;  %v1878_v22 = vpop.f32.mrf.mxu3 }
 0x2ad   : > { %v1897_v16 = vmul.f32 0.088388346, %v1878_v22  ;;  %v2167_v1 = vunpack.c.l.b16 %v1661_v41 }
 0x2ae   : > { %v7159_v63 = vpop.eup %5747  ;;  %v2014_v2 = vmul.f32 1.442695, %v1993_v40 }
 0x2af   : > { %v2048_v61 = vsel %vm1939_vm0, %v7159_v63, 0.0  ;;  %v7188_v30 = vadd.f32 %v1914_v21, %v1897_v16 }
 0x2b0   : > { %5749 = vpow2.f32 %v2014_v2  ;;  %2049 = vadd.xlane.f32.xlu1 %v2048_v61  ;;  %v1594_v54 = vpop.f32.mrf.mxu0 }
 0x2b1   : > { %v1982_v36 = vsel %vm1939_vm0, %v7188_v30, -inf  ;;  %v1595_v60 = vadd.f32 %v7200_v32, %v1594_v54 }
 0x2b3   : > { %v1960_v3 = vpop.xlane.xlu0 %1959  ;;  %v1662_v62 = vpack.c.bf16 %v1595_v60, %v1595_v60 }
 0x2b4   : > { %v1994_v5 = vsub.f32 %v7099_v6, %v1960_v3  ;;  %v1896_v6 = vmul.f32 0.088388346, %v1854_v43  ;;  %v1880_v25 = vpop.f32.mrf.mxu3 }
 0x2b5   : > { %v2168_v2 = vunpack.c.l.b16 %v1662_v62 }
 0x2b6   : > { %v7165_v7 = vpop.eup %5749  ;;  %v2016_v8 = vmul.f32 1.442695, %v1994_v5  ;;  %v7178_v24 = vadd.f32 %v1913_v10, %v1896_v6 }
 0x2b7   : > { %v2051_v0 = vsel %vm1939_vm0, %v7165_v7, 0.0  ;;  %v2169_v61 = vpack.c.b16 %v2168_v2, %v2167_v1 }
 0x2b8   : > { %5751 = vpow2.f32 %v2016_v8  ;;  %2052 = vadd.xlane.f32.xlu2 %v2051_v0  ;;  %v1979_v45 = vsel %vm1939_vm0, %v7178_v24, -inf  ;;  %v1597_v3 = vpop.f32.mrf.mxu0 }
 0x2b9   : > { %2181 = vmatpush.bf16.msrb.mxu3 %v2169_v61  ;;  %v1598_v43 = vadd.f32 %v7200_v32, %v1597_v3 }
 0x2bb   : > { %v1963_v42 = vpop.xlane.xlu1 %1962 }
 0x2bc   : > { %v1995_v14 = vsub.f32 %v7104_v12, %v1963_v42 }
 0x2be   : > { %v7172_v15 = vpop.eup %5751  ;;  %v2018_v17 = vmul.f32 1.442695, %v1995_v14 }
 0x2bf   : > { %v2054_v19 = vsel %vm1939_vm0, %v7172_v15, 0.0 }
 0x2c0   : > { %5753 = vpow2.f32 %v2018_v17  ;;  %2055 = vadd.xlane.f32.xlu0 %v2054_v19  ;;  %1977 = vmax.xlane.f32.xlu2 %v1976_v20  ;;  %v1599_v42 = vpop.f32.mrf.mxu0  ;;  %v1663_v17 = vpack.c.bf16 %v1598_v43, %v1598_v43 }
 0x2c1   : > { %v1600_v14 = vadd.f32 %v7200_v32, %v1599_v42 }
 0x2c3   : > { %v1966_v23 = vpop.xlane.xlu1 %1965  ;;  %v1664_v19 = vpack.c.bf16 %v1600_v14, %v1600_v14 }
 0x2c4   : > { %v1996_v12 = vsub.f32 %v7110_v18, %v1966_v23  ;;  %v1898_v18 = vmul.f32 0.088388346, %v1880_v25 }
 0x2c6   : > { %v7182_v47 = vpop.eup %5753  ;;  %v2020_v27 = vmul.f32 1.442695, %v1996_v12  ;;  %v7196_v31 = vadd.f32 %v1914_v21, %v1898_v18  ;;  %v2195_v12 = vunpack.c.l.b16 %v1663_v17 }
 0x2c7   : > { %v2057_v26 = vsel %vm1939_vm0, %v7182_v47, 0.0 }
 0x2c8   : > { %5755 = vpow2.f32 %v2020_v27  ;;  %2058 = vadd.xlane.f32.xlu1 %v2057_v26  ;;  %1980 = vmax.xlane.f32.xlu0 %v1979_v45  ;;  %v1985_v35 = vsel %vm1939_vm0, %v7196_v31, -inf  ;;  %v2196_v27 = vunpack.c.l.b16 %v1664_v19 }
 0x2ca   : > { %v2197_v45 = vpack.c.b16 %v2196_v27, %v2195_v12 }
 0x2cc   : > { %2209 = vmatpush.bf16.msra.mxu0 %v2197_v45 }
 0x2ce   : > { %v7190_v33 = vpop.eup %5755 }
 0x2cf   : > { %v2060_v52 = vsel %vm1939_vm0, %v7190_v33, 0.0 }
 0x2d0   : > { %2061 = vadd.xlane.f32.xlu1 %v2060_v52  ;;  %1983 = vmax.xlane.f32.xlu0 %v1982_v36  ;;  %v1602_v52 = vpop.f32.mrf.mxu0 }
 0x2d1   : > { %v1603_v51 = vadd.f32 %v7200_v32, %v1602_v52 }
 0x2d3   : > { %v1665_v56 = vpack.c.bf16 %v1603_v51, %v1603_v51 }
 0x2d5   : > { %v2223_v41 = vunpack.c.l.b16 %v1665_v56 }
 0x2d8   : > { %1986 = vmax.xlane.f32.xlu1 %v1985_v35  ;;  %v1604_v53 = vpop.f32.mrf.mxu0 }
 0x2d9   : > { %v1605_v55 = vadd.f32 %v7200_v32, %v1604_v53 }
 0x2db   : > { %v1666_v58 = vpack.c.bf16 %v1605_v55, %v1605_v55 }
 0x2dd   : > { %v2224_v62 = vunpack.c.l.b16 %v1666_v58 }
 0x2df   : > { %v2225_v1 = vpack.c.b16 %v2224_v62, %v2223_v41 }
 0x303   : > { %v2038_v40 = vpop.xlane.xlu2 %2037 }
 0x304   : > { %5757 = vrcp.f32 %v2038_v40 }
 0x30a   : > { %v5758_v8 = vpop.eup %5757 }
 0x30b   : > { %v2041_v4 = vpop.xlane.xlu0 %2040  ;;  %v1969_v5 = vpop.xlane.xlu2 %1968  ;;  %v2100_v10 = vmul.f32 %v5758_v8, %v7125_v11 }
 0x30c   : > { %5759 = vrcp.f32 %v2041_v4  ;;  %v1997_v9 = vsub.f32 %v7129_v28, %v1969_v5 }
 0x30d   : > { %v2116_v20 = vpack.c.bf16 %v2100_v10, %v2100_v10 }
 0x30e   : > { %v2022_v0 = vmul.f32 1.442695, %v1997_v9  ;;  %v1607_v9 = vpop.f32.mrf.mxu0 }
 0x30f   : > { %v2134_v21 = vunpack.c.l.b16 %v2116_v20  ;;  %v1608_v17 = vadd.f32 %v7200_v32, %v1607_v9 }
 0x310   : > { %5761 = vpow2.f32 %v2022_v0 }
 0x312   : > { %v5760_v6 = vpop.eup %5759 }
 0x313   : > { %v2101_v22 = vmul.f32 %v5760_v6, %v7133_v29  ;;  %v2044_v23 = vpop.xlane.xlu0 %2043  ;;  %v1972_v50 = vpop.xlane.xlu2 %1971 }
 0x314   : > { %v1998_v28 = vsub.f32 %v7140_v44, %v1972_v50  ;;  %5763 = vrcp.f32 %v2044_v23  ;;  %v1667_v50 = vpack.c.bf16 %v1608_v17, %v1608_v17 }
 0x315   : > { %v2117_v16 = vpack.c.bf16 %v2101_v22, %v2101_v22 }
 0x316   : > { %v7214_v11 = vpop.eup %5761  ;;  %v2024_v26 = vmul.f32 1.442695, %v1998_v28  ;;  %v1609_v12 = vpop.f32.mrf.mxu0 }
 0x317   : > { %v2135_v25 = vunpack.c.l.b16 %v2117_v16  ;;  %v2063_v18 = vsel %vm1939_vm0, %v7214_v11, 0.0  ;;  %v1610_v27 = vadd.f32 %v7200_v32, %v1609_v12  ;;  %v5546_v12 = vld [vmem:[%s6896_s28 + $0x18] sm:$0xff] }
 0x318   : > { %5765 = vpow2.f32 %v2024_v26  ;;  %2064 = vadd.xlane.f32.xlu2 %v2063_v18  ;;  %v2251_v26 = vunpack.c.l.b16 %v1667_v50 }
 0x319   : > { %v2136_v29 = vpack.c.b16 %v2135_v25, %v2134_v21  ;;  %v1668_v45 = vpack.c.bf16 %v1610_v27, %v1610_v27 }
 0x31a   : > { %v5764_v34 = vpop.eup %5763 }
 0x31b   : > { %5179 = vmatmul.msk.bf16.vlgmr.msra.gmra.mxu3 %vm1939_vm0, %v2136_v29  ;;  %v2047_v44 = vpop.xlane.xlu1 %2046  ;;  %v1975_v36 = vpop.xlane.xlu0 %1974  ;;  %v2102_v46 = vmul.f32 %v5764_v34, %v7143_v49  ;;  %v2252_v18 = vunpack.c.l.b16 %v1668_v45  ;;  %v5544_v45 = vld [vmem:[%s6896_s28 + $0x8] sm:$0xff] }
 0x31c   : > { %5767 = vrcp.f32 %v2047_v44  ;;  %v1999_v35 = vsub.f32 %v7149_v57, %v1975_v36  ;;  %2237 = vmatpush.bf16.msra.mxu3 %v2225_v1 }
 0x31d   : > { %v2118_v54 = vpack.c.bf16 %v2102_v46, %v2102_v46  ;;  %v2253_v34 = vpack.c.b16 %v2252_v18, %v2251_v26 }
 0x31e   : > { %v7220_v37 = vpop.eup %5765  ;;  %v2026_v38 = vmul.f32 1.442695, %v1999_v35 }
 0x31f   : > { %v2066_v48 = vsel %vm1939_vm0, %v7220_v37, 0.0  ;;  %v2162_v2 = vunpack.c.l.b16 %v2118_v54  ;;  %2265 = vmatpush.bf16.msrb.mxu2 %v2253_v34 }
 0x320   : > { %5769 = vpow2.f32 %v2026_v38  ;;  %2067 = vadd.xlane.f32.xlu2 %v2066_v48 }
 0x322   : > { %v5768_v39 = vpop.eup %5767 }
 0x323   : > { %v2103_v57 = vmul.f32 %v5768_v39, %v7152_v59  ;;  %v2050_v60 = vpop.xlane.xlu1 %2049 }
 0x324   : > { %5771 = vrcp.f32 %v2050_v60 }
 0x325   : > { %v2119_v49 = vpack.c.bf16 %v2103_v57, %v2103_v57 }
 0x326   : > { %v7228_v40 = vpop.eup %5769 }
 0x327   : > { %v2163_v61 = vunpack.c.l.b16 %v2119_v49  ;;  %v2069_v3 = vsel %vm1939_vm0, %v7228_v40, 0.0 }
 0x328   : > { %2070 = vadd.xlane.f32.xlu0 %v2069_v3 }
 0x329   : > { %v2164_v4 = vpack.c.b16 %v2163_v61, %v2162_v2 }
 0x32a   : > { %v5772_v59 = vpop.eup %5771 }
 0x32b   : > { %5180 = vmatmul.msk.bf16.vlgmr.msrb.gmra.mxu3 %vm1939_vm0, %v2164_v4  ;;  %v2053_v5 = vpop.xlane.xlu2 %2052  ;;  %v2104_v8 = vmul.f32 %v5772_v59, %v7159_v63  ;;  %v1612_v63 = vpop.f32.mrf.mxu2 }
 0x32c   : > { %5773 = vrcp.f32 %v2053_v5 }
 0x32d   : > { %v2120_v10 = vpack.c.bf16 %v2104_v8, %v2104_v8 }
 0x32f   : > { %v2190_v22 = vunpack.c.l.b16 %v2120_v10 }
 0x332   : > { %v5774_v0 = vpop.eup %5773 }
 0x333   : > { %v2105_v43 = vmul.f32 %v5774_v0, %v7165_v7  ;;  %v2056_v42 = vpop.xlane.xlu0 %2055  ;;  %v1978_v14 = vpop.xlane.xlu2 %1977 }
 0x334   : > { %v2000_v6 = vsub.f32 %v7169_v13, %v1978_v14  ;;  %5775 = vrcp.f32 %v2056_v42  ;;  %v1613_v13 = vadd.f32 %v7200_v32, %v1612_v63  ;;  %v1614_v38 = vpop.f32.mrf.mxu2 }
 0x335   : > { %v2121_v19 = vpack.c.bf16 %v2105_v43, %v2105_v43  ;;  %v1615_v46 = vadd.f32 %v7200_v32, %v1614_v38 }
 0x336   : > { %v2028_v20 = vmul.f32 1.442695, %v2000_v6  ;;  %v1669_v35 = vpack.c.bf16 %v1613_v13, %v1613_v13  ;;  %v5550_v6 = vld [vmem:[%s6896_s28 + $0x38] sm:$0xff] }
 0x337   : > { %v2191_v23 = vunpack.c.l.b16 %v2121_v19  ;;  %v1670_v39 = vpack.c.bf16 %v1615_v46, %v1615_v46  ;;  %2432 = vmatpush.bf16.msra.mxu2 %v5550_v6  ;;  %v5549_v19 = vld [vmem:[%s6896_s28 + $0x30] sm:$0xff] }
 0x338   : > { %5777 = vpow2.f32 %v2028_v20  ;;  %v2279_v56 = vunpack.c.l.b16 %v1669_v35  ;;  %v5548_v20 = vld [vmem:[%s6896_s28 + $0x28] sm:$0xff] }
 0x339   : > { %v2192_v28 = vpack.c.b16 %v2191_v23, %v2190_v22  ;;  %v2280_v54 = vunpack.c.l.b16 %v1670_v39  ;;  %v5547_v22 = vld [vmem:[%s6896_s28 + $0x20] sm:$0xff] }
 0x33a   : > { %v5776_v21 = vpop.eup %5775 }
 0x33b   : > { %v2059_v16 = vpop.xlane.xlu1 %2058  ;;  %5181 = vmatmul.msk.bf16.vlgmr.msra.gmra.mxu0 %vm1939_vm0, %v2192_v28  ;;  %v1981_v7 = vpop.xlane.xlu0 %1980  ;;  %v2106_v44 = vmul.f32 %v5776_v21, %v7172_v15  ;;  %v2281_v1 = vpack.c.b16 %v2280_v54, %v2279_v56  ;;  %2433 = vmatpush.bf16.msra.mxu2 %v5549_v19  ;;  %v5545_v28 = vld [vmem:[%s6896_s28 + $0x10] sm:$0xff] }
 0x33c   : > { %5779 = vrcp.f32 %v2059_v16  ;;  %v2001_v25 = vsub.f32 %v7178_v24, %v1981_v7 }
 0x33d   : > { %v2122_v51 = vpack.c.bf16 %v2106_v44, %v2106_v44  ;;  %2293 = vmatpush.bf16.msrb.mxu3 %v2281_v1 }
 0x33e   : > { %v7241_v52 = vpop.eup %5777  ;;  %v2030_v29 = vmul.f32 1.442695, %v2001_v25  ;;  %v5543_v25 = vld [vmem:[%s6896_s28] sm:$0xff] }
 0x33f   : > { %v2072_v36 = vsel %vm1939_vm0, %v7241_v52, 0.0  ;;  %v2218_v41 = vunpack.c.l.b16 %v2122_v51  ;;  %2434 = vmatpush.bf16.msra.mxu2 %v5548_v20 }
 0x340   : > { %5781 = vpow2.f32 %v2030_v29  ;;  %2073 = vadd.xlane.f32.xlu1 %v2072_v36 }
 0x342   : > { %v5780_v48 = vpop.eup %5779 }
 0x343   : > { %v2107_v24 = vmul.f32 %v5780_v48, %v7182_v47  ;;  %v2062_v53 = vpop.xlane.xlu1 %2061  ;;  %v1984_v55 = vpop.xlane.xlu0 %1983  ;;  %2435 = vmatpush.bf16.msra.mxu2 %v5547_v22 }
 0x344   : > { %v2002_v15 = vsub.f32 %v7188_v30, %v1984_v55  ;;  %v1617_v47 = vpop.f32.mrf.mxu2 }
 0x345   : > { %v2123_v58 = vpack.c.bf16 %v2107_v24, %v2107_v24  ;;  %v1618_v30 = vadd.f32 %v7200_v32, %v1617_v47 }
 0x346   : > { %v7249_v57 = vpop.eup %5781  ;;  %v2032_v60 = vmul.f32 1.442695, %v2002_v15 }
 0x347   : > { %v2219_v62 = vunpack.c.l.b16 %v2123_v58  ;;  %v2075_v49 = vsel %vm1939_vm0, %v7249_v57, 0.0  ;;  %v1671_v8 = vpack.c.bf16 %v1618_v30, %v1618_v30  ;;  %2436 = vmatpush.bf16.msra.mxu2 %v5546_v12 }
 0x348   : > { %5783 = vpow2.f32 %v2032_v60  ;;  %2076 = vadd.xlane.f32.xlu2 %v2075_v49 }
 0x349   : > { %v2220_v2 = vpack.c.b16 %v2219_v62, %v2218_v41  ;;  %v2307_v10 = vunpack.c.l.b16 %v1671_v8 }
 0x34b   : > { %5182 = vmatmul.msk.bf16.vlgmr.msra.gmra.mxu3 %vm1939_vm0, %v2220_v2  ;;  %v1987_v61 = vpop.xlane.xlu1 %1986  ;;  %2437 = vmatpush.bf16.msra.mxu2 %v5545_v28 }
 0x34c   : > { %v2003_v3 = vsub.f32 %v7196_v31, %v1987_v61  ;;  %v1619_v9 = vpop.f32.mrf.mxu2 }
 0x34d   : > { %v1620_v0 = vadd.f32 %v7200_v32, %v1619_v9 }
 0x34e   : > { %v7256_v4 = vpop.eup %5783  ;;  %v2034_v5 = vmul.f32 1.442695, %v2003_v3 }
 0x34f   : > { %v2078_v59 = vsel %vm1939_vm0, %v7256_v4, 0.0  ;;  %v1672_v43 = vpack.c.bf16 %v1620_v0, %v1620_v0  ;;  %2438 = vmatpush.bf16.msra.mxu2 %v5544_v45 }
 0x350   : > { %5785 = vpow2.f32 %v2034_v5  ;;  %2079 = vadd.xlane.f32.xlu0 %v2078_v59 }
 0x351   : > { %v2308_v42 = vunpack.c.l.b16 %v1672_v43  ;;  %5787 = vrcp.f32 %v2062_v53 }
 0x353   : > { %v2309_v17 = vpack.c.b16 %v2308_v42, %v2307_v10  ;;  %2439 = vmatpush.bf16.msra.mxu2 %v5543_v25 }
 0x354   : > { %v1622_v23 = vpop.f32.mrf.mxu2 }
 0x355   : > { %2321 = vmatpush.bf16.msrb.mxu0 %v2309_v17  ;;  %v1623_v50 = vadd.f32 %v7200_v32, %v1622_v23 }
 0x356   : > { %v7261_v31 = vpop.eup %5785 }
 0x357   : > { %v2081_v14 = vsel %vm1939_vm0, %v7261_v31, 0.0  ;;  %v1673_v63 = vpack.c.bf16 %v1623_v50, %v1623_v50  ;;  %v5788_v29 = vpop.eup %5787 }
 0x358   : > { %2082 = vadd.xlane.f32.xlu1 %v2081_v14  ;;  %v2108_v44 = vmul.f32 %v5788_v29, %v7190_v33 }
 0x359   : > { %v2335_v7 = vunpack.c.l.b16 %v1673_v63 }
 0x35a   : > { %v2124_v34 = vpack.c.bf16 %v2108_v44, %v2108_v44 }
 0x35c   : > { %v1624_v27 = vpop.f32.mrf.mxu2  ;;  %v2246_v46 = vunpack.c.l.b16 %v2124_v34  ;;  %v5982_v34 = vld [vmem:[%s6859_s4 + $0x8] sm:$0xff] }
 0x35d   : > { %v1625_v16 = vadd.f32 %v7200_v32, %v1624_v27 }
 0x35f   : > { %v1674_v26 = vpack.c.bf16 %v1625_v16, %v1625_v16 }
 0x361   : > { %v2336_v13 = vunpack.c.l.b16 %v1674_v26 }
 0x363   : > { %v2337_v21 = vpack.c.b16 %v2336_v13, %v2335_v7 }
 0x365   : > { %2349 = vmatpush.bf16.msra.mxu1 %v2337_v21  ;;  %v5981_v21 = vld [vmem:[%s6859_s4] sm:$0xff] }
 0x38b   : > { %v2065_v18 = vpop.xlane.xlu2 %2064 }
 0x38c   : > { %5789 = vrcp.f32 %v2065_v18 }
 0x392   : > { %v5790_v36 = vpop.eup %5789 }
 0x393   : > { %v2109_v32 = vmul.f32 %v5790_v36, %v7214_v11  ;;  %v2068_v35 = vpop.xlane.xlu2 %2067 }
 0x394   : > { %5791 = vrcp.f32 %v2068_v35 }
 0x395   : > { %v2125_v38 = vpack.c.bf16 %v2109_v32, %v2109_v32 }
 0x397   : > { %v2247_v48 = vunpack.c.l.b16 %v2125_v38 }
 0x399   : > { %v2248_v51 = vpack.c.b16 %v2247_v48, %v2246_v46  ;;  %v5983_v46 = vld [vmem:[%s6859_s4 + $0x10] sm:$0xff] }
 0x39a   : > { %v5792_v53 = vpop.eup %5791 }
 0x39b   : > { %5183 = vmatmul.msk.bf16.vlgmr.msrb.gmra.mxu2 %vm1939_vm0, %v2248_v51  ;;  %v2071_v24 = vpop.xlane.xlu0 %2070  ;;  %v2110_v56 = vmul.f32 %v5792_v53, %v7220_v37 }
 0x39c   : > { %5793 = vrcp.f32 %v2071_v24 }
 0x39d   : > { %v2126_v33 = vpack.c.bf16 %v2110_v56, %v2110_v56 }
 0x39e   : > { %v2155_v55 = vpop.f32.mrf.mxu3 }
 0x39f   : > { %v2274_v54 = vunpack.c.l.b16 %v2126_v33 }
 0x3a2   : > { %v5794_v39 = vpop.eup %5793 }
 0x3a3   : > { %v2111_v15 = vmul.f32 %v5794_v39, %v7228_v40 }
 0x3a5   : > { %v2127_v58 = vpack.c.bf16 %v2111_v15, %v2111_v15 }
 0x3a6   : > { %v2157_v11 = vpop.f32.mrf.mxu3 }
 0x3a7   : > { %v2275_v60 = vunpack.c.l.b16 %v2127_v58  ;;  %v2356_v62 = vpack.c.bf16 %v2157_v11, %v2155_v55  ;;  %v5984_v55 = vld [vmem:[%s6859_s4 + $0x18] sm:$0xff]  ;;  %v5985_v58 = vld [vmem:[%s6859_s4 + $0x20] sm:$0xff] }
 0x3a9   : > { %v2276_v41 = vpack.c.b16 %v2275_v60, %v2274_v54 }
 0x3ab   : > { %5184 = vmatmul.msk.bf16.vlgmr.msrb.gmra.mxu3 %vm1939_vm0, %v2276_v41  ;;  %2440 = vmatmul.bf16.vlgmr.msra.gmra.mxu2 %v2356_v62 }
 0x3ae   : > { %v2183_v49 = vpop.f32.mrf.mxu3 }
 0x3b3   : > { %v2074_v1 = vpop.xlane.xlu1 %2073 }
 0x3b4   : > { %5795 = vrcp.f32 %v2074_v1 }
 0x3b6   : > { %v2185_v47 = vpop.f32.mrf.mxu3 }
 0x3b7   : > { %v2357_v2 = vpack.c.bf16 %v2185_v47, %v2183_v49  ;;  %v5986_v49 = vld [vmem:[%s6859_s4 + $0x28] sm:$0xff] }
 0x3b8   : > { %v2211_v30 = vpop.f32.mrf.mxu0 }
 0x3ba   : > { %v5796_v37 = vpop.eup %5795 }
 0x3bb   : > { %v2077_v61 = vpop.xlane.xlu2 %2076  ;;  %2445 = vmatmul.bf16.gmra.mxu2 %v2357_v2  ;;  %v2112_v40 = vmul.f32 %v5796_v37, %v7241_v52  ;;  %v5987_v37 = vld [vmem:[%s6859_s4 + $0x30] sm:$0xff] }
 0x3bc   : > { %5797 = vrcp.f32 %v2077_v61 }
 0x3bd   : > { %v2128_v5 = vpack.c.bf16 %v2112_v40, %v2112_v40 }
 0x3bf   : > { %v2302_v10 = vunpack.c.l.b16 %v2128_v5 }
 0x3c0   : > { %v2213_v0 = vpop.f32.mrf.mxu0 }
 0x3c1   : > { %v2358_v14 = vpack.c.bf16 %v2213_v0, %v2211_v30 }
 0x3c2   : > { %v5798_v3 = vpop.eup %5797 }
 0x3c3   : > { %v2113_v59 = vmul.f32 %v5798_v3, %v7249_v57  ;;  %v2080_v8 = vpop.xlane.xlu0 %2079  ;;  %v6509_v3 = vmov 128.0  }
 0x3c4   : > { %5799 = vrcp.f32 %v2080_v8 }
 0x3c5   : > { %v2129_v9 = vpack.c.bf16 %v2113_v59, %v2113_v59 }
 0x3c7   : > { %v2303_v43 = vunpack.c.l.b16 %v2129_v9 }
 0x3c9   : > { %v2304_v42 = vpack.c.b16 %v2303_v43, %v2302_v10 }
 0x3ca   : > { %v5800_v6 = vpop.eup %5799 }
 0x3cb   : > { %5185 = vmatmul.msk.bf16.vlgmr.msrb.gmra.mxu0 %vm1939_vm0, %v2304_v42  ;;  %2450 = vmatmul.bf16.gmra.mxu2 %v2358_v14  ;;  %v2083_v17 = vpop.xlane.xlu1 %2082  ;;  %v2114_v52 = vmul.f32 %v5800_v6, %v7256_v4  ;;  %v7289_v4 = vld [vmem:[%s1036_s9] ss:$0 sm:$0xff]  ;;  %s8956_s9 = sld [smem:[#allocation71_spill]] }
 0x3cc   : > { %5801 = vrcp.f32 %v2083_v17 }
 0x3cd   : > { %v2130_v57 = vpack.c.bf16 %v2114_v52, %v2114_v52  ;;  %5803 = vrcp.f32 %v6509_v3 }
 0x3ce   : > { %v2239_v19 = vpop.f32.mrf.mxu3 }
 0x3cf   : > { %v2330_v12 = vunpack.c.l.b16 %v2130_v57 }
 0x3d2   : > { %v5802_v20 = vpop.eup %5801 }
 0x3d3   : > { %v2115_v22 = vmul.f32 %v5802_v20, %v7261_v31  ;;  %v5804_v5 = vpop.eup %5803 }
 0x3d4   : > { %v2532_v59 = vmul.f32 128.0, %v5804_v5  ;;  %vm2536_vm1 = vweird.f32 %v5804_v5 }
 0x3d5   : > { %v2131_v23 = vpack.c.bf16 %v2115_v22, %v2115_v22 }
 0x3d6   : > { %v2241_v50 = vpop.f32.mrf.mxu3  ;;  %v2533_v8 = vsub.f32 1.0, %v2532_v59  ;;  %v5995_v59 = vld [vmem:[%s6859_s4 + $0x70] sm:$0xff] }
 0x3d7   : > { %v2331_v63 = vunpack.c.l.b16 %v2131_v23  ;;  %v2359_v27 = vpack.c.bf16 %v2241_v50, %v2239_v19  ;;  %v5988_v50 = vld [vmem:[%s6859_s4 + $0x38] sm:$0xff] }
 0x3d8   : > { %v2534_v9 = vmul.f32 %v5804_v5, %v2533_v8 }
 0x3d9   : > { %v2332_v28 = vpack.c.b16 %v2331_v63, %v2330_v12 }
 0x3da   : > { %v2535_v0 = vadd.f32 %v5804_v5, %v2534_v9  ;;  %v5333_v9 = vld [vmem:[%s6912_s20 + $0xe0] sm:$0xf] }
 0x3db   : > { %5186 = vmatmul.msk.bf16.vlgmr.msra.gmra.mxu1 %vm1939_vm0, %v2332_v28  ;;  %2455 = vmatmul.bf16.gmra.mxu2 %v2359_v27 }
 0x3dc   : > { %v7314_v10 = vsel %vm2536_vm1, %v5804_v5, %v2535_v0  ;;  %v5581_v0 = vld [vmem:[%s6912_s20 + $0xec] sm:$0xf0] }
 0x3dd   : > { %8912 = vst [vmem:[#allocation44_spill] sm:$0xff] %v7314_v10 }
 0x41e   : > { %v2267_v16 = vpop.f32.mrf.mxu2 }
 0x426   : > { %v2269_v7 = vpop.f32.mrf.mxu2 }
 0x427   : > { %v2360_v26 = vpack.c.bf16 %v2269_v7, %v2267_v16 }
 0x429   : > { %2460 = vmatmul.bf16.gmra.mxu2 %v2360_v26  ;;  %v5989_v26 = vld [vmem:[%s6859_s4 + $0x40] sm:$0xff] }
 0x42e   : > { %v2295_v45 = vpop.f32.mrf.mxu3  ;;  %v2441_v31 = vpop.f32.mrf.mxu2 }
 0x42f   : > { %v2442_v13 = vadd.f32 %v7289_v4, %v2441_v31 }
 0x431   : > { %v2481_v25 = vadd.f32 %v5981_v21, %v2442_v13 }
 0x433   : > { %2499 = vadd.xlane.f32.xlu2 %v2481_v25 }
 0x436   : > { %v2297_v18 = vpop.f32.mrf.mxu3  ;;  %v2443_v29 = vpop.f32.mrf.mxu2 }
 0x437   : > { %v2444_v44 = vadd.f32 %v7289_v4, %v2443_v29  ;;  %v2361_v36 = vpack.c.bf16 %v2297_v18, %v2295_v45 }
 0x439   : > { %2465 = vmatmul.bf16.gmra.mxu2 %v2361_v36  ;;  %v2482_v32 = vadd.f32 %v5982_v34, %v2444_v44  ;;  %v5990_v36 = vld [vmem:[%s6859_s4 + $0x48] sm:$0xff] }
 0x43b   : > { %2501 = vadd.xlane.f32.xlu0 %v2482_v32 }
 0x43e   : > { %v2446_v35 = vpop.f32.mrf.mxu2 }
 0x43f   : > { %v2447_v38 = vadd.f32 %v7289_v4, %v2446_v35 }
 0x441   : > { %v2483_v48 = vadd.f32 %v5983_v46, %v2447_v38 }
 0x443   : > { %2503 = vadd.xlane.f32.xlu1 %v2483_v48 }
 0x446   : > { %v2448_v51 = vpop.f32.mrf.mxu2 }
 0x447   : > { %v2449_v24 = vadd.f32 %v7289_v4, %v2448_v51  ;;  %v5991_v51 = vld [vmem:[%s6859_s4 + $0x50] sm:$0xff] }
 0x448   : > { %v2323_v53 = vpop.f32.mrf.mxu0 }
 0x449   : > { %v2484_v56 = vadd.f32 %v5984_v55, %v2449_v24 }
 0x44b   : > { %2505 = vadd.xlane.f32.xlu2 %v2484_v56 }
 0x44e   : > { %v2451_v39 = vpop.f32.mrf.mxu2 }
 0x44f   : > { %v2452_v33 = vadd.f32 %v7289_v4, %v2451_v39 }
 0x450   : > { %v2325_v15 = vpop.f32.mrf.mxu0 }
 0x451   : > { %v7301_v11 = vadd.f32 %v5985_v58, %v2452_v33  ;;  %v2362_v54 = vpack.c.bf16 %v2325_v15, %v2323_v53  ;;  %v5992_v15 = vld [vmem:[%s6859_s4 + $0x58] sm:$0xff] }
 0x453   : > { %2507 = vadd.xlane.f32.xlu0 %v7301_v11  ;;  %2470 = vmatmul.bf16.gmra.mxu2 %v2362_v54 }
 0x456   : > { %v2453_v60 = vpop.f32.mrf.mxu2 }
 0x457   : > { %v2454_v41 = vadd.f32 %v7289_v4, %v2453_v60 }
 0x458   : > { %v2351_v62 = vpop.f32.mrf.mxu1 }
 0x459   : > { %v7306_v1 = vadd.f32 %v5986_v49, %v2454_v41 }
 0x45b   : > { %2509 = vadd.xlane.f32.xlu1 %v7306_v1 }
 0x45e   : > { %v2456_v47 = vpop.f32.mrf.mxu2 }
 0x45f   : > { %v2457_v2 = vadd.f32 %v7289_v4, %v2456_v47 }
 0x460   : > { %v2353_v61 = vpop.f32.mrf.mxu1 }
 0x461   : > { %v7311_v30 = vadd.f32 %v5987_v37, %v2457_v2  ;;  %v2363_v40 = vpack.c.bf16 %v2353_v61, %v2351_v62 }
 0x463   : > { %2511 = vadd.xlane.f32.xlu1 %v7311_v30  ;;  %2475 = vmatmul.bf16.gmra.mxu2 %v2363_v40 }
 0x466   : > { %v2458_v43 = vpop.f32.mrf.mxu2 }
 0x467   : > { %v2459_v20 = vadd.f32 %v7289_v4, %v2458_v43  ;;  %v5579_v43 = vld [vmem:[%s6912_s20 + $0xe4] sm:$0xf] }
 0x469   : > { %v7328_v12 = vadd.f32 %v5988_v50, %v2459_v20 }
 0x4a6   : > { %v2500_v42 = vpop.xlane.xlu2 %2499 }
 0x4a7   : > { %v2538_v14 = vmul.f32 %v7314_v10, %v2500_v42  ;;  %v5334_v42 = vor.u32 %v5581_v0, %v5333_v9  ;;  %v5269_v0 = vld [vmem:[%s6912_s20 + $0x60] sm:$0xf] }
 0x4a9   : > { %v7317_v17 = vsub.f32 %v2481_v25, %v2538_v14  ;;  %v5335_v14 = vld [vmem:[%s6912_s20 + $0xf0] sm:$0xf0]  ;;  %3074 = vmatpush.bf16.msra.mxu3 %v5334_v42  ;;  %v5563_v42 = vld [vmem:[%s6912_s20 + $0x64] sm:$0xf] }
 0x4ab   : > { %v2570_v6 = vmul.f32 %v7317_v17, %v7317_v17 }
 0x4ac   : > { %v2461_v19 = vpop.f32.mrf.mxu2 }
 0x4ad   : > { %2586 = vadd.xlane.f32.xlu2 %v2570_v6  ;;  %v2462_v28 = vadd.f32 %v7289_v4, %v2461_v19  ;;  %v5341_v6 = vld [vmem:[%s6912_s20 + $0xe8] sm:$0xf]  ;;  %v5582_v19 = vld [vmem:[%s6912_s20 + $0xf4] sm:$0xf0] }
 0x4ae   : > { %v2502_v52 = vpop.xlane.xlu0 %2501  ;;  %v5342_v20 = vor.u32 %v5582_v19, %v5341_v6  ;;  %v5271_v6 = vld [vmem:[%s6912_s20 + $0x70] sm:$0xf0]  ;;  %v5277_v19 = vld [vmem:[%s6912_s20 + $0x68] sm:$0xf] }
 0x4af   : > { %v2539_v57 = vmul.f32 %v7314_v10, %v2502_v52  ;;  %v7336_v45 = vadd.f32 %v5989_v26, %v2462_v28  ;;  %v5338_v52 = vor.u32 %v5579_v43, %v5335_v14  ;;  %v5577_v28 = vld [vmem:[%s6912_s20 + $0xcc] sm:$0xf0]  ;;  %v5319_v26 = vld [vmem:[%s6912_s20 + $0xd0] sm:$0xf0] }
 0x4b0   : > { %3172 = vmatpush.bf16.msrb.mxu1 %v5342_v20  ;;  %v5565_v43 = vld [vmem:[%s6912_s20 + $0x6c] sm:$0xf0]  ;;  %v5274_v20 = vor.u32 %v5563_v42, %v5271_v6  ;;  %v5231_v42 = vld [vmem:[%s6912_s20 + $0x18] sm:$0xf0] }
 0x4b1   : > { %v7323_v22 = vsub.f32 %v2482_v32, %v2539_v57  ;;  %v5580_v57 = vld [vmem:[%s6912_s20 + $0xec] sm:$0xf]  ;;  %3123 = vmatpush.bf16.msra.mxu0 %v5338_v52  ;;  %v5270_v14 = vor.u32 %v5565_v43, %v5269_v0  ;;  %v5566_v52 = vld [vmem:[%s6912_s20 + $0x74] sm:$0xf0] }
 0x4b2   : > { %v5552_v43 = vld [vmem:[%s6912_s20 + $0xc] sm:$0xf] }
 0x4b3   : > { %v2571_v23 = vmul.f32 %v7323_v22, %v7323_v22 }
 0x4b4   : > { %v2463_v16 = vpop.f32.mrf.mxu2 }
 0x4b5   : > { %2588 = vadd.xlane.f32.xlu0 %v2571_v23  ;;  %2513 = vadd.xlane.f32.xlu2 %v7328_v12  ;;  %v2464_v21 = vadd.f32 %v7289_v4, %v2463_v16  ;;  %v5343_v23 = vld [vmem:[%s6912_s20 + $0xf8] sm:$0xf0] }
 0x4b6   : > { %v2504_v63 = vpop.xlane.xlu1 %2503  ;;  %v5346_v50 = vor.u32 %v5580_v57, %v5343_v23  ;;  %v5278_v57 = vor.u32 %v5566_v52, %v5277_v19  ;;  %v5564_v23 = vld [vmem:[%s6912_s20 + $0x6c] sm:$0xf] }
 0x4b7   : > { %v2540_v27 = vmul.f32 %v7314_v10, %v2504_v63  ;;  %v7348_v34 = vadd.f32 %v5990_v36, %v2464_v21  ;;  %v5317_v63 = vld [vmem:[%s6912_s20 + $0xc0] sm:$0xf] }
 0x4b8   : > { %3221 = vmatpush.bf16.msrb.mxu2 %v5346_v50  ;;  %v5318_v16 = vor.u32 %v5577_v28, %v5317_v63  ;;  %v5279_v50 = vld [vmem:[%s6912_s20 + $0x78] sm:$0xf0]  ;;  %v5253_v28 = vld [vmem:[%s6912_s20 + $0x40] sm:$0xf] }
 0x4b9   : > { %v7333_v7 = vsub.f32 %v2483_v48, %v2540_v27  ;;  %v5575_v27 = vld [vmem:[%s6912_s20 + $0xc4] sm:$0xf]  ;;  %v5282_v63 = vor.u32 %v5564_v23, %v5279_v50 }
 0x4ba   : > { %v5322_v21 = vor.u32 %v5575_v27, %v5319_v26  ;;  %3075 = vmatpush.bf16.msra.mxu3 %v5318_v16  ;;  %v5561_v27 = vld [vmem:[%s6912_s20 + $0x4c] sm:$0xf0]  ;;  %v5559_v16 = vld [vmem:[%s6912_s20 + $0x44] sm:$0xf] }
 0x4bb   : > { %v2572_v31 = vmul.f32 %v7333_v7, %v7333_v7  ;;  %v5254_v26 = vor.u32 %v5561_v27, %v5253_v28 }
 0x4bc   : > { %v2466_v29 = vpop.f32.mrf.mxu2  ;;  %3124 = vmatpush.bf16.msra.mxu0 %v5322_v21  ;;  %v5562_v21 = vld [vmem:[%s6912_s20 + $0x54] sm:$0xf0] }
 0x4bd   : > { %2515 = vadd.xlane.f32.xlu2 %v7336_v45  ;;  %2590 = vadd.xlane.f32.xlu0 %v2572_v31  ;;  %v2467_v35 = vadd.f32 %v7289_v4, %v2466_v29  ;;  %v5325_v31 = vld [vmem:[%s6912_s20 + $0xc8] sm:$0xf]  ;;  %v5576_v29 = vld [vmem:[%s6912_s20 + $0xcc] sm:$0xf] }
 0x4be   : > { %v2506_v13 = vpop.xlane.xlu2 %2505 }
 0x4bf   : > { %v2541_v25 = vmul.f32 %v7314_v10, %v2506_v13  ;;  %v7359_v24 = vadd.f32 %v5991_v51, %v2467_v35  ;;  %v5578_v13 = vld [vmem:[%s6912_s20 + $0xd4] sm:$0xf0]  ;;  %v5573_v35 = vld [vmem:[%s6912_s20 + $0xac] sm:$0xf0]  ;;  %v5303_v51 = vld [vmem:[%s6912_s20 + $0xb0] sm:$0xf0] }
 0x4c1   : > { %v7343_v18 = vsub.f32 %v2484_v56, %v2541_v25  ;;  %v5326_v25 = vor.u32 %v5578_v13, %v5325_v31  ;;  %v5255_v31 = vld [vmem:[%s6912_s20 + $0x50] sm:$0xf0]  ;;  %v5261_v13 = vld [vmem:[%s6912_s20 + $0x48] sm:$0xf] }
 0x4c3   : > { %v2573_v44 = vmul.f32 %v7343_v18, %v7343_v18  ;;  %3173 = vmatpush.bf16.msrb.mxu1 %v5326_v25  ;;  %v5258_v25 = vor.u32 %v5559_v16, %v5255_v31 }
 0x4c4   : > { %v2468_v53 = vpop.f32.mrf.mxu2 }
 0x4c5   : > { %2592 = vadd.xlane.f32.xlu1 %v2573_v44  ;;  %2517 = vadd.xlane.f32.xlu0 %v7348_v34  ;;  %v2469_v56 = vadd.f32 %v7289_v4, %v2468_v53  ;;  %v5327_v44 = vld [vmem:[%s6912_s20 + $0xd8] sm:$0xf0]  ;;  %v5309_v53 = vld [vmem:[%s6912_s20 + $0xa8] sm:$0xf] }
 0x4c6   : > { %v2508_v32 = vpop.xlane.xlu0 %2507  ;;  %v5330_v36 = vor.u32 %v5576_v29, %v5327_v44  ;;  %v5262_v29 = vor.u32 %v5562_v21, %v5261_v13  ;;  %v5560_v44 = vld [vmem:[%s6912_s20 + $0x4c] sm:$0xf] }
 0x4c7   : > { %v2542_v38 = vmul.f32 %v7314_v10, %v2508_v32  ;;  %v7368_v58 = vadd.f32 %v5992_v15, %v2469_v56  ;;  %v5301_v32 = vld [vmem:[%s6912_s20 + $0xa0] sm:$0xf]  ;;  %v5572_v15 = vld [vmem:[%s6912_s20 + $0xac] sm:$0xf] }
 0x4c8   : > { %3222 = vmatpush.bf16.msrb.mxu2 %v5330_v36  ;;  %v5263_v36 = vld [vmem:[%s6912_s20 + $0x58] sm:$0xf0] }
 0x4c9   : > { %v7354_v46 = vsub.f32 %v7301_v11, %v2542_v38  ;;  %v5571_v38 = vld [vmem:[%s6912_s20 + $0xa4] sm:$0xf] }
 0x4ca   : > { %v5306_v56 = vor.u32 %v5571_v38, %v5303_v51  ;;  %v5557_v38 = vld [vmem:[%s6912_s20 + $0x2c] sm:$0xf0] }
 0x4cb   : > { %v2574_v48 = vmul.f32 %v7354_v46, %v7354_v46 }
 0x4cc   : > { %3125 = vmatpush.bf16.msra.mxu0 %v5306_v56  ;;  %v5558_v56 = vld [vmem:[%s6912_s20 + $0x34] sm:$0xf0] }
 0x4cd   : > { %2594 = vadd.xlane.f32.xlu1 %v2574_v48  ;;  %2519 = vadd.xlane.f32.xlu0 %v7359_v24  ;;  %v5302_v48 = vor.u32 %v5573_v35, %v5301_v32  ;;  %v5266_v32 = vor.u32 %v5560_v44, %v5263_v36  ;;  %v5237_v35 = vld [vmem:[%s6912_s20 + $0x20] sm:$0xf] }
 0x4ce   : > { %v2510_v55 = vpop.xlane.xlu1 %2509  ;;  %v5238_v51 = vor.u32 %v5557_v38, %v5237_v35 }
 0x4cf   : > { %v2543_v39 = vmul.f32 %v7314_v10, %v2510_v55  ;;  %v5574_v55 = vld [vmem:[%s6912_s20 + $0xb4] sm:$0xf0]  ;;  %3076 = vmatpush.bf16.msra.mxu3 %v5302_v48  ;;  %v5555_v48 = vld [vmem:[%s6912_s20 + $0x24] sm:$0xf] }
 0x4d1   : > { %v7365_v33 = vsub.f32 %v7306_v1, %v2543_v39  ;;  %v5993_v1 = vld [vmem:[%s6859_s4 + $0x60] sm:$0xff]  ;;  %v5310_v39 = vor.u32 %v5574_v55, %v5309_v53  ;;  %v5239_v53 = vld [vmem:[%s6912_s20 + $0x30] sm:$0xf0] }
 0x4d2   : > { %v5245_v55 = vld [vmem:[%s6912_s20 + $0x28] sm:$0xf] }
 0x4d3   : > { %v2575_v11 = vmul.f32 %v7365_v33, %v7365_v33  ;;  %3174 = vmatpush.bf16.msrb.mxu1 %v5310_v39  ;;  %v5242_v39 = vor.u32 %v5555_v48, %v5239_v53 }
 0x4d5   : > { %2521 = vadd.xlane.f32.xlu1 %v7368_v58  ;;  %2596 = vadd.xlane.f32.xlu2 %v2575_v11  ;;  %v5311_v11 = vld [vmem:[%s6912_s20 + $0xb8] sm:$0xf0] }
 0x4d6   : > { %v2471_v54 = vpop.f32.mrf.mxu2  ;;  %v2512_v60 = vpop.xlane.xlu1 %2511 }
 0x4d7   : > { %v2472_v41 = vadd.f32 %v7289_v4, %v2471_v54  ;;  %v2544_v62 = vmul.f32 %v7314_v10, %v2512_v60  ;;  %v5314_v54 = vor.u32 %v5572_v15, %v5311_v11  ;;  %v5285_v60 = vld [vmem:[%s6912_s20 + $0x80] sm:$0xf]  ;;  %v5246_v15 = vor.u32 %v5558_v56, %v5245_v55  ;;  %v5556_v11 = vld [vmem:[%s6912_s20 + $0x2c] sm:$0xf] }
 0x4d9   : > { %v7376_v49 = vsub.f32 %v7311_v30, %v2544_v62  ;;  %v7379_v47 = vadd.f32 %v5993_v1, %v2472_v41  ;;  %v5994_v30 = vld [vmem:[%s6859_s4 + $0x68] sm:$0xff]  ;;  %v5567_v62 = vld [vmem:[%s6912_s20 + $0x84] sm:$0xf]  ;;  %3223 = vmatpush.bf16.msrb.mxu2 %v5314_v54  ;;  %v5247_v54 = vld [vmem:[%s6912_s20 + $0x38] sm:$0xf0] }
 0x4da   : > { %v5569_v41 = vld [vmem:[%s6912_s20 + $0x8c] sm:$0xf0] }
 0x4db   : > { %v2576_v2 = vmul.f32 %v7376_v49, %v7376_v49  ;;  %v5286_v1 = vor.u32 %v5569_v41, %v5285_v60  ;;  %v5250_v41 = vor.u32 %v5556_v11, %v5247_v54 }
 0x4dd   : > { %2523 = vadd.xlane.f32.xlu1 %v7379_v47  ;;  %2598 = vadd.xlane.f32.xlu2 %v2576_v2  ;;  %v5287_v2 = vld [vmem:[%s6912_s20 + $0x90] sm:$0xf0] }
 0x4de   : > { %v2473_v61 = vpop.f32.mrf.mxu2  ;;  %3077 = vmatpush.bf16.msra.mxu3 %v5286_v1  ;;  %v5221_v1 = vld [vmem:[%s6912_s20] sm:$0xf] }
 0x4df   : > { %v2474_v37 = vadd.f32 %v7289_v4, %v2473_v61  ;;  %v5293_v61 = vld [vmem:[%s6912_s20 + $0x88] sm:$0xf] }
 0x4e1   : > { %v7386_v40 = vadd.f32 %v5994_v30, %v2474_v37  ;;  %v5570_v37 = vld [vmem:[%s6912_s20 + $0x94] sm:$0xf0]  ;;  %v5290_v30 = vor.u32 %v5567_v62, %v5287_v2  ;;  %v5553_v2 = vld [vmem:[%s6912_s20 + $0xc] sm:$0xf0] }
 0x4e2   : > { %3078 = vmatpush.bf16.msra.mxu3 %v5270_v14  ;;  %v5234_v14 = vor.u32 %v5552_v43, %v5231_v42 }
 0x4e3   : > { %3126 = vmatpush.bf16.msra.mxu0 %v5290_v30  ;;  %v5223_v30 = vld [vmem:[%s6912_s20 + $0x10] sm:$0xf0] }
 0x4e5   : > { %2525 = vadd.xlane.f32.xlu2 %v7386_v40 }
 0x4e6   : > { %v2476_v3 = vpop.f32.mrf.mxu2  ;;  %3079 = vmatpush.bf16.msra.mxu3 %v5254_v26 }
 0x4e7   : > { %v2477_v5 = vadd.f32 %v7289_v4, %v2476_v3  ;;  %v5294_v3 = vor.u32 %v5570_v37, %v5293_v61  ;;  %3127 = vmatpush.bf16.msra.mxu0 %v5274_v20  ;;  %v5551_v61 = vld [vmem:[%s6912_s20 + $0x4] sm:$0xf]  ;;  %v5222_v37 = vor.u32 %v5553_v2, %v5221_v1 }
 0x4e9   : > { %v7391_v8 = vadd.f32 %v5995_v59, %v2477_v5  ;;  %v5568_v5 = vld [vmem:[%s6912_s20 + $0x8c] sm:$0xf]  ;;  %v5295_v59 = vld [vmem:[%s6912_s20 + $0x98] sm:$0xf0]  ;;  %3175 = vmatpush.bf16.msrb.mxu1 %v5294_v3  ;;  %v5229_v3 = vld [vmem:[%s6912_s20 + $0x8] sm:$0xf] }
 0x4ea   : > { %v5298_v9 = vor.u32 %v5568_v5, %v5295_v59  ;;  %3080 = vmatpush.bf16.msra.mxu3 %v5238_v51  ;;  %v5554_v5 = vld [vmem:[%s6912_s20 + $0x14] sm:$0xf0] }
 0x4eb   : > { %3128 = vmatpush.bf16.msra.mxu0 %v5258_v25  ;;  %v5230_v0 = vor.u32 %v5554_v5, %v5229_v3 }
 0x4ec   : > { %3224 = vmatpush.bf16.msrb.mxu2 %v5298_v9  ;;  %v5226_v9 = vor.u32 %v5551_v61, %v5223_v30  ;;  %v5996_v61 = vld [vmem:[%s6859_s4 + $0x78] sm:$0xff]  ;;  %s5082_s4 = sshll.u32 %s6937_s5, 2 }
 0x4ed   : > { %2527 = vadd.xlane.f32.xlu2 %v7391_v8  ;;  %3176 = vmatpush.bf16.msrb.mxu1 %v5278_v57  ;;  %s1240_s28 = scalar_lea.vmem %s8924_s21, %s5082_s4 }
 0x4ee   : > { %3081 = vmatpush.bf16.msra.mxu3 %v5222_v37  ;;  %v2478_v38 = vpop.f32.mrf.mxu2 }
 0x4ef   : > { %3129 = vmatpush.bf16.msra.mxu0 %v5242_v39 }
 0x4f0   : > { %3225 = vmatpush.bf16.msrb.mxu2 %v5282_v63 }
 0x4f1   : > { %3177 = vmatpush.bf16.msrb.mxu1 %v5262_v29 }
 0x4f3   : > { %3130 = vmatpush.bf16.msra.mxu0 %v5226_v9 }
 0x4f4   : > { %3226 = vmatpush.bf16.msrb.mxu2 %v5266_v32 }
 0x4f5   : > { %3178 = vmatpush.bf16.msrb.mxu1 %v5246_v15 }
 0x4f8   : > { %3227 = vmatpush.bf16.msrb.mxu2 %v5250_v41 }
 0x4f9   : > { %3179 = vmatpush.bf16.msrb.mxu1 %v5230_v0 }
 0x4fc   : > { %3228 = vmatpush.bf16.msrb.mxu2 %v5234_v14 }
 0x520   : > { %v2587_v60 = vpop.xlane.xlu2 %2586 }
 0x521   : > { %v2618_v62 = vmul.f32 %v2587_v60, %v7314_v10  ;;  %v7478_v60 = vld [vmem:[%s1045_s19] ss:$0 sm:$0xff] }
 0x523   : > { %v2634_v59 = vadd.f32 1e-12, %v2618_v62 }
 0x525   : > { %5805 = vrsqrt.f32 %v2634_v59  ;;  %vm2656_vm3 = vweird.f32 %v2634_v59 }
 0x528   : > { %v2589_v6 = vpop.xlane.xlu0 %2588  ;;  %v2514_v19 = vpop.xlane.xlu2 %2513 }
 0x529   : > { %v2619_v52 = vmul.f32 %v2589_v6, %v7314_v10  ;;  %v2545_v20 = vmul.f32 %v7314_v10, %v2514_v19 }
 0x52b   : > { %v5806_v57 = vpop.eup %5805  ;;  %v2635_v23 = vadd.f32 1e-12, %v2619_v52  ;;  %v7462_v50 = vsub.f32 %v7328_v12, %v2545_v20 }
 0x52c   : > { %v2651_v63 = vmul.f32 %v5806_v57, %v2634_v59  ;;  %vm2657_vm2 = vweird.f32 %v5806_v57  ;;  %v7491_v59 = vld [vmem:[%s1054_s13] ss:$0 sm:$0xff] }
 0x52d   : > { %5807 = vrsqrt.f32 %v2635_v23  ;;  %v2577_v28 = vmul.f32 %v7462_v50, %v7462_v50  ;;  %vm2658_vm4 = vmor %vm2656_vm3, %vm2657_vm2  ;;  %vm2666_vm6 = vweird.f32 %v2635_v23 }
 0x52e   : > { %v2652_v27 = vmul.f32 %v5806_v57, %v2651_v63 }
 0x52f   : > { %2600 = vadd.xlane.f32.xlu0 %v2577_v28 }
 0x530   : > { %v2653_v16 = vmul.f32 0.5, %v2652_v27  ;;  %v2516_v26 = vpop.xlane.xlu2 %2515  ;;  %v2591_v31 = vpop.xlane.xlu0 %2590 }
 0x531   : > { %v2546_v13 = vmul.f32 %v7314_v10, %v2516_v26  ;;  %v2620_v21 = vmul.f32 %v2591_v31, %v7314_v10 }
 0x532   : > { %v2654_v25 = vsub.f32 1.5, %v2653_v16 }
 0x533   : > { %v5808_v29 = vpop.eup %5807  ;;  %v7469_v44 = vsub.f32 %v7336_v45, %v2546_v13  ;;  %v2636_v12 = vadd.f32 1e-12, %v2620_v21  ;;  %v2479_v45 = vadd.f32 %v7289_v4, %v2478_v38 }
 0x534   : > { %v2655_v36 = vmul.f32 %v5806_v57, %v2654_v25  ;;  %v2661_v32 = vmul.f32 %v5808_v29, %v2635_v23  ;;  %vm2667_vm5 = vweird.f32 %v5808_v29 }
 0x535   : > { %5809 = vrsqrt.f32 %v2636_v12  ;;  %v2578_v35 = vmul.f32 %v7469_v44, %v7469_v44  ;;  %vm2668_vm7 = vmor %vm2666_vm6, %vm2667_vm5  ;;  %v7485_v37 = vadd.f32 %v5996_v61, %v2479_v45  ;;  %vm2676_vm9 = vweird.f32 %v2636_v12 }
 0x536   : > { %v2662_v48 = vmul.f32 %v5808_v29, %v2661_v32  ;;  %v2659_v51 = vsel %vm2658_vm4, %v5806_v57, %v2655_v36 }
 0x537   : > { %2602 = vadd.xlane.f32.xlu0 %v2578_v35  ;;  %v2810_v41 = vmul.f32 %v2659_v51, %v7317_v17 }
 0x538   : > { %v2663_v53 = vmul.f32 0.5, %v2662_v48  ;;  %v2518_v55 = vpop.xlane.xlu0 %2517  ;;  %v2593_v56 = vpop.xlane.xlu1 %2592 }
 0x539   : > { %v2547_v39 = vmul.f32 %v7314_v10, %v2518_v55  ;;  %v2621_v15 = vmul.f32 %v2593_v56, %v7314_v10  ;;  %v2829_v17 = vmul.f32 %v7478_v60, %v2810_v41 }
 0x53a   : > { %v2664_v11 = vsub.f32 1.5, %v2663_v53 }
 0x53b   : > { %v5810_v54 = vpop.eup %5809  ;;  %v7482_v62 = vsub.f32 %v7348_v34, %v2547_v39  ;;  %v2637_v1 = vadd.f32 1e-12, %v2621_v15  ;;  %v7500_v20 = vadd.f32 %v7491_v59, %v2829_v17 }
 0x53c   : > { %v2665_v2 = vmul.f32 %v5808_v29, %v2664_v11  ;;  %v2671_v4 = vmul.f32 %v5810_v54, %v2636_v12  ;;  %vm2677_vm8 = vweird.f32 %v5810_v54 }
 0x53d   : > { %5811 = vrsqrt.f32 %v2637_v1  ;;  %v2579_v30 = vmul.f32 %v7482_v62, %v7482_v62  ;;  %8913 = vst [vmem:[#allocation45_spill] sm:$0xff] %v7500_v20  ;;  %vm2678_vm10 = vmor %vm2676_vm9, %vm2677_vm8  ;;  %vm2686_vm12 = vweird.f32 %v2637_v1 }
 0x53e   : > { %v2669_v3 = vsel %vm2668_vm7, %v5808_v29, %v2665_v2  ;;  %v2672_v5 = vmul.f32 %v5810_v54, %v2671_v4 }
 0x53f   : > { %v2811_v34 = vmul.f32 %v2669_v3, %v7323_v22  ;;  %2529 = vadd.xlane.f32.xlu0 %v7485_v37  ;;  %2604 = vadd.xlane.f32.xlu1 %v2579_v30 }
 0x540   : > { %v2673_v9 = vmul.f32 0.5, %v2672_v5  ;;  %v2520_v0 = vpop.xlane.xlu0 %2519  ;;  %v2595_v43 = vpop.xlane.xlu1 %2594 }
 0x541   : > { %v2830_v42 = vmul.f32 %v7478_v60, %v2811_v34  ;;  %v2548_v14 = vmul.f32 %v7314_v10, %v2520_v0  ;;  %v2622_v6 = vmul.f32 %v2595_v43, %v7314_v10 }
 0x542   : > { %v2674_v19 = vsub.f32 1.5, %v2673_v9 }
 0x543   : > { %v5812_v52 = vpop.eup %5811  ;;  %v2849_v57 = vadd.f32 %v7491_v59, %v2830_v42  ;;  %v7504_v22 = vsub.f32 %v7359_v24, %v2548_v14  ;;  %v2638_v23 = vadd.f32 1e-12, %v2622_v6 }
 0x544   : > { %v2675_v63 = vmul.f32 %v5810_v54, %v2674_v19  ;;  %v2681_v28 = vmul.f32 %v5812_v52, %v2637_v1  ;;  %vm2687_vm11 = vweird.f32 %v5812_v52 }
 0x545   : > { %5813 = vrsqrt.f32 %v2638_v23  ;;  %v2864_v27 = vpack.c.bf16 %v2849_v57, %v7500_v20  ;;  %v2580_v16 = vmul.f32 %v7504_v22, %v7504_v22  ;;  %vm2688_vm13 = vmor %vm2686_vm12, %vm2687_vm11  ;;  %vm2696_vm15 = vweird.f32 %v2638_v23 }
 0x546   : > { %v2682_v26 = vmul.f32 %v5812_v52, %v2681_v28  ;;  %v2679_v31 = vsel %vm2678_vm10, %v5810_v54, %v2675_v63 }
 0x547   : > { %3082 = vmatmul.bf16.vlgmr.msra.gmra.mxu3 %v2864_v27  ;;  %3131 = vmatmul.bf16.vlgmr.msra.gmra.mxu0 %v2864_v27  ;;  %v2812_v12 = vmul.f32 %v2679_v31, %v7333_v7 }
 0x548   : > { %v2683_v13 = vmul.f32 0.5, %v2682_v26  ;;  %3180 = vmatmul.bf16.vlgmr.msrb.gmra.mxu1 %v2864_v27  ;;  %3229 = vmatmul.bf16.vlgmr.msrb.gmra.mxu2 %v2864_v27  ;;  %v2597_v24 = vpop.xlane.xlu2 %2596  ;;  %v2522_v21 = vpop.xlane.xlu1 %2521 }
 0x549   : > { %2606 = vadd.xlane.f32.xlu1 %v2580_v16  ;;  %v2623_v25 = vmul.f32 %v2597_v24, %v7314_v10  ;;  %v2549_v29 = vmul.f32 %v7314_v10, %v2522_v21  ;;  %v2831_v39 = vmul.f32 %v7478_v60, %v2812_v12 }
 0x54a   : > { %v2684_v36 = vsub.f32 1.5, %v2683_v13 }
 0x54b   : > { %v5814_v32 = vpop.eup %5813  ;;  %v2639_v35 = vadd.f32 1e-12, %v2623_v25  ;;  %v7513_v38 = vsub.f32 %v7368_v58, %v2549_v29  ;;  %v7525_v4 = vadd.f32 %v7491_v59, %v2831_v39 }
 0x54c   : > { %v2685_v48 = vmul.f32 %v5812_v52, %v2684_v36  ;;  %v2691_v51 = vmul.f32 %v5814_v32, %v2638_v23  ;;  %vm2697_vm14 = vweird.f32 %v5814_v32 }
 0x54d   : > { %5815 = vrsqrt.f32 %v2639_v35  ;;  %v2581_v53 = vmul.f32 %v7513_v38, %v7513_v38  ;;  %8914 = vst [vmem:[#allocation46_spill] sm:$0xff] %v7525_v4  ;;  %vm2698_vm0 = vmor %vm2696_vm15, %vm2697_vm14  ;;  %vm2706_vm2 = vweird.f32 %v2639_v35 }
 0x54e   : > { %v2689_v55 = vsel %vm2688_vm13, %v5812_v52, %v2685_v48  ;;  %v2692_v56 = vmul.f32 %v5814_v32, %v2691_v51 }
 0x54f   : > { %v2813_v45 = vmul.f32 %v2689_v55, %v7343_v18  ;;  %2608 = vadd.xlane.f32.xlu2 %v2581_v53 }
 0x550   : > { %v2693_v7 = vmul.f32 0.5, %v2692_v56  ;;  %v2599_v15 = vpop.xlane.xlu2 %2598  ;;  %v2524_v11 = vpop.xlane.xlu1 %2523 }
 0x551   : > { %v2550_v58 = vmul.f32 %v7314_v10, %v2524_v11  ;;  %v2832_v54 = vmul.f32 %v7478_v60, %v2813_v45  ;;  %v2624_v31 = vmul.f32 %v2599_v15, %v7314_v10 }
 0x552   : > { %v2694_v41 = vsub.f32 1.5, %v2693_v7 }
 0x553   : > { %v5816_v1 = vpop.eup %5815  ;;  %v7522_v2 = vsub.f32 %v7379_v47, %v2550_v58  ;;  %v2851_v18 = vadd.f32 %v7491_v59, %v2832_v54  ;;  %v2640_v13 = vadd.f32 1e-12, %v2624_v31 }
 0x554   : > { %v2695_v61 = vmul.f32 %v5814_v32, %v2694_v41  ;;  %v2701_v30 = vmul.f32 %v5816_v1, %v2639_v35  ;;  %vm2707_vm1 = vweird.f32 %v5816_v1 }
 0x555   : > { %v2865_v3 = vpack.c.bf16 %v2851_v18, %v7525_v4  ;;  %v2582_v5 = vmul.f32 %v7522_v2, %v7522_v2  ;;  %vm2708_vm3 = vmor %vm2706_vm2, %vm2707_vm1  ;;  %5817 = vrsqrt.f32 %v2640_v13  ;;  %vm2716_vm5 = vweird.f32 %v2640_v13 }
 0x556   : > { %v2702_v17 = vmul.f32 %v5816_v1, %v2701_v30  ;;  %v2699_v47 = vsel %vm2698_vm0, %v5814_v32, %v2695_v61 }
 0x557   : > { %3087 = vmatmul.bf16.gmra.mxu3 %v2865_v3  ;;  %3136 = vmatmul.bf16.gmra.mxu0 %v2865_v3  ;;  %v2814_v42 = vmul.f32 %v2699_v47, %v7354_v46 }
 0x558   : > { %v2703_v34 = vmul.f32 0.5, %v2702_v17  ;;  %3185 = vmatmul.bf16.gmra.mxu1 %v2865_v3  ;;  %3234 = vmatmul.bf16.gmra.mxu2 %v2865_v3  ;;  %v2526_v9 = vpop.xlane.xlu2 %2525 }
 0x559   : > { %2610 = vadd.xlane.f32.xlu0 %v2582_v5  ;;  %v2551_v0 = vmul.f32 %v7314_v10, %v2526_v9  ;;  %v2833_v23 = vmul.f32 %v7478_v60, %v2814_v42 }
 0x55a   : > { %v2704_v43 = vsub.f32 1.5, %v2703_v34 }
 0x55b   : > { %v7534_v14 = vsub.f32 %v7386_v40, %v2551_v0  ;;  %v7546_v27 = vadd.f32 %v7491_v59, %v2833_v23 }
 0x55c   : > { %v2705_v6 = vmul.f32 %v5816_v1, %v2704_v43 }
 0x55d   : > { %v2583_v19 = vmul.f32 %v7534_v14, %v7534_v14  ;;  %8915 = vst [vmem:[#allocation47_spill] sm:$0xff] %v7546_v27 }
 0x55e   : > { %v2709_v52 = vsel %vm2708_vm3, %v5816_v1, %v2705_v6 }
 0x55f   : > { %v2815_v57 = vmul.f32 %v2709_v52, %v7365_v33  ;;  %2612 = vadd.xlane.f32.xlu1 %v2583_v19 }
 0x560   : > { %v2528_v63 = vpop.xlane.xlu2 %2527 }
 0x561   : > { %v2552_v28 = vmul.f32 %v7314_v10, %v2528_v63  ;;  %v2834_v46 = vmul.f32 %v7478_v60, %v2815_v57 }
 0x563   : > { %v7543_v40 = vsub.f32 %v7391_v8, %v2552_v28  ;;  %v2853_v16 = vadd.f32 %v7491_v59, %v2834_v46  ;;  %v5818_v8 = vpop.eup %5817 }
 0x564   : > { %v2711_v24 = vmul.f32 %v5818_v8, %v2640_v13  ;;  %vm2717_vm4 = vweird.f32 %v5818_v8 }
 0x565   : > { %v2866_v26 = vpack.c.bf16 %v2853_v16, %v7546_v27  ;;  %v2584_v33 = vmul.f32 %v7543_v40, %v7543_v40  ;;  %vm2718_vm6 = vmor %vm2716_vm5, %vm2717_vm4 }
 0x566   : > { %v2712_v21 = vmul.f32 %v5818_v8, %v2711_v24 }
 0x567   : > { %3092 = vmatmul.bf16.gmra.mxu3 %v2866_v26  ;;  %3141 = vmatmul.bf16.gmra.mxu0 %v2866_v26 }
 0x568   : > { %3190 = vmatmul.bf16.gmra.mxu1 %v2866_v26  ;;  %3239 = vmatmul.bf16.gmra.mxu2 %v2866_v26  ;;  %v2713_v32 = vmul.f32 0.5, %v2712_v21 }
 0x569   : > { %2614 = vadd.xlane.f32.xlu2 %v2584_v33 }
 0x56a   : > { %v2714_v12 = vsub.f32 1.5, %v2713_v32 }
 0x56c   : > { %v2715_v55 = vmul.f32 %v5818_v8, %v2714_v12 }
 0x56e   : > { %v2719_v39 = vsel %vm2718_vm6, %v5818_v8, %v2715_v55 }
 0x56f   : > { %v2816_v18 = vmul.f32 %v2719_v39, %v7376_v49 }
 0x571   : > { %v2835_v9 = vmul.f32 %v7478_v60, %v2816_v18 }
 0x573   : > { %v7568_v6 = vadd.f32 %v7491_v59, %v2835_v9 }
 0x575   : > { %8916 = vst [vmem:[#allocation48_spill] sm:$0xff] %v7568_v6 }
 0x5a2   : > { %v2601_v25 = vpop.xlane.xlu0 %2600 }
 0x5a3   : > { %v2625_v29 = vmul.f32 %v2601_v25, %v7314_v10 }
 0x5a5   : > { %v2641_v36 = vadd.f32 1e-12, %v2625_v29 }
 0x5a7   : > { %5819 = vrsqrt.f32 %v2641_v36  ;;  %vm2726_vm8 = vweird.f32 %v2641_v36 }
 0x5aa   : > { %v2603_v35 = vpop.xlane.xlu0 %2602 }
 0x5ab   : > { %v2626_v48 = vmul.f32 %v2603_v35, %v7314_v10 }
 0x5ad   : > { %v5820_v51 = vpop.eup %5819  ;;  %v2642_v53 = vadd.f32 1e-12, %v2626_v48 }
 0x5ae   : > { %v2721_v56 = vmul.f32 %v5820_v51, %v2641_v36  ;;  %vm2727_vm7 = vweird.f32 %v5820_v51 }
 0x5af   : > { %5821 = vrsqrt.f32 %v2642_v53  ;;  %vm2728_vm9 = vmor %vm2726_vm8, %vm2727_vm7  ;;  %vm2736_vm13 = vweird.f32 %v2642_v53 }
 0x5b0   : > { %v2722_v45 = vmul.f32 %v5820_v51, %v2721_v56 }
 0x5b2   : > { %v2723_v7 = vmul.f32 0.5, %v2722_v45  ;;  %v2530_v15 = vpop.xlane.xlu0 %2529  ;;  %v2605_v11 = vpop.xlane.xlu1 %2604 }
 0x5b3   : > { %v2553_v58 = vmul.f32 %v7314_v10, %v2530_v15  ;;  %v2627_v54 = vmul.f32 %v2605_v11, %v7314_v10 }
 0x5b4   : > { %v2724_v41 = vsub.f32 1.5, %v2723_v7 }
 0x5b5   : > { %v5822_v1 = vpop.eup %5821  ;;  %v7559_v61 = vsub.f32 %v7485_v37, %v2553_v58  ;;  %v2643_v30 = vadd.f32 1e-12, %v2627_v54 }
 0x5b6   : > { %v2725_v3 = vmul.f32 %v5820_v51, %v2724_v41  ;;  %v2731_v5 = vmul.f32 %v5822_v1, %v2642_v53  ;;  %vm2737_vm11 = vweird.f32 %v5822_v1 }
 0x5b7   : > { %5823 = vrsqrt.f32 %v2643_v30  ;;  %v2585_v17 = vmul.f32 %v7559_v61, %v7559_v61  ;;  %vm2746_vm12 = vweird.f32 %v2643_v30  ;;  %vm2738_vm15 = vmor %vm2736_vm13, %vm2737_vm11 }
 0x5b8   : > { %v2729_v47 = vsel %vm2728_vm9, %v5820_v51, %v2725_v3  ;;  %v2732_v0 = vmul.f32 %v5822_v1, %v2731_v5 }
 0x5b9   : > { %v2817_v34 = vmul.f32 %v2729_v47, %v7462_v50  ;;  %2616 = vadd.xlane.f32.xlu0 %v2585_v17 }
 0x5ba   : > { %v2733_v57 = vmul.f32 0.5, %v2732_v0  ;;  %v5590_v0 = vld [vmem:[%s6915_s23 + $0x38] sm:$0xff] }
 0x5bb   : > { %v2836_v49 = vmul.f32 %v7478_v60, %v2817_v34  ;;  %4138 = vmatpush.bf16.msrb.mxu3 %v5590_v0 }
 0x5bc   : > { %v2607_v37 = vpop.xlane.xlu1 %2606  ;;  %v2734_v16 = vsub.f32 1.5, %v2733_v57  ;;  %v5589_v57 = vld [vmem:[%s6915_s23 + $0x30] sm:$0xff] }
 0x5bd   : > { %v5824_v43 = vpop.eup %5823  ;;  %v2628_v42 = vmul.f32 %v2607_v37, %v7314_v10  ;;  %v2855_v19 = vadd.f32 %v7491_v59, %v2836_v49  ;;  %v5614_v49 = vld [vmem:[%s6915_s23 + $0xf8] sm:$0xff] }
 0x5be   : > { %v2741_v52 = vmul.f32 %v5824_v43, %v2643_v30  ;;  %vm2747_vm10 = vweird.f32 %v5824_v43  ;;  %v2735_v8 = vmul.f32 %v5822_v1, %v2734_v16  ;;  %v5598_v37 = vld [vmem:[%s6915_s23 + $0x78] sm:$0xff]  ;;  %4261 = vmatpush.bf16.msra.mxu2 %v5614_v49 }
 0x5bf   : > { %v2867_v23 = vpack.c.bf16 %v2855_v19, %v7568_v6  ;;  %v2644_v63 = vadd.f32 1e-12, %v2628_v42  ;;  %vm2748_vm14 = vmor %vm2746_vm12, %vm2747_vm10  ;;  %4179 = vmatpush.bf16.msrb.mxu0 %v5598_v37  ;;  %4139 = vmatpush.bf16.msrb.mxu3 %v5589_v57 }
 0x5c0   : > { %v2742_v50 = vmul.f32 %v5824_v43, %v2741_v52  ;;  %v2739_v25 = vsel %vm2738_vm15, %v5822_v1, %v2735_v8  ;;  %v5596_v8 = vld [vmem:[%s6915_s23 + $0x68] sm:$0xff] }
 0x5c1   : > { %3097 = vmatmul.bf16.gmra.mxu3 %v2867_v23  ;;  %3146 = vmatmul.bf16.gmra.mxu0 %v2867_v23  ;;  %5825 = vrsqrt.f32 %v2644_v63  ;;  %v2818_v35 = vmul.f32 %v2739_v25, %v7469_v44  ;;  %vm2756_vm2 = vweird.f32 %v2644_v63 }
 0x5c2   : > { %v2743_v28 = vmul.f32 0.5, %v2742_v50  ;;  %3195 = vmatmul.bf16.gmra.mxu1 %v2867_v23  ;;  %3244 = vmatmul.bf16.gmra.mxu2 %v2867_v23  ;;  %v2609_v46 = vpop.xlane.xlu2 %2608  ;;  %v5613_v23 = vld [vmem:[%s6915_s23 + $0xf0] sm:$0xff] }
 0x5c3   : > { %v2629_v26 = vmul.f32 %v2609_v46, %v7314_v10  ;;  %v2837_v39 = vmul.f32 %v7478_v60, %v2818_v35  ;;  %v5597_v50 = vld [vmem:[%s6915_s23 + $0x70] sm:$0xff]  ;;  %4262 = vmatpush.bf16.msra.mxu2 %v5613_v23 }
 0x5c4   : > { %v2744_v33 = vsub.f32 1.5, %v2743_v28  ;;  %4180 = vmatpush.bf16.msrb.mxu0 %v5597_v50 }
 0x5c5   : > { %v2645_v31 = vadd.f32 1e-12, %v2629_v26  ;;  %v7583_v11 = vadd.f32 %v7491_v59, %v2837_v39  ;;  %v5588_v26 = vld [vmem:[%s6915_s23 + $0x28] sm:$0xff] }
 0x5c6   : > { %v2745_v13 = vmul.f32 %v5824_v43, %v2744_v33  ;;  %4140 = vmatpush.bf16.msrb.mxu3 %v5588_v26 }
 0x5c7   : > { %5827 = vrsqrt.f32 %v2645_v31  ;;  %v5826_v24 = vpop.eup %5825  ;;  %8917 = vst [vmem:[#allocation49_spill] sm:$0xff] %v7583_v11  ;;  %vm2766_vm4 = vweird.f32 %v2645_v31 }
 0x5c8   : > { %v2749_v21 = vsel %vm2748_vm14, %v5824_v43, %v2745_v13  ;;  %v2751_v32 = vmul.f32 %v5826_v24, %v2644_v63  ;;  %vm2757_vm0 = vweird.f32 %v5826_v24  ;;  %v5606_v43 = vld [vmem:[%s6915_s23 + $0xb8] sm:$0xff]  ;;  %v5605_v63 = vld [vmem:[%s6915_s23 + $0xb0] sm:$0xff]  ;;  %4181 = vmatpush.bf16.msrb.mxu0 %v5596_v8 }
 0x5c9   : > { %v2819_v36 = vmul.f32 %v2749_v21, %v7482_v62  ;;  %vm7592_vm3 = vmor %vm2756_vm2, %vm2757_vm0  ;;  %4220 = vmatpush.bf16.msra.mxu1 %v5606_v43 }
 0x5ca   : > { %v2752_v55 = vmul.f32 %v5826_v24, %v2751_v32 }
 0x5cb   : > { %v2838_v45 = vmul.f32 %v7478_v60, %v2819_v36 }
 0x5cc   : > { %v2611_v12 = vpop.xlane.xlu0 %2610  ;;  %v2753_v7 = vmul.f32 0.5, %v2752_v55 }
 0x5cd   : > { %v5828_v29 = vpop.eup %5827  ;;  %v2630_v51 = vmul.f32 %v2611_v12, %v7314_v10  ;;  %v2857_v62 = vadd.f32 %v7491_v59, %v2838_v45  ;;  %4221 = vmatpush.bf16.msra.mxu1 %v5605_v63 }
 0x5ce   : > { %v2761_v48 = vmul.f32 %v5828_v29, %v2645_v31  ;;  %v2754_v58 = vsub.f32 1.5, %v2753_v7  ;;  %vm2767_vm1 = vweird.f32 %v5828_v29  ;;  %v5612_v31 = vld [vmem:[%s6915_s23 + $0xe8] sm:$0xff] }
 0x5cf   : > { %v7577_v53 = vadd.f32 1e-12, %v2630_v51  ;;  %v2868_v44 = vpack.c.bf16 %v2857_v62, %v7583_v11  ;;  %vm7596_vm5 = vmor %vm2766_vm4, %vm2767_vm1  ;;  %4263 = vmatpush.bf16.msra.mxu2 %v5612_v31  ;;  %v3132_v62 = vpop.f32.mrf.mxu0 }
 0x5d0   : > { %v2762_v56 = vmul.f32 %v5828_v29, %v2761_v48  ;;  %v2755_v3 = vmul.f32 %v5826_v24, %v2754_v58  ;;  %v2904_v58 = vld [vmem:[%s1240_s28] sm:$0xf] }
 0x5d1   : > { %5829 = vrsqrt.f32 %v7577_v53  ;;  %3102 = vmatmul.bf16.gmra.mxu3 %v2868_v44  ;;  %3151 = vmatmul.bf16.gmra.mxu0 %v2868_v44  ;;  %vm2776_vm7 = vweird.f32 %v7577_v53 }
 0x5d2   : > { %v2763_v15 = vmul.f32 0.5, %v2762_v56  ;;  %v2613_v41 = vpop.xlane.xlu1 %2612  ;;  %3200 = vmatmul.bf16.gmra.mxu1 %v2868_v44  ;;  %3249 = vmatmul.bf16.gmra.mxu2 %v2868_v44  ;;  %v2759_v42 = vsel %vm7592_vm3, %v5826_v24, %v2755_v3  ;;  %v5604_v24 = vld [vmem:[%s6915_s23 + $0xa8] sm:$0xff] }
 0x5d3   : > { %v2631_v30 = vmul.f32 %v2613_v41, %v7314_v10  ;;  %v2820_v28 = vmul.f32 %v2759_v42, %v7504_v22  ;;  %4222 = vmatpush.bf16.msra.mxu1 %v5604_v24  ;;  %v7644_v41 = vperm.slane %v2904_v58, 2 }
 0x5d4   : > { %v2764_v54 = vsub.f32 1.5, %v2763_v15 }
 0x5d5   : > { %v2647_v34 = vadd.f32 1e-12, %v2631_v30  ;;  %v2839_v21 = vmul.f32 %v7478_v60, %v2820_v28  ;;  %v7652_v30 = vperm.slane %v2904_v58, 0 }
 0x5d6   : > { %v2765_v5 = vmul.f32 %v5828_v29, %v2764_v54  ;;  %v7642_v54 = vperm.slane %v2904_v58, 1 }
 0x5d7   : > { %v7586_v1 = vpop.eup %5829  ;;  %5831 = vrsqrt.f32 %v2647_v34  ;;  %vm2786_vm10 = vweird.f32 %v2647_v34  ;;  %8925 = vst [vmem:[#allocation52_spill] sm:$0xff] %v7652_v30 }
 0x5d8   : > { %v2771_v18 = vmul.f32 %v7586_v1, %v7577_v53  ;;  %v2769_v19 = vsel %vm7596_vm5, %v5828_v29, %v2765_v5  ;;  %vm2777_vm6 = vweird.f32 %v7586_v1  ;;  %v7654_v5 = vperm.slane %v2904_v58, 3 }
 0x5d9   : > { %v2821_v46 = vmul.f32 %v2769_v19, %v7513_v38  ;;  %v7623_v38 = vadd.f32 %v7491_v59, %v2839_v21  ;;  %vm2778_vm8 = vmor %vm2776_vm7, %vm2777_vm6 }
 0x5da   : > { %v2772_v17 = vmul.f32 %v7586_v1, %v2771_v18  ;;  %8926 = vst [vmem:[#allocation53_spill] sm:$0xff] %v7654_v5 }
 0x5db   : > { %v2840_v25 = vmul.f32 %v7478_v60, %v2821_v46  ;;  %8922 = vst [vmem:[#allocation50_spill] sm:$0xff] %v7623_v38 }
 0x5dc   : > { %v2773_v52 = vmul.f32 0.5, %v2772_v17 }
 0x5dd   : > { %v5832_v33 = vpop.eup %5831  ;;  %v2859_v36 = vadd.f32 %v7491_v59, %v2840_v25 }
 0x5de   : > { %v2774_v16 = vsub.f32 1.5, %v2773_v52  ;;  %v2781_v13 = vmul.f32 %v5832_v33, %v2647_v34  ;;  %vm2787_vm9 = vweird.f32 %v5832_v33 }
 0x5df   : > { %v2869_v12 = vpack.c.bf16 %v2859_v36, %v7623_v38  ;;  %vm2788_vm11 = vmor %vm2786_vm10, %vm2787_vm9 }
 0x5e0   : > { %v2775_v29 = vmul.f32 %v7586_v1, %v2774_v16  ;;  %v2782_v22 = vmul.f32 %v5832_v33, %v2781_v13 }
 0x5e1   : > { %3107 = vmatmul.bf16.gmra.mxu3 %v2869_v12  ;;  %3156 = vmatmul.bf16.gmra.mxu0 %v2869_v12 }
 0x5e2   : > { %v2783_v32 = vmul.f32 0.5, %v2782_v22  ;;  %v2779_v35 = vsel %vm2778_vm8, %v7586_v1, %v2775_v29  ;;  %3205 = vmatmul.bf16.gmra.mxu1 %v2869_v12  ;;  %3254 = vmatmul.bf16.gmra.mxu2 %v2869_v12  ;;  %v3134_v1 = vpop.f32.mrf.mxu0 }
 0x5e3   : > { %v2822_v55 = vmul.f32 %v2779_v35, %v7522_v2  ;;  %v3181_v2 = vpop.f32.mrf.mxu1  ;;  %v3135_v26 = vadd.f32 %v3134_v1, %v7642_v54 }
 0x5e4   : > { %v2784_v48 = vsub.f32 1.5, %v2783_v32  ;;  %v7650_v18 = vadd.f32 %v3181_v2, %v7644_v41 }
 0x5e5   : > { %v2841_v53 = vmul.f32 %v7478_v60, %v2822_v55  ;;  %v3339_v36 = vmul.f32 0.044715, %v3135_v26 }
 0x5e6   : > { %v2785_v51 = vmul.f32 %v5832_v33, %v2784_v48  ;;  %v3336_v34 = vmul.f32 0.044715, %v7650_v18 }
 0x5e7   : > { %v7636_v15 = vadd.f32 %v7491_v59, %v2841_v53 }
 0x5e8   : > { %v2789_v56 = vsel %vm2788_vm11, %v5832_v33, %v2785_v51  ;;  %v3400_v43 = vmul.f32 %v3336_v34, %v7650_v18  ;;  %v2615_v33 = vpop.xlane.xlu2 %2614 }
 0x5e9   : > { %v2823_v45 = vmul.f32 %v2789_v56, %v7534_v14  ;;  %8923 = vst [vmem:[#allocation51_spill] sm:$0xff] %v7636_v15  ;;  %v3083_v14 = vpop.f32.mrf.mxu3  ;;  %v2632_v32 = vmul.f32 %v2615_v33, %v7314_v10 }
 0x5ea   : > { %v3084_v9 = vadd.f32 %v3083_v14, %v7652_v30  ;;  %v3137_v52 = vpop.f32.mrf.mxu0  ;;  %v3464_v50 = vmul.f32 %v3400_v43, %v7650_v18 }
 0x5eb   : > { %v2842_v39 = vmul.f32 %v7478_v60, %v2823_v45  ;;  %v3230_v60 = vpop.f32.mrf.mxu2  ;;  %v3183_v3 = vpop.f32.mrf.mxu1 }
 0x5ec   : > { %v7660_v0 = vadd.f32 %v3230_v60, %v7654_v5  ;;  %v3334_v42 = vmul.f32 0.044715, %v3084_v9  ;;  %v3184_v13 = vadd.f32 %v3183_v3, %v7644_v41  ;;  %v3528_v24 = vadd.f32 %v3464_v50, %v7650_v18 }
 0x5ed   : > { %v2861_v7 = vadd.f32 %v7491_v59, %v2842_v39  ;;  %v7647_v59 = vadd.f32 %v3132_v62, %v7642_v54  ;;  %v7690_v62 = vadd.f32 1e-12, %v2632_v32  ;;  %v7703_v50 = vmul.f32 0.5, %v7650_v18 }
 0x5ee   : > { %v3337_v19 = vmul.f32 0.044715, %v7660_v0  ;;  %v3398_v63 = vmul.f32 %v3334_v42, %v3084_v9  ;;  %v3340_v35 = vmul.f32 0.044715, %v3184_v13  ;;  %v3592_v51 = vmul.f32 0.7978846, %v3528_v24 }
 0x5ef   : > { %v2870_v44 = vpack.c.bf16 %v2861_v7, %v7636_v15  ;;  %v3335_v47 = vmul.f32 0.044715, %v7647_v59  ;;  %v3403_v7 = vmul.f32 %v3339_v36, %v3135_v26  ;;  %v7707_v33 = vmul.f32 0.5, %v3084_v9 }
 0x5f0   : > { %v3401_v16 = vmul.f32 %v3337_v19, %v7660_v0  ;;  %v3462_v21 = vmul.f32 %v3398_v63, %v3084_v9  ;;  %v7710_v24 = vadd.f32 %v3137_v52, %v7642_v54  ;;  %v7719_v36 = vmul.f32 0.5, %v7660_v0 }
 0x5f1   : > { %3112 = vmatmul.bf16.gmra.mxu3 %v2870_v44  ;;  %3161 = vmatmul.bf16.gmra.mxu0 %v2870_v44  ;;  %v3085_v17 = vpop.f32.mrf.mxu3  ;;  %v3399_v37 = vmul.f32 %v3335_v47, %v7647_v59  ;;  %v3467_v3 = vmul.f32 %v3403_v7, %v3135_v26  ;;  %v7721_v18 = vmul.f32 0.5, %v3135_v26  ;;  %v7725_v52 = vmul.f32 0.5, %v3184_v13 }
 0x5f2   : > { %3210 = vmatmul.bf16.gmra.mxu1 %v2870_v44  ;;  %3259 = vmatmul.bf16.gmra.mxu2 %v2870_v44  ;;  %v7668_v28 = vadd.f32 %v3085_v17, %v7652_v30  ;;  %v3465_v22 = vmul.f32 %v3401_v16, %v7660_v0  ;;  %v7683_v48 = vpop.f32.mrf.mxu0  ;;  %v3526_v55 = vadd.f32 %v3462_v21, %v3084_v9  ;;  %vm2796_vm12 = vweird.f32 %v7690_v62 }
 0x5f3   : > { %v3232_v49 = vpop.f32.mrf.mxu2  ;;  %v3186_v57 = vpop.f32.mrf.mxu1  ;;  %v3463_v23 = vmul.f32 %v3399_v37, %v7647_v59  ;;  %v3404_v44 = vmul.f32 %v3340_v35, %v3184_v13  ;;  %v3531_v43 = vadd.f32 %v3467_v3, %v3135_v26  ;;  %v5603_v35 = vld [vmem:[%s6915_s23 + $0xa0] sm:$0xff] }
 0x5f4   : > { %v3338_v25 = vmul.f32 0.044715, %v7668_v28  ;;  %v7679_v29 = vadd.f32 %v3232_v49, %v7654_v5  ;;  %v3529_v39 = vadd.f32 %v3465_v22, %v7660_v0  ;;  %v3590_v58 = vmul.f32 0.7978846, %v3526_v55  ;;  %v5595_v22 = vld [vmem:[%s6915_s23 + $0x60] sm:$0xff]  ;;  %v5586_v0 = vld [vmem:[%s6915_s23 + $0x18] sm:$0xff]  ;;  %4223 = vmatpush.bf16.msra.mxu1 %v5603_v35 }
 0x5f5   : > { %v3527_v31 = vadd.f32 %v3463_v23, %v7647_v59  ;;  %v3468_v47 = vmul.f32 %v3404_v44, %v3184_v13  ;;  %v7700_v23 = vmul.f32 0.5, %v7647_v59  ;;  %v7713_v21 = vadd.f32 %v3186_v57, %v7644_v41  ;;  %v5611_v59 = vld [vmem:[%s6915_s23 + $0xe0] sm:$0xff]  ;;  %4182 = vmatpush.bf16.msrb.mxu0 %v5595_v22  ;;  %v5602_v35 = vld [vmem:[%s6915_s23 + $0x98] sm:$0xff] }
 0x5f6   : > { %v3402_v56 = vmul.f32 %v3338_v25, %v7668_v28  ;;  %v3341_v45 = vmul.f32 0.044715, %v7679_v29  ;;  %v3593_v1 = vmul.f32 0.7978846, %v3529_v39  ;;  %v5587_v25 = vld [vmem:[%s6915_s23 + $0x20] sm:$0xff]  ;;  %4264 = vmatpush.bf16.msra.mxu2 %v5611_v59  ;;  %v7740_v39 = vmul.f32 0.5, %v7668_v28 }
 0x5f7   : > { %v3591_v12 = vmul.f32 0.7978846, %v3527_v31  ;;  %v3532_v31 = vadd.f32 %v3468_v47, %v3184_v13  ;;  %4141 = vmatpush.bf16.msrb.mxu3 %v5587_v25  ;;  %v3344_v44 = vmul.f32 0.044715, %v7713_v21 }
 0x5f8   : > { %v3466_v14 = vmul.f32 %v3402_v56, %v7668_v28  ;;  %v3405_v60 = vmul.f32 %v3341_v45, %v7679_v29  ;;  %4224 = vmatpush.bf16.msra.mxu1 %v5602_v35 }
 0x5f9   : > { %v7670_v46 = vpop.f32.mrf.mxu3  ;;  %5833 = vtanh.f32 %v3591_v12  ;;  %v3596_v7 = vmul.f32 0.7978846, %v3532_v31 }
 0x5fa   : > { %5835 = vtanh.f32 %v3592_v51  ;;  %v3530_v34 = vadd.f32 %v3466_v14, %v7668_v28  ;;  %v3469_v49 = vmul.f32 %v3405_v60, %v7679_v29  ;;  %v3142_v42 = vpop.f32.mrf.mxu0  ;;  %v3595_v51 = vmul.f32 0.7978846, %v3531_v43 }
 0x5fb   : > { %v3235_v8 = vpop.f32.mrf.mxu2  ;;  %v7687_v53 = vpop.f32.mrf.mxu1  ;;  %5837 = vrsqrt.f32 %v7690_v62  ;;  %v7729_v57 = vadd.f32 %v7670_v46, %v7652_v30  ;;  %v7747_v14 = vmul.f32 0.5, %v7679_v29  ;;  %v7751_v28 = vadd.f32 %v7683_v48, %v7642_v54  ;;  %4142 = vmatpush.bf16.msrb.mxu3 %v5586_v0 }
 0x5fc   : > { %5839 = vtanh.f32 %v3590_v58  ;;  %v3594_v32 = vmul.f32 0.7978846, %v3530_v34  ;;  %v3533_v9 = vadd.f32 %v3469_v49, %v7679_v29  ;;  %v7732_v55 = vadd.f32 %v3235_v8, %v7654_v5 }
 0x5fd   : > { %5841 = vtanh.f32 %v3593_v1  ;;  %v3343_v8 = vmul.f32 0.044715, %v7710_v24  ;;  %v3342_v3 = vmul.f32 0.044715, %v7729_v57  ;;  %v7762_v49 = vadd.f32 %v7687_v53, %v7644_v41 }
 0x5fe   : > { %5843 = vtanh.f32 %v3594_v32  ;;  %v3597_v60 = vmul.f32 0.7978846, %v3533_v9  ;;  %v3345_v47 = vmul.f32 0.044715, %v7732_v55  ;;  %v7772_v43 = vmul.f32 %v3344_v44, %v7713_v21  ;;  %v5610_v32 = vld [vmem:[%s6915_s23 + $0xd8] sm:$0xff] }
 0x5ff   : > { %v5834_v37 = vpop.eup %5833  ;;  %5845 = vtanh.f32 %v3595_v51  ;;  %v3347_v25 = vmul.f32 0.044715, %v7751_v28  ;;  %v7779_v53 = vadd.f32 %v3142_v42, %v7642_v54  ;;  %v5594_v9 = vld [vmem:[%s6915_s23 + $0x58] sm:$0xff]  ;;  %v3406_v51 = vmul.f32 %v3342_v3, %v7729_v57  ;;  %4265 = vmatpush.bf16.msra.mxu2 %v5610_v32 }
 0x600   : > { %v5836_v19 = vpop.eup %5835  ;;  %v7735_v56 = vadd.f32 1.0, %v5834_v37  ;;  %5847 = vtanh.f32 %v3596_v7  ;;  %v7769_v37 = vmul.f32 %v3343_v8, %v7710_v24  ;;  %4183 = vmatpush.bf16.msrb.mxu0 %v5594_v9 }
 0x601   : > { %v7692_v2 = vpop.f32.mrf.mxu3  ;;  %v7705_v16 = vpop.eup %5837  ;;  %v7737_v45 = vadd.f32 1.0, %v5836_v19  ;;  %5849 = vtanh.f32 %v3597_v60  ;;  %v3470_v4 = vmul.f32 %v3406_v51, %v7729_v57 }
 0x602   : > { %v5840_v26 = vpop.eup %5839  ;;  %v2791_v13 = vmul.f32 %v7705_v16, %v7690_v62  ;;  %v7766_v48 = vadd.f32 %v7692_v2, %v7652_v30  ;;  %v3144_v31 = vpop.f32.mrf.mxu0  ;;  %vm2797_vm13 = vweird.f32 %v7705_v16 }
 0x603   : > { %v3237_v17 = vpop.f32.mrf.mxu2  ;;  %v3191_v63 = vpop.f32.mrf.mxu1  ;;  %v7753_v1 = vadd.f32 1.0, %v5840_v26  ;;  %vm7875_vm14 = vmor %vm2796_vm12, %vm2797_vm13 }
 0x604   : > { %v5842_v46 = vpop.eup %5841  ;;  %v2792_v29 = vmul.f32 %v7705_v16, %v2791_v13  ;;  %v7775_v19 = vadd.f32 %v3237_v17, %v7654_v5  ;;  %v7782_v2 = vadd.f32 %v3191_v63, %v7644_v41  ;;  %v7789_v17 = vmul.f32 %v3345_v47, %v7732_v55 }
 0x605   : > { %v7757_v34 = vadd.f32 1.0, %v5842_v46  ;;  %v5844_v42 = vpop.eup %5843  ;;  %v3348_v63 = vmul.f32 0.044715, %v7762_v49  ;;  %v3346_v46 = vmul.f32 0.044715, %v7766_v48 }
 0x606   : > { %v2793_v13 = vmul.f32 0.5, %v2792_v29  ;;  %v5846_v44 = vpop.eup %5845  ;;  %v3349_v60 = vmul.f32 0.044715, %v7775_v19  ;;  %v3351_v29 = vmul.f32 0.044715, %v7779_v53 }
 0x607   : > { %v5848_v32 = vpop.eup %5847  ;;  %v3410_v15 = vmul.f32 %v3346_v46, %v7766_v48  ;;  %v3723_v38 = vadd.f32 1.0, %v5846_v44  ;;  %v3412_v11 = vmul.f32 %v3348_v63, %v7762_v49 }
 0x608   : > { %v2794_v35 = vsub.f32 1.5, %v2793_v13  ;;  %v7822_v6 = vmul.f32 %v3349_v60, %v7775_v19 }
 0x609   : > { %v3093_v12 = vpop.f32.mrf.mxu3 }
 0x60a   : > { %v7792_v0 = vadd.f32 %v3093_v12, %v7652_v30  ;;  %v7802_v12 = vadd.f32 %v3144_v31, %v7642_v54  ;;  %v2795_v20 = vmul.f32 %v7705_v16, %v2794_v35 }
 0x60b   : > { %v3240_v58 = vpop.f32.mrf.mxu2  ;;  %v3193_v59 = vpop.f32.mrf.mxu1 }
 0x60c   : > { %v7798_v7 = vadd.f32 %v3240_v58, %v7654_v5  ;;  %v7805_v3 = vadd.f32 %v3193_v59, %v7644_v41  ;;  %v3411_v58 = vmul.f32 %v3347_v25, %v7751_v28  ;;  %v3350_v9 = vmul.f32 0.044715, %v7792_v0 }
 0x60d   : > { %v3722_v59 = vadd.f32 1.0, %v5844_v42  ;;  %v3355_v27 = vmul.f32 0.044715, %v7802_v12  ;;  %v7828_v42 = vmul.f32 %v3351_v29, %v7779_v53 }
 0x60e   : > { %v3353_v25 = vmul.f32 0.044715, %v7798_v7  ;;  %v7837_v63 = vmul.f32 %v3350_v9, %v7792_v0  ;;  %v3475_v51 = vmul.f32 %v3411_v58, %v7751_v28  ;;  %v3724_v58 = vadd.f32 1.0, %v5848_v32 }
 0x60f   : > { %v7841_v60 = vmul.f32 %v3722_v59, %v7740_v39  ;;  %v7853_v9 = vmul.f32 %v3355_v27, %v7802_v12  ;;  %v7860_v39 = vmul.f32 %v7753_v1, %v7707_v33  ;;  %v3471_v27 = vmul.f32 %v7769_v37, %v7710_v24  ;;  %v5585_v33 = vld [vmem:[%s6915_s23 + $0x10] sm:$0xff] }
 0x610   : > { %v7846_v29 = vmul.f32 %v3353_v25, %v7798_v7  ;;  %v7891_v25 = vmul.f32 %v7737_v45, %v7703_v50  ;;  %v3539_v32 = vadd.f32 %v3475_v51, %v7751_v28  ;;  %v5593_v50 = vld [vmem:[%s6915_s23 + $0x50] sm:$0xff]  ;;  %v7910_v51 = vmul.f32 %v7757_v34, %v7719_v36  ;;  %4143 = vmatpush.bf16.msrb.mxu3 %v5585_v33 }
 0x611   : > { %v3095_v8 = vpop.f32.mrf.mxu3  ;;  %v3846_v1 = vpack.c.bf16 %v7841_v60, %v7860_v39  ;;  %v5601_v45 = vld [vmem:[%s6915_s23 + $0x90] sm:$0xff]  ;;  %4184 = vmatpush.bf16.msrb.mxu0 %v5593_v50  ;;  %v5608_v50 = vld [vmem:[%s6915_s23 + $0xc8] sm:$0xff] }
 0x612   : > { %v7815_v31 = vadd.f32 %v3095_v8, %v7652_v30  ;;  %v3356_v8 = vmul.f32 0.044715, %v7805_v3  ;;  %4225 = vmatpush.bf16.msra.mxu1 %v5601_v45  ;;  %v3483_v45 = vmul.f32 %v7853_v9, %v7802_v12  ;;  %v3283_v9 = vmul.f32 0.5, %v7751_v28 }
 0x613   : > { %v7972_v28 = vmul.f32 0.5, %v7762_v49 }
 0x614   : > { %v3354_v44 = vmul.f32 0.044715, %v7815_v31  ;;  %v7856_v30 = vmul.f32 %v3356_v8, %v7805_v3 }
 0x62c   : > { %v2617_v22 = vpop.xlane.xlu0 %2616 }
 0x62d   : > { %v2633_v26 = vmul.f32 %v2617_v22, %v7314_v10  ;;  %v3352_v22 = vmul.f32 0.044715, %v7782_v2  ;;  %v3242_v10 = vpop.f32.mrf.mxu2 }
 0x62e   : > { %v7834_v46 = vadd.f32 %v3242_v10, %v7654_v5  ;;  %v3474_v10 = vmul.f32 %v3410_v15, %v7766_v48  ;;  %v7867_v15 = vmul.f32 %v7735_v56, %v7700_v23  ;;  %v3534_v23 = vadd.f32 %v3470_v4, %v7729_v57 }
 0x62f   : > { %v7807_v47 = vadd.f32 1e-12, %v2633_v26  ;;  %v5850_v26 = vpop.eup %5849  ;;  %v7831_v13 = vmul.f32 %v3352_v22, %v7782_v2  ;;  %v7849_v22 = vmul.f32 %v3723_v38, %v7721_v18  ;;  %v3418_v18 = vmul.f32 %v3354_v44, %v7815_v31 }
 0x630   : > { %v3357_v59 = vmul.f32 0.044715, %v7834_v46  ;;  %v2799_v56 = vsel %vm7875_vm14, %v7705_v16, %v2795_v20  ;;  %v3538_v35 = vadd.f32 %v3474_v10, %v7766_v48  ;;  %v3725_v8 = vadd.f32 1.0, %v5850_v26 }
 0x631   : > { %5851 = vrsqrt.f32 %v7807_v47  ;;  %v3847_v37 = vpack.c.bf16 %v7849_v22, %v7867_v15  ;;  %v3472_v4 = vmul.f32 %v7772_v43, %v7713_v21  ;;  %v3535_v16 = vadd.f32 %v3471_v27, %v7710_v24 }
 0x632   : > { %v7897_v44 = vmul.f32 %v3357_v59, %v7834_v46  ;;  %v2824_v10 = vmul.f32 %v2799_v56, %v7543_v40  ;;  %v7906_v26 = vmul.f32 %v3724_v58, %v7725_v52  ;;  %v3598_v43 = vmul.f32 0.7978846, %v3534_v23 }
 0x633   : > { %v3602_v27 = vmul.f32 0.7978846, %v3538_v35  ;;  %v7916_v40 = vmul.f32 %v3725_v8, %v7747_v14  ;;  %v7919_v52 = vmul.f32 0.5, %v7729_v57  ;;  %v3603_v58 = vmul.f32 0.7978846, %v3539_v32 }
 0x634   : > { %v3536_v36 = vadd.f32 %v3472_v4, %v7713_v21  ;;  %vm2806_vm0 = vweird.f32 %v7807_v47  ;;  %v3599_v23 = vmul.f32 0.7978846, %v3535_v16  ;;  %v5997_v14 = vld [vmem:[%s1045_s19] ss:$0 sm:$0xff]  ;;  %v3848_v56 = vpack.c.bf16 %v7906_v26, %v7891_v25 }
 0x635   : > { %v2843_v57 = vmul.f32 %v5997_v14, %v2824_v10  ;;  %5853 = vtanh.f32 %v3598_v43  ;;  %v3478_v32 = vmul.f32 %v7837_v63, %v7792_v0  ;;  %v5584_v16 = vld [vmem:[%s6915_s23 + $0x8] sm:$0xff]  ;;  %v7945_v63 = vmul.f32 0.5, %v7766_v48 }
 0x636   : > { %5855 = vtanh.f32 %v3602_v27  ;;  %v5600_v10 = vld [vmem:[%s6915_s23 + $0x88] sm:$0xff]  ;;  %v3600_v33 = vmul.f32 0.7978846, %v3536_v36  ;;  %4144 = vmatpush.bf16.msrb.mxu3 %v5584_v16  ;;  %v7954_v27 = vmul.f32 0.5, %v7710_v24  ;;  %v7969_v16 = vmul.f32 0.5, %v7713_v21 }
 0x637   : > { %v5852_v5 = vpop.eup %5851  ;;  %5857 = vtanh.f32 %v3603_v58  ;;  %4226 = vmatpush.bf16.msra.mxu1 %v5600_v10  ;;  %v5607_v58 = vld [vmem:[%s6915_s23 + $0xc0] sm:$0xff]  ;;  %v3480_v21 = vmul.f32 %v7831_v13, %v7782_v2  ;;  %v3484_v13 = vmul.f32 %v7856_v30, %v7805_v3  ;;  %v8002_v30 = vmul.f32 0.5, %v7802_v12 }
 0x638   : > { %v2801_v38 = vmul.f32 %v5852_v5, %v7807_v47  ;;  %vm2807_vm15 = vweird.f32 %v5852_v5  ;;  %v3477_v47 = vmul.f32 %v7822_v6, %v7775_v19  ;;  %v3482_v6 = vmul.f32 %v3418_v18, %v7815_v31 }
 0x639   : > { %vm2808_vm1 = vmor %vm2806_vm0, %vm2807_vm15  ;;  %5859 = vtanh.f32 %v3599_v23  ;;  %v3479_v23 = vmul.f32 %v7828_v42, %v7779_v53  ;;  %v8931_v60 = vpack.c.bf16 %v7916_v40, %v7910_v51 }
 0x63a   : > { %v2802_v62 = vmul.f32 %v5852_v5, %v2801_v38  ;;  %v3476_v38 = vmul.f32 %v3412_v11, %v7762_v49  ;;  %v3473_v11 = vmul.f32 %v7789_v17, %v7732_v55  ;;  %v3541_v48 = vadd.f32 %v3477_v47, %v7775_v19 }
 0x63b   : > { %5861 = vtanh.f32 %v3600_v33  ;;  %v3546_v47 = vadd.f32 %v3482_v6, %v7815_v31  ;;  %v7986_v6 = vmul.f32 0.5, %v7775_v19  ;;  %v7995_v19 = vmul.f32 0.5, %v7815_v31 }
 0x63c   : > { %v2803_v20 = vmul.f32 0.5, %v2802_v62  ;;  %v5609_v62 = vld [vmem:[%s6915_s23 + $0xd0] sm:$0xff]  ;;  %v3540_v17 = vadd.f32 %v3476_v38, %v7762_v49  ;;  %v3537_v8 = vadd.f32 %v3473_v11, %v7732_v55  ;;  %v5592_v38 = vld [vmem:[%s6915_s23 + $0x48] sm:$0xff]  ;;  %v5599_v11 = vld [vmem:[%s6915_s23 + $0x80] sm:$0xff]  ;;  %v3605_v10 = vmul.f32 0.7978846, %v3541_v48 }
 0x63d   : > { %4266 = vmatpush.bf16.msra.mxu2 %v5609_v62  ;;  %4185 = vmatpush.bf16.msrb.mxu0 %v5592_v38  ;;  %v5591_v62 = vld [vmem:[%s6915_s23 + $0x40] sm:$0xff]  ;;  %v7979_v38 = vmul.f32 0.5, %v7732_v55  ;;  %v3485_v31 = vmul.f32 %v7897_v44, %v7834_v46 }
 0x63e   : > { %v2804_v59 = vsub.f32 1.5, %v2803_v20  ;;  %v7935_v20 = vpop.f32.mrf.mxu0  ;;  %v3601_v36 = vmul.f32 0.7978846, %v3537_v8  ;;  %v3547_v8 = vadd.f32 %v3483_v45, %v7802_v12  ;;  %4227 = vmatpush.bf16.msra.mxu1 %v5599_v11  ;;  %v7990_v45 = vmul.f32 0.5, %v7792_v0 }
 0x63f   : > { %v8020_v44 = vadd.f32 %v7935_v20, %v7642_v54 }
 0x640   : > { %v2805_v34 = vmul.f32 %v5852_v5, %v2804_v59  ;;  %v5583_v59 = vld [vmem:[%s6915_s23] sm:$0xff]  ;;  %v3611_v48 = vmul.f32 0.7978846, %v3547_v8 }
 0x641   : > { %4267 = vmatpush.bf16.msra.mxu2 %v5608_v50  ;;  %4145 = vmatpush.bf16.msrb.mxu3 %v5583_v59 }
 0x642   : > { %v2809_v35 = vsel %vm2808_vm1, %v5852_v5, %v2805_v34  ;;  %v7941_v5 = vpop.f32.mrf.mxu1  ;;  %v3542_v34 = vadd.f32 %v3478_v32, %v7792_v0  ;;  %4186 = vmatpush.bf16.msrb.mxu0 %v5591_v62  ;;  %v3544_v0 = vadd.f32 %v3480_v21, %v7782_v2 }
 0x643   : > { %v2825_v4 = vmul.f32 %v2809_v35, %v7559_v61  ;;  %v3604_v61 = vmul.f32 0.7978846, %v3540_v17  ;;  %v5854_v17 = vpop.eup %5853 }
 0x644   : > { %v7975_v32 = vpop.f32.mrf.mxu3  ;;  %v3606_v50 = vmul.f32 0.7978846, %v3542_v34  ;;  %v3726_v55 = vadd.f32 1.0, %v5854_v17  ;;  %v7998_v34 = vmul.f32 0.5, %v7779_v53 }
 0x645   : > { %v2844_v43 = vmul.f32 %v5997_v14, %v2825_v4  ;;  %v5998_v14 = vld [vmem:[%s1054_s13] ss:$0 sm:$0xff]  ;;  %v5856_v4 = vpop.eup %5855  ;;  %5863 = vtanh.f32 %v3604_v61  ;;  %v7983_v49 = vpop.f32.mrf.mxu2  ;;  %4268 = vmatpush.bf16.msra.mxu2 %v5607_v58  ;;  %v3543_v61 = vadd.f32 %v3479_v23, %v7779_v53  ;;  %v3548_v53 = vadd.f32 %v3484_v13, %v7805_v3  ;;  %s8932_s13 = sld [smem:[#allocation68_spill]] }
 0x646   : > { %v7965_v35 = vadd.f32 %v5998_v14, %v2843_v57  ;;  %v5858_v42 = vpop.eup %5857  ;;  %5865 = vtanh.f32 %v3601_v36  ;;  %v3730_v59 = vadd.f32 1.0, %v5856_v4  ;;  %v3149_v58 = vpop.f32.mrf.mxu0 }
 0x647   : > { %v2863_v24 = vadd.f32 %v5998_v14, %v2844_v43  ;;  %v5860_v33 = vpop.eup %5859  ;;  %v3610_v43 = vmul.f32 0.7978846, %v3546_v47  ;;  %v3731_v62 = vadd.f32 1.0, %v5858_v42  ;;  %5867 = vtanh.f32 %v3605_v10 }
 0x648   : > { %v5862_v11 = vpop.eup %5861  ;;  %v3727_v36 = vadd.f32 1.0, %v5860_v33  ;;  %5869 = vtanh.f32 %v3606_v50  ;;  %v3607_v14 = vmul.f32 0.7978846, %v3543_v61  ;;  %v8010_v47 = vmul.f32 0.5, %v7782_v2 }
 0x649   : > { %v2871_v57 = vpack.c.bf16 %v2863_v24, %v7965_v35  ;;  %v8007_v24 = vmul.f32 %v3726_v55, %v7919_v52  ;;  %5871 = vtanh.f32 %v3610_v43  ;;  %v8014_v8 = vmul.f32 %v3730_v59, %v7945_v63  ;;  %v8929_v43 = vld [vmem:[#allocation52_spill] sm:$0xff] }
 0x64a   : > { %v3198_v17 = vpop.f32.mrf.mxu1  ;;  %v8016_v42 = vmul.f32 %v3731_v62, %v3283_v9  ;;  %v3728_v12 = vadd.f32 1.0, %v5862_v11  ;;  %5873 = vtanh.f32 %v3611_v48  ;;  %v8023_v52 = vmul.f32 %v3727_v36, %v7954_v27 }
 0x64b   : > { %3117 = vmatmul.bf16.gmra.mxu3 %v2871_v57  ;;  %3166 = vmatmul.bf16.gmra.mxu0 %v2871_v57  ;;  %v5864_v23 = vpop.eup %5863  ;;  %v3608_v2 = vmul.f32 0.7978846, %v3544_v0  ;;  %v8027_v10 = vadd.f32 %v7941_v5, %v7644_v41  ;;  %5875 = vtanh.f32 %v3607_v14  ;;  %v3481_v63 = vmul.f32 %v7846_v29, %v7798_v7  ;;  %v8930_v0 = vld [vmem:[#allocation53_spill] sm:$0xff]  ;;  %s1243_s20 = scalar_lea.vmem %s8932_s13, %s6937_s5 }
 0x64c   : > { %3215 = vmatmul.bf16.gmra.mxu1 %v2871_v57  ;;  %3264 = vmatmul.bf16.gmra.mxu2 %v2871_v57  ;;  %v5866_v4 = vpop.eup %5865  ;;  %v3732_v57 = vadd.f32 1.0, %v5864_v23  ;;  %v3549_v9 = vadd.f32 %v3485_v31, %v7834_v46  ;;  %v8033_v33 = vadd.f32 %v3149_v58, %v7642_v54  ;;  %v3100_v20 = vpop.f32.mrf.mxu3  ;;  %v8036_v27 = vmul.f32 0.5, %v7805_v3 }
 0x64d   : > { %v5868_v21 = vpop.eup %5867  ;;  %v3729_v50 = vadd.f32 1.0, %v5866_v4  ;;  %v3612_v61 = vmul.f32 0.7978846, %v3548_v53  ;;  %v8040_v5 = vadd.f32 %v7975_v32, %v8929_v43  ;;  %v3247_v13 = vpop.f32.mrf.mxu2  ;;  %v8047_v62 = vmul.f32 %v3728_v12, %v7969_v16 }
 0x64e   : > { %v5870_v55 = vpop.eup %5869  ;;  %v3359_v3 = vmul.f32 0.044715, %v8020_v44  ;;  %v8051_v11 = vadd.f32 %v3198_v17, %v7644_v41  ;;  %v8054_v58 = vmul.f32 %v3732_v57, %v7972_v28  ;;  %5877 = vtanh.f32 %v3608_v2  ;;  %v3152_v53 = vpop.f32.mrf.mxu0 }
 0x64f   : > { %v5872_v48 = vpop.eup %5871  ;;  %v3360_v36 = vmul.f32 0.044715, %v8027_v10  ;;  %v8059_v23 = vadd.f32 %v7983_v49, %v8930_v0  ;;  %v3545_v16 = vadd.f32 %v3481_v63, %v7798_v7  ;;  %v3613_v14 = vmul.f32 0.7978846, %v3549_v9 }
 0x650   : > { %v5874_v32 = vpop.eup %5873  ;;  %v3363_v31 = vmul.f32 0.044715, %v8033_v33  ;;  %v3733_v4 = vadd.f32 1.0, %v5868_v21  ;;  %v8064_v17 = vmul.f32 %v3729_v50, %v7979_v38  ;;  %5879 = vtanh.f32 %v3612_v61 }
 0x651   : > { %v5876_v28 = vpop.eup %5875  ;;  %v3358_v12 = vmul.f32 0.044715, %v8040_v5  ;;  %v8068_v57 = vadd.f32 %v3100_v20, %v8929_v43  ;;  %v3738_v49 = vadd.f32 1.0, %v5872_v48  ;;  %v8071_v59 = vmul.f32 0.5, %v7798_v7 }
 0x652   : > { %v3201_v2 = vpop.f32.mrf.mxu1  ;;  %v3423_v63 = vmul.f32 %v3359_v3, %v8020_v44  ;;  %v3364_v9 = vmul.f32 0.044715, %v8051_v11  ;;  %v3734_v21 = vadd.f32 1.0, %v5870_v55  ;;  %v3739_v29 = vadd.f32 1.0, %v5874_v32 }
 0x653   : > { %v3424_v38 = vmul.f32 %v3360_v36, %v8027_v10  ;;  %v3361_v50 = vmul.f32 0.044715, %v8059_v23  ;;  %v3609_v61 = vmul.f32 0.7978846, %v3545_v16  ;;  %5881 = vtanh.f32 %v3613_v14 }
 0x654   : > { %v5878_v20 = vpop.eup %5877  ;;  %v3427_v18 = vmul.f32 %v3363_v31, %v8033_v33  ;;  %v8085_v7 = vmul.f32 %v3733_v4, %v7986_v6  ;;  %v3735_v55 = vadd.f32 1.0, %v5876_v28  ;;  %v3293_v48 = vmul.f32 0.5, %v7834_v46 }
 0x655   : > { %v3422_v3 = vmul.f32 %v3358_v12, %v8040_v5  ;;  %v3362_v32 = vmul.f32 0.044715, %v8068_v57  ;;  %v3852_v22 = vpack.c.bf16 %v8054_v58, %v8047_v62  ;;  %v8099_v39 = vmul.f32 %v3738_v49, %v7995_v19 }
 0x656   : > { %v5880_v46 = vpop.eup %5879  ;;  %v3428_v15 = vmul.f32 %v3364_v9, %v8051_v11  ;;  %v8110_v25 = vmul.f32 %v3739_v29, %v8002_v30  ;;  %v3487_v26 = vmul.f32 %v3423_v63, %v8020_v44  ;;  %v3425_v51 = vmul.f32 %v3361_v50, %v8059_v23  ;;  %v3154_v19 = vpop.f32.mrf.mxu0 }
 0x657   : > { %v8115_v40 = vadd.f32 %v3247_v13, %v8930_v0  ;;  %5883 = vtanh.f32 %v3609_v61  ;;  %v3488_v6 = vmul.f32 %v3424_v38, %v8027_v10  ;;  %v8123_v36 = vmul.f32 %v3735_v55, %v7998_v34 }
 0x658   : > { %v3736_v30 = vadd.f32 1.0, %v5878_v20  ;;  %v3491_v29 = vmul.f32 %v3427_v18, %v8033_v33  ;;  %v3426_v14 = vmul.f32 %v3362_v32, %v8068_v57  ;;  %v3740_v4 = vadd.f32 1.0, %v5880_v46 }
 0x659   : > { %v5882_v16 = vpop.eup %5881  ;;  %v3486_v28 = vmul.f32 %v3422_v3, %v8040_v5  ;;  %v8131_v12 = vadd.f32 %v3154_v19, %v7642_v54  ;;  %v3855_v34 = vpack.c.bf16 %v8110_v25, %v8123_v36  ;;  %v3492_v18 = vmul.f32 %v3428_v15, %v8051_v11 }
 0x65a   : > { %v3203_v13 = vpop.f32.mrf.mxu1  ;;  %v3365_v49 = vmul.f32 0.044715, %v8115_v40  ;;  %v3552_v9 = vadd.f32 %v3488_v6, %v8027_v10  ;;  %v8144_v38 = vadd.f32 %v3152_v53, %v7642_v54  ;;  %v8147_v50 = vmul.f32 %v3736_v30, %v8010_v47 }
 0x65b   : > { %4146 = vmatmul.bf16.vlgmr.msrb.gmra.mxu3 %v3846_v1  ;;  %4187 = vmatmul.bf16.vlgmr.msrb.gmra.mxu0 %v3847_v37  ;;  %v3103_v1 = vpop.f32.mrf.mxu3  ;;  %v8107_v37 = vmul.f32 %v3734_v21, %v7990_v45  ;;  %v3853_v45 = vpack.c.bf16 %v8085_v7, %v8064_v17  ;;  %v3551_v17 = vadd.f32 %v3487_v26, %v8020_v44  ;;  %v3741_v61 = vadd.f32 1.0, %v5882_v16 }
 0x65c   : > { %4228 = vmatmul.bf16.vlgmr.msra.gmra.mxu1 %v3848_v56  ;;  %4269 = vmatmul.bf16.vlgmr.msra.gmra.mxu2 %v8931_v60  ;;  %v8117_v56 = vpop.f32.mrf.mxu2  ;;  %v8139_v63 = vadd.f32 %v3203_v13, %v7644_v41  ;;  %v3489_v21 = vmul.f32 %v3425_v51, %v8059_v23  ;;  %v3555_v20 = vadd.f32 %v3491_v29, %v8033_v33  ;;  %v3371_v47 = vmul.f32 0.044715, %v8131_v12 }
 0x65d   : > { %v3854_v31 = vpack.c.bf16 %v8099_v39, %v8107_v37  ;;  %v5884_v7 = vpop.eup %5883  ;;  %v8151_v55 = vadd.f32 %v3201_v2, %v7644_v41  ;;  %v8154_v3 = vmul.f32 %v3740_v4, %v8036_v27  ;;  %v3490_v32 = vmul.f32 %v3426_v14, %v8068_v57 }
 0x65e   : > { %v3550_v60 = vadd.f32 %v3486_v28, %v8040_v5  ;;  %v8159_v53 = vadd.f32 %v3103_v1, %v8929_v43  ;;  %v3615_v15 = vmul.f32 0.7978846, %v3551_v17  ;;  %v3556_v26 = vadd.f32 %v3492_v18, %v8051_v11 }
 0x65f   : > { %v3429_v51 = vmul.f32 %v3365_v49, %v8115_v40  ;;  %v3372_v2 = vmul.f32 0.044715, %v8139_v63  ;;  %v3616_v6 = vmul.f32 0.7978846, %v3552_v9  ;;  %v3553_v27 = vadd.f32 %v3489_v21, %v8059_v23 }
 0x660   : > { %v3367_v19 = vmul.f32 0.044715, %v8144_v38  ;;  %v3737_v30 = vadd.f32 1.0, %v5884_v7  ;;  %v8167_v29 = vmul.f32 %v3741_v61, %v3293_v48  ;;  %v3619_v1 = vmul.f32 0.7978846, %v3555_v20 }
 0x661   : > { %v3368_v16 = vmul.f32 0.044715, %v8151_v55  ;;  %v3554_v4 = vadd.f32 %v3490_v32, %v8068_v57  ;;  %v3614_v28 = vmul.f32 0.7978846, %v3550_v60  ;;  %v3366_v17 = vmul.f32 0.044715, %v8159_v53 }
 0x662   : > { %v3435_v18 = vmul.f32 %v3371_v47, %v8131_v12  ;;  %5885 = vtanh.f32 %v3615_v15  ;;  %v3620_v49 = vmul.f32 0.7978846, %v3556_v26  ;;  %v3436_v9 = vmul.f32 %v3372_v2, %v8139_v63 }
 0x663   : > { %v3105_v46 = vpop.f32.mrf.mxu3  ;;  %5887 = vtanh.f32 %v3616_v6  ;;  %v3493_v48 = vmul.f32 %v3429_v51, %v8115_v40  ;;  %v3617_v21 = vmul.f32 0.7978846, %v3553_v27  ;;  %v3431_v61 = vmul.f32 %v3367_v19, %v8144_v38 }
 0x664   : > { %v8171_v14 = vadd.f32 %v3105_v46, %v8929_v43  ;;  %v3252_v13 = vpop.f32.mrf.mxu2  ;;  %v8933_v20 = vpack.c.bf16 %v8014_v8, %v8007_v24  ;;  %v8934_v7 = vpack.c.bf16 %v8016_v42, %v8023_v52  ;;  %v8188_v60 = vmul.f32 %v3737_v30, %v8071_v59  ;;  %v8201_v59 = vpop.f32.mrf.mxu0 }
 0x665   : > { %5889 = vtanh.f32 %v3619_v1  ;;  %v3432_v47 = vmul.f32 %v3368_v16, %v8151_v55  ;;  %v3618_v24 = vmul.f32 0.7978846, %v3554_v4  ;;  %v3430_v8 = vmul.f32 %v3366_v17, %v8159_v53 }
 0x666   : > { %v3370_v46 = vmul.f32 0.044715, %v8171_v14  ;;  %5891 = vtanh.f32 %v3614_v28  ;;  %v8198_v42 = vadd.f32 %v8117_v56, %v8930_v0  ;;  %v3499_v52 = vmul.f32 %v3435_v18, %v8131_v12 }
 0x667   : > { %5893 = vtanh.f32 %v3620_v49  ;;  %v3557_v62 = vadd.f32 %v3493_v48, %v8115_v40  ;;  %v3500_v58 = vmul.f32 %v3436_v9, %v8139_v63  ;;  %v8210_v26 = vmul.f32 0.5, %v8040_v5 }
 0x668   : > { %5895 = vtanh.f32 %v3617_v21  ;;  %v3295_v56 = vmul.f32 0.5, %v8020_v44  ;;  %v3296_v51 = vmul.f32 0.5, %v8027_v10  ;;  %v3495_v2 = vmul.f32 %v3431_v61, %v8144_v38 }
 0x669   : > { %v3434_v27 = vmul.f32 %v3370_v46, %v8171_v14  ;;  %5897 = vtanh.f32 %v3618_v24  ;;  %v3297_v19 = vmul.f32 0.5, %v8059_v23  ;;  %v3496_v30 = vmul.f32 %v3432_v47, %v8151_v55 }
 0x66a   : > { %v3369_v16 = vmul.f32 0.044715, %v8198_v42  ;;  %v8220_v5 = vadd.f32 %v3252_v13, %v8930_v0  ;;  %v3494_v44 = vmul.f32 %v3430_v8, %v8159_v53  ;;  %v3563_v10 = vadd.f32 %v3499_v52, %v8131_v12 }
 0x66b   : > { %4150 = vmatmul.bf16.gmra.mxu3 %v8933_v20  ;;  %4191 = vmatmul.bf16.gmra.mxu0 %v8934_v7  ;;  %v3108_v4 = vpop.f32.mrf.mxu3  ;;  %v3299_v18 = vmul.f32 0.5, %v8033_v33  ;;  %v3621_v23 = vmul.f32 0.7978846, %v3557_v62  ;;  %v3564_v9 = vadd.f32 %v3500_v58, %v8139_v63  ;;  %v3298_v21 = vmul.f32 0.5, %v8068_v57 }
 0x66c   : > { %4232 = vmatmul.bf16.gmra.mxu1 %v3852_v22  ;;  %4273 = vmatmul.bf16.gmra.mxu2 %v3853_v45  ;;  %v5886_v22 = vpop.eup %5885  ;;  %v8207_v45 = vpop.f32.mrf.mxu1  ;;  %v3300_v13 = vmul.f32 0.5, %v8051_v11  ;;  %v3559_v20 = vadd.f32 %v3495_v2, %v8144_v38  ;;  %v8232_v46 = vmul.f32 0.5, %v8115_v40  ;;  %v3498_v24 = vmul.f32 %v3434_v27, %v8171_v14 }
 0x66d   : > { %v5888_v6 = vpop.eup %5887  ;;  %v8224_v17 = vpop.f32.mrf.mxu2  ;;  %v3743_v49 = vadd.f32 1.0, %v5886_v22  ;;  %v3560_v33 = vadd.f32 %v3496_v30, %v8151_v55  ;;  %v3433_v8 = vmul.f32 %v3369_v16, %v8198_v42  ;;  %v3373_v52 = vmul.f32 0.044715, %v8220_v5 }
 0x66e   : > { %v5890_v1 = vpop.eup %5889  ;;  %v3744_v61 = vadd.f32 1.0, %v5888_v6  ;;  %v3558_v57 = vadd.f32 %v3494_v44, %v8159_v53  ;;  %v3627_v62 = vmul.f32 0.7978846, %v3563_v10  ;;  %5899 = vtanh.f32 %v3621_v23  ;;  %v3159_v15 = vpop.f32.mrf.mxu0 }
 0x66f   : > { %v5892_v28 = vpop.eup %5891  ;;  %v3747_v47 = vadd.f32 1.0, %v5890_v1  ;;  %v8239_v58 = vmul.f32 %v3743_v49, %v3295_v56  ;;  %v3628_v2 = vmul.f32 0.7978846, %v3564_v9  ;;  %v3623_v27 = vmul.f32 0.7978846, %v3559_v20 }
 0x670   : > { %v5894_v48 = vpop.eup %5893  ;;  %v3742_v6 = vadd.f32 1.0, %v5892_v28  ;;  %v8241_v40 = vmul.f32 %v3744_v61, %v3296_v51  ;;  %v3562_v16 = vadd.f32 %v3498_v24, %v8171_v14  ;;  %v8247_v32 = vmul.f32 0.5, %v8144_v38 }
 0x671   : > { %v5896_v7 = vpop.eup %5895  ;;  %v3748_v22 = vadd.f32 1.0, %v5894_v48  ;;  %v8243_v30 = vmul.f32 %v3747_v47, %v3299_v18  ;;  %v3624_v44 = vmul.f32 0.7978846, %v3560_v33  ;;  %v3437_v56 = vmul.f32 %v3373_v52, %v8220_v5 }
 0x672   : > { %v5898_v11 = vpop.eup %5897  ;;  %v3745_v1 = vadd.f32 1.0, %v5896_v7  ;;  %v3622_v23 = vmul.f32 0.7978846, %v3558_v57  ;;  %5901 = vtanh.f32 %v3627_v62  ;;  %v3497_v51 = vmul.f32 %v3433_v8, %v8198_v42 }
 0x673   : > { %v3110_v49 = vpop.f32.mrf.mxu3  ;;  %v3746_v9 = vadd.f32 1.0, %v5898_v11  ;;  %v8251_v48 = vmul.f32 %v3748_v22, %v3300_v13  ;;  %v8254_v18 = vmul.f32 0.5, %v8151_v55  ;;  %5903 = vtanh.f32 %v3628_v2 }
 0x674   : > { %v3208_v10 = vpop.f32.mrf.mxu1  ;;  %v8257_v38 = vadd.f32 %v3108_v4, %v8929_v43  ;;  %v8266_v61 = vmul.f32 %v3742_v6, %v8210_v26  ;;  %v8268_v13 = vmul.f32 %v3745_v1, %v3297_v19  ;;  %5905 = vtanh.f32 %v3623_v27  ;;  %v5900_v55 = vpop.eup %5899 }
 0x675   : > { %v3257_v28 = vpop.f32.mrf.mxu2  ;;  %v8272_v20 = vadd.f32 %v8201_v59, %v7642_v54  ;;  %v8935_v4 = vpack.c.bf16 %v8154_v3, %v8147_v50  ;;  %v8936_v39 = vpack.c.bf16 %v8167_v29, %v8188_v60  ;;  %v8281_v37 = vmul.f32 0.5, %v8159_v53 }
 0x676   : > { %v3626_v25 = vmul.f32 0.7978846, %v3562_v16  ;;  %5907 = vtanh.f32 %v3624_v44  ;;  %v3859_v36 = vpack.c.bf16 %v8243_v30, %v8239_v58  ;;  %v8288_v50 = vadd.f32 %v3159_v15, %v7642_v54  ;;  %v3162_v22 = vpop.f32.mrf.mxu0 }
 0x677   : > { %5909 = vtanh.f32 %v3622_v23  ;;  %v8290_v3 = vmul.f32 %v3746_v9, %v3298_v21  ;;  %v3860_v29 = vpack.c.bf16 %v8251_v48, %v8241_v40  ;;  %v3307_v53 = vmul.f32 0.5, %v8131_v12 }
 0x678   : > { %v5902_v60 = vpop.eup %5901  ;;  %v3374_v59 = vmul.f32 0.044715, %v8257_v38  ;;  %v8297_v26 = vadd.f32 %v3110_v49, %v8929_v43  ;;  %v3749_v19 = vadd.f32 1.0, %v5900_v55  ;;  %v3308_v7 = vmul.f32 0.5, %v8139_v63 }
 0x679   : > { %v5904_v47 = vpop.eup %5903  ;;  %v3375_v15 = vmul.f32 0.044715, %v8272_v20  ;;  %v8303_v21 = vadd.f32 %v8207_v45, %v7644_v41  ;;  %v8306_v24 = vadd.f32 %v3208_v10, %v7644_v41  ;;  %5911 = vtanh.f32 %v3626_v25 }
 0x67a   : > { %v5906_v12 = vpop.eup %5905  ;;  %v8309_v33 = vadd.f32 %v3257_v28, %v8930_v0  ;;  %v3306_v52 = vmul.f32 0.5, %v8171_v14  ;;  %v8315_v11 = vadd.f32 %v8224_v17, %v8930_v0  ;;  %v3379_v45 = vmul.f32 0.044715, %v8288_v50 }
 0x67b   : > { %4154 = vmatmul.bf16.gmra.mxu3 %v3854_v31  ;;  %4195 = vmatmul.bf16.gmra.mxu0 %v3855_v34  ;;  %v3501_v31 = vmul.f32 %v3437_v56, %v8220_v5  ;;  %v3561_v34 = vadd.f32 %v3497_v51, %v8198_v42  ;;  %v3113_v8 = vpop.f32.mrf.mxu3  ;;  %v3858_v2 = vpack.c.bf16 %v8290_v3, %v8266_v61  ;;  %v3755_v6 = vadd.f32 1.0, %v5902_v60 }
 0x67c   : > { %4236 = vmatmul.bf16.gmra.mxu1 %v8935_v4  ;;  %4277 = vmatmul.bf16.gmra.mxu2 %v8936_v39  ;;  %v5908_v62 = vpop.eup %5907  ;;  %v3438_v27 = vmul.f32 %v3374_v59, %v8257_v38  ;;  %v3378_v14 = vmul.f32 0.044715, %v8297_v26  ;;  %v3211_v16 = vpop.f32.mrf.mxu1  ;;  %v3813_v44 = vmul.f32 %v3749_v19, %v8232_v46  ;;  %v3756_v56 = vadd.f32 1.0, %v5904_v47 }
 0x67d   : > { %v3565_v63 = vadd.f32 %v3501_v31, %v8220_v5  ;;  %v3625_v57 = vmul.f32 0.7978846, %v3561_v34  ;;  %v5910_v1 = vpop.eup %5909  ;;  %v3439_v10 = vmul.f32 %v3375_v15, %v8272_v20  ;;  %v3376_v17 = vmul.f32 0.044715, %v8303_v21  ;;  %v8326_v23 = vpop.f32.mrf.mxu2 }
 0x67e   : > { %v3380_v49 = vmul.f32 0.044715, %v8306_v24  ;;  %v3751_v51 = vadd.f32 1.0, %v5906_v12  ;;  %v3381_v28 = vmul.f32 0.044715, %v8309_v33  ;;  %v3752_v9 = vadd.f32 1.0, %v5908_v62 }
 0x67f   : > { %v3629_v61 = vmul.f32 0.7978846, %v3565_v63  ;;  %5913 = vtanh.f32 %v3625_v57  ;;  %v5912_v55 = vpop.eup %5911  ;;  %v3377_v4 = vmul.f32 0.044715, %v8315_v11  ;;  %v3443_v46 = vmul.f32 %v3379_v45, %v8288_v50 }
 0x680   : > { %v3750_v39 = vadd.f32 1.0, %v5910_v1  ;;  %v8331_v25 = vmul.f32 %v3755_v6, %v3307_v53  ;;  %v3442_v31 = vmul.f32 %v3378_v14, %v8297_v26  ;;  %v3861_v34 = vpack.c.bf16 %v3813_v44, %v8268_v13 }
 0x681   : > { %v8335_v3 = vmul.f32 %v3756_v56, %v3308_v7  ;;  %v3502_v60 = vmul.f32 %v3438_v27, %v8257_v38  ;;  %v3440_v59 = vmul.f32 %v3376_v17, %v8303_v21  ;;  %v3444_v19 = vmul.f32 %v3380_v49, %v8306_v24 }
 0x682   : > { %v8341_v47 = vmul.f32 %v3751_v51, %v8247_v32  ;;  %v3503_v15 = vmul.f32 %v3439_v10, %v8272_v20  ;;  %v3445_v53 = vmul.f32 %v3381_v28, %v8309_v33  ;;  %v3754_v12 = vadd.f32 1.0, %v5912_v55 }
 0x683   : > { %v8346_v63 = vmul.f32 %v3752_v9, %v8254_v18  ;;  %5915 = vtanh.f32 %v3629_v61  ;;  %v3441_v13 = vmul.f32 %v3377_v4, %v8315_v11  ;;  %v3115_v7 = vpop.f32.mrf.mxu3  ;;  %v8350_v57 = vmul.f32 %v3750_v39, %v8281_v37 }
 0x684   : > { %v3863_v62 = vpack.c.bf16 %v8331_v25, %v8341_v47  ;;  %v3507_v32 = vmul.f32 %v3443_v46, %v8288_v50  ;;  %v3305_v6 = vmul.f32 0.5, %v8198_v42  ;;  %v3506_v1 = vmul.f32 %v3442_v31, %v8297_v26  ;;  %v3213_v30 = vpop.f32.mrf.mxu1 }
 0x685   : > { %v5914_v45 = vpop.eup %5913  ;;  %v3864_v18 = vpack.c.bf16 %v8335_v3, %v8346_v63  ;;  %v3566_v37 = vadd.f32 %v3502_v60, %v8257_v38  ;;  %v8364_v27 = vadd.f32 %v3162_v22, %v7642_v54  ;;  %v8367_v14 = vadd.f32 %v3113_v8, %v8929_v43  ;;  %v3262_v10 = vpop.f32.mrf.mxu2 }
 0x686   : > { %v3309_v58 = vmul.f32 0.5, %v8220_v5  ;;  %v3508_v42 = vmul.f32 %v3444_v19, %v8306_v24  ;;  %v3818_v44 = vmul.f32 %v3754_v12, %v3306_v52  ;;  %v3567_v22 = vadd.f32 %v3503_v15, %v8272_v20 }
 0x687   : > { %v3509_v8 = vmul.f32 %v3445_v53, %v8309_v33  ;;  %v8380_v56 = vadd.f32 %v3211_v16, %v7644_v41  ;;  %v3753_v40 = vadd.f32 1.0, %v5914_v45  ;;  %v3571_v48 = vadd.f32 %v3507_v32, %v8288_v50 }
 0x688   : > { %v3504_v5 = vmul.f32 %v3440_v59, %v8303_v21  ;;  %v3570_v49 = vadd.f32 %v3506_v1, %v8297_v26  ;;  %v3630_v52 = vmul.f32 0.7978846, %v3566_v37  ;;  %v3505_v51 = vmul.f32 %v3441_v13, %v8315_v11 }
 0x689   : > { %v3383_v28 = vmul.f32 0.044715, %v8364_v27  ;;  %v3382_v16 = vmul.f32 0.044715, %v8367_v14  ;;  %v8392_v9 = vadd.f32 %v3213_v30, %v7644_v41  ;;  %v3572_v61 = vadd.f32 %v3508_v42, %v8306_v24 }
 0x68a   : > { %v8397_v4 = vadd.f32 %v3262_v10, %v8930_v0  ;;  %v3631_v46 = vmul.f32 0.7978846, %v3567_v22  ;;  %v3573_v39 = vadd.f32 %v3509_v8, %v8309_v33  ;;  %v3384_v31 = vmul.f32 0.044715, %v8380_v56 }
 0x68b   : > { %4158 = vmatmul.bf16.gmra.mxu3 %v3858_v2  ;;  %4199 = vmatmul.bf16.gmra.mxu0 %v3859_v36  ;;  %v3164_v2 = vpop.f32.mrf.mxu0  ;;  %v8375_v36 = vadd.f32 %v3115_v7, %v8929_v43  ;;  %v3635_v60 = vmul.f32 0.7978846, %v3571_v48  ;;  %v3568_v59 = vadd.f32 %v3504_v5, %v8303_v21  ;;  %v8404_v19 = vadd.f32 %v8326_v23, %v8930_v0 }
 0x68c   : > { %4240 = vmatmul.bf16.gmra.mxu1 %v3860_v29  ;;  %4281 = vmatmul.bf16.gmra.mxu2 %v3861_v34  ;;  %v5916_v29 = vpop.eup %5915  ;;  %v8385_v17 = vadd.f32 %v3164_v2, %v7642_v54  ;;  %v3634_v53 = vmul.f32 0.7978846, %v3570_v49  ;;  %v3569_v12 = vadd.f32 %v3505_v51, %v8315_v11  ;;  %v3446_v13 = vmul.f32 %v3382_v16, %v8367_v14 }
 0x68d   : > { %v3386_v55 = vmul.f32 0.044715, %v8375_v36  ;;  %v3757_v34 = vadd.f32 1.0, %v5916_v29  ;;  %v3388_v7 = vmul.f32 0.044715, %v8392_v9  ;;  %5917 = vtanh.f32 %v3630_v52 }
 0x68e   : > { %v3387_v15 = vmul.f32 0.044715, %v8385_v17  ;;  %v3636_v32 = vmul.f32 0.7978846, %v3572_v61  ;;  %v3389_v1 = vmul.f32 0.044715, %v8397_v4  ;;  %5919 = vtanh.f32 %v3631_v46 }
 0x68f   : > { %v3450_v45 = vmul.f32 %v3386_v55, %v8375_v36  ;;  %v3637_v37 = vmul.f32 0.7978846, %v3573_v39  ;;  %v3447_v23 = vmul.f32 %v3383_v28, %v8364_v27  ;;  %v3821_v2 = vmul.f32 %v3757_v34, %v3309_v58 }
 0x690   : > { %5921 = vtanh.f32 %v3635_v60  ;;  %v3632_v42 = vmul.f32 0.7978846, %v3568_v59  ;;  %v3385_v30 = vmul.f32 0.044715, %v8404_v19  ;;  %v3451_v22 = vmul.f32 %v3387_v15, %v8385_v17 }
 0x691   : > { %5923 = vtanh.f32 %v3634_v53  ;;  %v3633_v8 = vmul.f32 0.7978846, %v3569_v12  ;;  %v3452_v10 = vmul.f32 %v3388_v7, %v8392_v9  ;;  %v3817_v48 = vmul.f32 %v3753_v40, %v3305_v6 }
 0x692   : > { %5925 = vtanh.f32 %v3636_v32  ;;  %v3510_v5 = vmul.f32 %v3446_v13, %v8367_v14  ;;  %v3453_v29 = vmul.f32 %v3389_v1, %v8397_v4  ;;  %v3862_v49 = vpack.c.bf16 %v3818_v44, %v8350_v57 }
 0x693   : > { %5927 = vtanh.f32 %v3637_v37  ;;  %v3514_v58 = vmul.f32 %v3450_v45, %v8375_v36  ;;  %v5918_v52 = vpop.eup %5917  ;;  %v3448_v51 = vmul.f32 %v3384_v31, %v8380_v56  ;;  %v3865_v28 = vpack.c.bf16 %v3821_v2, %v3817_v48 }
 0x694   : > { %5929 = vtanh.f32 %v3632_v42  ;;  %v3511_v16 = vmul.f32 %v3447_v23, %v8364_v27  ;;  %v5920_v61 = vpop.eup %5919  ;;  %v3449_v6 = vmul.f32 %v3385_v30, %v8404_v19  ;;  %v3515_v57 = vmul.f32 %v3451_v22, %v8385_v17 }
 0x695   : > { %5931 = vtanh.f32 %v3633_v8  ;;  %v3574_v40 = vadd.f32 %v3510_v5, %v8367_v14  ;;  %v3516_v55 = vmul.f32 %v3452_v10, %v8392_v9  ;;  %v3311_v39 = vmul.f32 0.5, %v8272_v20 }
 0x696   : > { %v5922_v44 = vpop.eup %5921  ;;  %v3312_v31 = vmul.f32 0.5, %v8303_v21  ;;  %v3578_v25 = vadd.f32 %v3514_v58, %v8375_v36  ;;  %v3517_v47 = vmul.f32 %v3453_v29, %v8397_v4  ;;  %v3310_v34 = vmul.f32 0.5, %v8257_v38 }
 0x697   : > { %v5924_v46 = vpop.eup %5923  ;;  %v3315_v3 = vmul.f32 0.5, %v8288_v50  ;;  %v3575_v63 = vadd.f32 %v3511_v16, %v8364_v27  ;;  %v3314_v59 = vmul.f32 0.5, %v8297_v26  ;;  %v3316_v20 = vmul.f32 0.5, %v8306_v24 }
 0x698   : > { %v3579_v21 = vadd.f32 %v3515_v57, %v8385_v17  ;;  %v3513_v15 = vmul.f32 %v3449_v6, %v8404_v19  ;;  %v3758_v12 = vadd.f32 1.0, %v5918_v52  ;;  %v3313_v13 = vmul.f32 0.5, %v8315_v11 }
 0x699   : > { %v3638_v38 = vmul.f32 0.7978846, %v3574_v40  ;;  %v3580_v50 = vadd.f32 %v3516_v55, %v8392_v9  ;;  %v3762_v32 = vadd.f32 1.0, %v5924_v46  ;;  %v3763_v45 = vadd.f32 1.0, %v5922_v44 }
 0x69a   : > { %v3642_v1 = vmul.f32 0.7978846, %v3578_v25  ;;  %v3581_v37 = vadd.f32 %v3517_v47, %v8397_v4  ;;  %v3639_v24 = vmul.f32 0.7978846, %v3575_v63  ;;  %v3759_v42 = vadd.f32 1.0, %v5920_v61 }
 0x69b   : > { %4162 = vmatmul.bf16.gmra.mxu3 %v3862_v49  ;;  %4203 = vmatmul.bf16.gmra.mxu0 %v3863_v62  ;;  %v5926_v62 = vpop.eup %5925  ;;  %v3317_v30 = vmul.f32 0.5, %v8309_v33  ;;  %v3643_v22 = vmul.f32 0.7978846, %v3579_v21  ;;  %v3577_v11 = vadd.f32 %v3513_v15, %v8404_v19  ;;  %5933 = vtanh.f32 %v3638_v38 }
 0x69c   : > { %4244 = vmatmul.bf16.gmra.mxu1 %v3864_v18  ;;  %4285 = vmatmul.bf16.gmra.mxu2 %v3865_v28  ;;  %v3512_v18 = vmul.f32 %v3448_v51, %v8380_v56  ;;  %v5928_v60 = vpop.eup %5927  ;;  %v3764_v26 = vadd.f32 1.0, %v5926_v62  ;;  %v3644_v48 = vmul.f32 0.7978846, %v3580_v50  ;;  %v3826_v5 = vmul.f32 %v3762_v32, %v3314_v59 }
 0x69d   : > { %v5930_v53 = vpop.eup %5929  ;;  %v3765_v23 = vadd.f32 1.0, %v5928_v60  ;;  %v3827_v29 = vmul.f32 %v3763_v45, %v3315_v3  ;;  %5935 = vtanh.f32 %v3642_v1  ;;  %v3645_v49 = vmul.f32 0.7978846, %v3581_v37 }
 0x69e   : > { %v5932_v7 = vpop.eup %5931  ;;  %v3576_v2 = vadd.f32 %v3512_v18, %v8380_v56  ;;  %v3760_v8 = vadd.f32 1.0, %v5930_v53  ;;  %v3828_v58 = vmul.f32 %v3764_v26, %v3316_v20  ;;  %5937 = vtanh.f32 %v3639_v24 }
 0x69f   : > { %v3761_v10 = vadd.f32 1.0, %v5932_v7  ;;  %v3829_v52 = vmul.f32 %v3765_v23, %v3317_v30  ;;  %v3822_v28 = vmul.f32 %v3758_v12, %v3310_v34  ;;  %v3823_v16 = vmul.f32 %v3759_v42, %v3311_v39 }
 0x6a0   : > { %v3640_v51 = vmul.f32 0.7978846, %v3576_v2  ;;  %5939 = vtanh.f32 %v3643_v22  ;;  %v3641_v61 = vmul.f32 0.7978846, %v3577_v11  ;;  %v3824_v33 = vmul.f32 %v3760_v8, %v3312_v31 }
 0x6a1   : > { %v3825_v6 = vmul.f32 %v3761_v10, %v3313_v13  ;;  %5941 = vtanh.f32 %v3644_v48  ;;  %v3866_v57 = vpack.c.bf16 %v3826_v5, %v3822_v28  ;;  %v3867_v44 = vpack.c.bf16 %v3827_v29, %v3823_v16  ;;  %v5934_v40 = vpop.eup %5933 }
 0x6a2   : > { %5943 = vtanh.f32 %v3645_v49  ;;  %v3868_v55 = vpack.c.bf16 %v3828_v58, %v3824_v33  ;;  %v3322_v20 = vmul.f32 0.5, %v8375_v36  ;;  %v3766_v21 = vadd.f32 1.0, %v5934_v40 }
 0x6a3   : > { %v3869_v46 = vpack.c.bf16 %v3829_v52, %v3825_v6  ;;  %5945 = vtanh.f32 %v3640_v51  ;;  %v5936_v25 = vpop.eup %5935  ;;  %v3323_v15 = vmul.f32 0.5, %v8385_v17  ;;  %v3324_v12 = vmul.f32 0.5, %v8392_v9 }
 0x6a4   : > { %5947 = vtanh.f32 %v3641_v61  ;;  %v5938_v47 = vpop.eup %5937  ;;  %v3770_v63 = vadd.f32 1.0, %v5936_v25  ;;  %v3325_v38 = vmul.f32 0.5, %v8397_v4  ;;  %v3318_v7 = vmul.f32 0.5, %v8367_v14 }
 0x6a5   : > { %v3767_v53 = vadd.f32 1.0, %v5938_v47  ;;  %v3319_v45 = vmul.f32 0.5, %v8364_v27  ;;  %v3320_v37 = vmul.f32 0.5, %v8380_v56  ;;  %v3321_v36 = vmul.f32 0.5, %v8404_v19 }
 0x6a6   : > { %v5940_v39 = vpop.eup %5939  ;;  %v3834_v32 = vmul.f32 %v3770_v63, %v3322_v20  ;;  %v3830_v17 = vmul.f32 %v3766_v21, %v3318_v7 }
 0x6a7   : > { %v5942_v62 = vpop.eup %5941  ;;  %v3771_v18 = vadd.f32 1.0, %v5940_v39  ;;  %v3831_v24 = vmul.f32 %v3767_v53, %v3319_v45 }
 0x6a8   : > { %v5944_v34 = vpop.eup %5943  ;;  %v3772_v60 = vadd.f32 1.0, %v5942_v62  ;;  %v3870_v42 = vpack.c.bf16 %v3834_v32, %v3830_v17 }
 0x6a9   : > { %v5946_v31 = vpop.eup %5945  ;;  %v3773_v59 = vadd.f32 1.0, %v5944_v34  ;;  %v3835_v1 = vmul.f32 %v3771_v18, %v3323_v15 }
 0x6aa   : > { %v5948_v3 = vpop.eup %5947  ;;  %v3768_v13 = vadd.f32 1.0, %v5946_v31  ;;  %v3836_v26 = vmul.f32 %v3772_v60, %v3324_v12 }
 0x6ab   : > { %4166 = vmatmul.bf16.gmra.mxu3 %v3866_v57  ;;  %4207 = vmatmul.bf16.gmra.mxu0 %v3867_v44  ;;  %v3769_v50 = vadd.f32 1.0, %v5948_v3  ;;  %v3837_v23 = vmul.f32 %v3773_v59, %v3325_v38  ;;  %v3871_v30 = vpack.c.bf16 %v3835_v1, %v3831_v24 }
 0x6ac   : > { %4248 = vmatmul.bf16.gmra.mxu1 %v3868_v55  ;;  %4289 = vmatmul.bf16.gmra.mxu2 %v3869_v46  ;;  %v3832_v2 = vmul.f32 %v3768_v13, %v3320_v37 }
 0x6ad   : > { %v3833_v9 = vmul.f32 %v3769_v50, %v3321_v36 }
 0x6ae   : > { %v3872_v4 = vpack.c.bf16 %v3836_v26, %v3832_v2 }
 0x6af   : > { %v3873_v22 = vpack.c.bf16 %v3837_v23, %v3833_v9 }
 0x6bb   : > { %4170 = vmatmul.bf16.gmra.mxu3 %v3870_v42  ;;  %4211 = vmatmul.bf16.gmra.mxu0 %v3871_v30 }
 0x6bc   : > { %4252 = vmatmul.bf16.gmra.mxu1 %v3872_v4  ;;  %4293 = vmatmul.bf16.gmra.mxu2 %v3873_v22 }
 0x6c8   : > { %v3167_v27 = vpop.f32.mrf.mxu0 }
 0x6c9   : > { %v8459_v14 = vadd.f32 %v3167_v27, %v7642_v54  ;;  %v3216_v56 = vpop.f32.mrf.mxu1 }
 0x6ca   : > { %v8462_v19 = vadd.f32 %v3216_v56, %v7644_v41 }
 0x6cb   : > { %v3391_v11 = vmul.f32 0.044715, %v8459_v14 }
 0x6cc   : > { %v3392_v8 = vmul.f32 0.044715, %v8462_v19 }
 0x6cd   : > { %v3455_v10 = vmul.f32 %v3391_v11, %v8459_v14 }
 0x6ce   : > { %v3456_v48 = vmul.f32 %v3392_v8, %v8462_v19  ;;  %v3118_v5 = vpop.f32.mrf.mxu3 }
 0x6cf   : > { %v8469_v29 = vadd.f32 %v3118_v5, %v8929_v43  ;;  %v3265_v49 = vpop.f32.mrf.mxu2  ;;  %v3519_v58 = vmul.f32 %v3455_v10, %v8459_v14 }
 0x6d0   : > { %v8473_v52 = vadd.f32 %v3265_v49, %v8930_v0  ;;  %v3169_v51 = vpop.f32.mrf.mxu0  ;;  %v3520_v28 = vmul.f32 %v3456_v48, %v8462_v19 }
 0x6d1   : > { %v3390_v16 = vmul.f32 0.044715, %v8469_v29  ;;  %v8478_v61 = vadd.f32 %v3169_v51, %v7642_v54  ;;  %v3218_v33 = vpop.f32.mrf.mxu1  ;;  %v3583_v6 = vadd.f32 %v3519_v58, %v8459_v14  ;;  %v3327_v51 = vmul.f32 0.5, %v8459_v14 }
 0x6d2   : > { %v3393_v57 = vmul.f32 0.044715, %v8473_v52  ;;  %v8483_v44 = vadd.f32 %v3218_v33, %v7644_v41  ;;  %v3584_v40 = vadd.f32 %v3520_v28, %v8462_v19 }
 0x6d3   : > { %v3454_v55 = vmul.f32 %v3390_v16, %v8469_v29  ;;  %v3395_v46 = vmul.f32 0.044715, %v8478_v61  ;;  %v3647_v39 = vmul.f32 0.7978846, %v3583_v6  ;;  %v3331_v28 = vmul.f32 0.5, %v8478_v61 }
 0x6d4   : > { %v3457_v25 = vmul.f32 %v3393_v57, %v8473_v52  ;;  %v3396_v47 = vmul.f32 0.044715, %v8483_v44  ;;  %v3648_v41 = vmul.f32 0.7978846, %v3584_v40  ;;  %v3328_v57 = vmul.f32 0.5, %v8462_v19 }
 0x6d5   : > { %v3459_v54 = vmul.f32 %v3395_v46, %v8478_v61  ;;  %v3518_v62 = vmul.f32 %v3454_v55, %v8469_v29  ;;  %5949 = vtanh.f32 %v3647_v39  ;;  %v3332_v40 = vmul.f32 0.5, %v8483_v44 }
 0x6d6   : > { %v3460_v34 = vmul.f32 %v3396_v47, %v8483_v44  ;;  %v3120_v31 = vpop.f32.mrf.mxu3  ;;  %v3521_v3 = vmul.f32 %v3457_v25, %v8473_v52  ;;  %5951 = vtanh.f32 %v3648_v41 }
 0x6d7   : > { %v8495_v63 = vadd.f32 %v3120_v31, %v8929_v43  ;;  %v3267_v18 = vpop.f32.mrf.mxu2  ;;  %v3523_v60 = vmul.f32 %v3459_v54, %v8478_v61  ;;  %v3582_v59 = vadd.f32 %v3518_v62, %v8469_v29  ;;  %v8937_v62 = vld [vmem:[#allocation45_spill] sm:$0xff] }
 0x6d8   : > { %v8500_v20 = vadd.f32 %v3267_v18, %v8930_v0  ;;  %v4188_v21 = vpop.f32.mrf.mxu0  ;;  %v3524_v15 = vmul.f32 %v3460_v34, %v8483_v44  ;;  %v3585_v53 = vadd.f32 %v3521_v3, %v8473_v52  ;;  %v8514_v0 = vld [vmem:[%s1243_s20] ss:$0 sm:$0xff]  ;;  %s4635_s20 = scalar_lea.hbm %s8956_s9, %s5508_s12 }
 0x6d9   : > { %v3394_v12 = vmul.f32 0.044715, %v8495_v63  ;;  %v4229_v13 = vpop.f32.mrf.mxu1  ;;  %v3587_v43 = vadd.f32 %v3523_v60, %v8478_v61  ;;  %v3646_v45 = vmul.f32 0.7978846, %v3582_v59 }
 0x6da   : > { %v3397_v38 = vmul.f32 0.044715, %v8500_v20  ;;  %v3588_v50 = vadd.f32 %v3524_v15, %v8483_v44  ;;  %v3649_v26 = vmul.f32 0.7978846, %v3585_v53  ;;  %v3330_v15 = vmul.f32 0.5, %v8495_v63 }
 0x6db   : > { %v3458_v7 = vmul.f32 %v3394_v12, %v8495_v63  ;;  %v3651_v32 = vmul.f32 0.7978846, %v3587_v43  ;;  %v5950_v24 = vpop.eup %5949  ;;  %v3329_v12 = vmul.f32 0.5, %v8473_v52 }
 0x6dc   : > { %v3461_v1 = vmul.f32 %v3397_v38, %v8500_v20  ;;  %v3652_v37 = vmul.f32 0.7978846, %v3588_v50  ;;  %v5952_v30 = vpop.eup %5951  ;;  %v3775_v8 = vadd.f32 1.0, %v5950_v24 }
 0x6dd   : > { %5953 = vtanh.f32 %v3651_v32  ;;  %v3522_v36 = vmul.f32 %v3458_v7, %v8495_v63  ;;  %v3776_v49 = vadd.f32 1.0, %v5952_v30 }
 0x6de   : > { %v4147_v23 = vpop.f32.mrf.mxu3  ;;  %5955 = vtanh.f32 %v3652_v37  ;;  %v3525_v17 = vmul.f32 %v3461_v1, %v8500_v20  ;;  %v3839_v47 = vmul.f32 %v3775_v8, %v3327_v51 }
 0x6df   : > { %v4148_v2 = vadd.f32 %v8514_v0, %v4147_v23  ;;  %v4270_v9 = vpop.f32.mrf.mxu2  ;;  %v3586_v42 = vadd.f32 %v3522_v36, %v8495_v63  ;;  %5957 = vtanh.f32 %v3646_v45  ;;  %v3840_v14 = vmul.f32 %v3776_v49, %v3328_v57 }
 0x6e0   : > { %v4190_v4 = vpop.f32.mrf.mxu0  ;;  %v3589_v22 = vadd.f32 %v3525_v17, %v8500_v20  ;;  %5959 = vtanh.f32 %v3649_v26 }
 0x6e1   : > { %v4189_v27 = vadd.f32 %v4188_v21, %v4148_v2  ;;  %v4231_v56 = vpop.f32.mrf.mxu1  ;;  %v3650_v11 = vmul.f32 0.7978846, %v3586_v42  ;;  %v3326_v21 = vmul.f32 0.5, %v8469_v29  ;;  %v8938_v2 = vld [vmem:[#allocation46_spill] sm:$0xff] }
 0x6e2   : > { %v3653_v10 = vmul.f32 0.7978846, %v3589_v22 }
 0x6e3   : > { %v5954_v48 = vpop.eup %5953  ;;  %v4230_v5 = vadd.f32 %v4229_v13, %v4189_v27  ;;  %5961 = vtanh.f32 %v3650_v11  ;;  %v3333_v13 = vmul.f32 0.5, %v8500_v20 }
 0x6e4   : > { %v5956_v58 = vpop.eup %5955  ;;  %v3779_v16 = vadd.f32 1.0, %v5954_v48  ;;  %5963 = vtanh.f32 %v3653_v10 }
 0x6e5   : > { %v5958_v33 = vpop.eup %5957  ;;  %v4271_v6 = vadd.f32 %v4270_v9, %v4230_v5  ;;  %v3780_v55 = vadd.f32 1.0, %v5956_v58  ;;  %v8939_v58 = vld [vmem:[#allocation47_spill] sm:$0xff] }
 0x6e6   : > { %v5960_v46 = vpop.eup %5959  ;;  %v4149_v25 = vpop.f32.mrf.mxu3  ;;  %v3843_v54 = vmul.f32 %v3779_v16, %v3331_v28  ;;  %v3774_v3 = vadd.f32 1.0, %v5958_v33 }
 0x6e7   : > { %v4272_v39 = vpop.f32.mrf.mxu2  ;;  %v8527_v34 = vadd.f32 %v4271_v6, %v8937_v62  ;;  %v3844_v31 = vmul.f32 %v3780_v55, %v3332_v40  ;;  %v3777_v44 = vadd.f32 1.0, %v5960_v46  ;;  %v8940_v62 = vld [vmem:[#allocation48_spill] sm:$0xff] }
 0x6e8   : > { %v4192_v61 = vpop.f32.mrf.mxu0  ;;  %v3875_v41 = vpack.c.bf16 %v3843_v54, %v3839_v47  ;;  %v3838_v38 = vmul.f32 %v3774_v3, %v3326_v21 }
 0x6e9   : > { %v5962_v18 = vpop.eup %5961  ;;  %v4233_v60 = vpop.f32.mrf.mxu1  ;;  %4312 = vadd.xlane.f32.xlu0 %v8527_v34  ;;  %v3876_v19 = vpack.c.bf16 %v3844_v31, %v3840_v14  ;;  %v3841_v7 = vmul.f32 %v3777_v44, %v3329_v12  ;;  %v8941_v12 = vld [vmem:[#allocation49_spill] sm:$0xff] }
 0x6ea   : > { %v5964_v59 = vpop.eup %5963  ;;  %4215 = vmatmul.bf16.gmra.mxu0 %v3875_v41  ;;  %v3778_v53 = vadd.f32 1.0, %v5962_v18 }
 0x6eb   : > { %4256 = vmatmul.bf16.gmra.mxu1 %v3876_v19  ;;  %v3781_v43 = vadd.f32 1.0, %v5964_v59 }
 0x6ec   : > { %v3842_v50 = vmul.f32 %v3778_v53, %v3330_v15 }
 0x6ed   : > { %v3845_v32 = vmul.f32 %v3781_v43, %v3333_v13 }
 0x6ee   : > { %v4151_v45 = vpop.f32.mrf.mxu3  ;;  %v3874_v1 = vpack.c.bf16 %v3842_v50, %v3838_v38 }
 0x6ef   : > { %v4152_v37 = vadd.f32 %v8514_v0, %v4151_v45  ;;  %v4274_v26 = vpop.f32.mrf.mxu2  ;;  %v3877_v36 = vpack.c.bf16 %v3845_v32, %v3841_v7 }
 0x6f0   : > { %4174 = vmatmul.bf16.gmra.mxu3 %v3874_v1  ;;  %v4194_v29 = vpop.f32.mrf.mxu0 }
 0x6f1   : > { %v4193_v63 = vadd.f32 %v4192_v61, %v4152_v37  ;;  %v4235_v23 = vpop.f32.mrf.mxu1  ;;  %4297 = vmatmul.bf16.gmra.mxu2 %v3877_v36 }
 0x6f2   : > { %v8942_v23 = vld [vmem:[#allocation50_spill] sm:$0xff] }
 0x6f3   : > { %v4234_v17 = vadd.f32 %v4233_v60, %v4193_v63 }
 0x6f5   : > { %v4275_v52 = vadd.f32 %v4274_v26, %v4234_v17 }
 0x6f6   : > { %v4153_v24 = vpop.f32.mrf.mxu3 }
 0x6f7   : > { %v4276_v20 = vpop.f32.mrf.mxu2  ;;  %v8536_v9 = vadd.f32 %v4275_v52, %v8938_v2 }
 0x6f8   : > { %v4196_v42 = vpop.f32.mrf.mxu0 }
 0x6f9   : > { %v4237_v30 = vpop.f32.mrf.mxu1  ;;  %4314 = vadd.xlane.f32.xlu1 %v8536_v9 }
 0x6fe   : > { %v4155_v4 = vpop.f32.mrf.mxu3 }
 0x6ff   : > { %v4156_v22 = vadd.f32 %v8514_v0, %v4155_v4  ;;  %v4278_v27 = vpop.f32.mrf.mxu2 }
 0x700   : > { %v4198_v56 = vpop.f32.mrf.mxu0 }
 0x701   : > { %v4197_v11 = vadd.f32 %v4196_v42, %v4156_v22  ;;  %v4239_v8 = vpop.f32.mrf.mxu1 }
 0x703   : > { %v4238_v10 = vadd.f32 %v4237_v30, %v4197_v11 }
 0x705   : > { %v4279_v48 = vadd.f32 %v4278_v27, %v4238_v10  ;;  %v8944_v10 = vld [vmem:[#allocation51_spill] sm:$0xff] }
 0x706   : > { %v4157_v5 = vpop.f32.mrf.mxu3 }
 0x707   : > { %v4280_v49 = vpop.f32.mrf.mxu2  ;;  %v8541_v51 = vadd.f32 %v4279_v48, %v8939_v58 }
 0x708   : > { %v4200_v28 = vpop.f32.mrf.mxu0 }
 0x709   : > { %v4241_v16 = vpop.f32.mrf.mxu1  ;;  %4316 = vadd.xlane.f32.xlu2 %v8541_v51 }
 0x70e   : > { %v4159_v33 = vpop.f32.mrf.mxu3 }
 0x70f   : > { %v4160_v6 = vadd.f32 %v8514_v0, %v4159_v33  ;;  %v4282_v57 = vpop.f32.mrf.mxu2 }
 0x710   : > { %v4202_v40 = vpop.f32.mrf.mxu0 }
 0x711   : > { %v4201_v55 = vadd.f32 %v4200_v28, %v4160_v6  ;;  %v4243_v46 = vpop.f32.mrf.mxu1  ;;  %v8945_v28 = vld [vmem:[#allocation44_spill] sm:$0xff] }
 0x713   : > { %v4242_v25 = vadd.f32 %v4241_v16, %v4201_v55 }
 0x715   : > { %v4283_v47 = vadd.f32 %v4282_v57, %v4242_v25 }
 0x716   : > { %v4161_v54 = vpop.f32.mrf.mxu3 }
 0x717   : > { %v4284_v39 = vpop.f32.mrf.mxu2  ;;  %v8546_v14 = vadd.f32 %v4283_v47, %v8940_v62 }
 0x718   : > { %v4204_v31 = vpop.f32.mrf.mxu0 }
 0x719   : > { %v4245_v61 = vpop.f32.mrf.mxu1  ;;  %4318 = vadd.xlane.f32.xlu1 %v8546_v14 }
 0x71e   : > { %v4163_v41 = vpop.f32.mrf.mxu3 }
 0x71f   : > { %v4164_v3 = vadd.f32 %v8514_v0, %v4163_v41  ;;  %v4286_v18 = vpop.f32.mrf.mxu2 }
 0x720   : > { %v4206_v60 = vpop.f32.mrf.mxu0 }
 0x721   : > { %v4205_v19 = vadd.f32 %v4204_v31, %v4164_v3  ;;  %v4247_v44 = vpop.f32.mrf.mxu1 }
 0x723   : > { %v4246_v59 = vadd.f32 %v4245_v61, %v4205_v19 }
 0x725   : > { %v4287_v21 = vadd.f32 %v4286_v18, %v4246_v59 }
 0x726   : > { %v4165_v15 = vpop.f32.mrf.mxu3 }
 0x727   : > { %v4288_v53 = vpop.f32.mrf.mxu2  ;;  %v8551_v13 = vadd.f32 %v4287_v21, %v8941_v12 }
 0x728   : > { %v4208_v43 = vpop.f32.mrf.mxu0 }
 0x729   : > { %v4249_v38 = vpop.f32.mrf.mxu1  ;;  %4320 = vadd.xlane.f32.xlu2 %v8551_v13 }
 0x72e   : > { %v4167_v50 = vpop.f32.mrf.mxu3 }
 0x72f   : > { %v4168_v7 = vadd.f32 %v8514_v0, %v4167_v50  ;;  %v4290_v32 = vpop.f32.mrf.mxu2 }
 0x730   : > { %v4210_v45 = vpop.f32.mrf.mxu0 }
 0x731   : > { %v4209_v1 = vadd.f32 %v4208_v43, %v4168_v7  ;;  %v4251_v37 = vpop.f32.mrf.mxu1 }
 0x733   : > { %v4250_v26 = vadd.f32 %v4249_v38, %v4209_v1 }
 0x735   : > { %v4291_v36 = vadd.f32 %v4290_v32, %v4250_v26 }
 0x736   : > { %v4169_v29 = vpop.f32.mrf.mxu3 }
 0x737   : > { %v4292_v63 = vpop.f32.mrf.mxu2  ;;  %v4307_v17 = vadd.f32 %v4291_v36, %v8942_v23  ;;  %v5622_v29 = vld [vmem:[%s6923_s11 + $0x38] sm:$0xff]  ;;  %v5620_v23 = vld [vmem:[%s6923_s11 + $0x28] sm:$0xff] }
 0x738   : > { %v4212_v52 = vpop.f32.mrf.mxu0  ;;  %4609 = vmatpush.bf16.msra.mxu3 %v5622_v29  ;;  %v5621_v63 = vld [vmem:[%s6923_s11 + $0x30] sm:$0xff] }
 0x739   : > { %v4253_v24 = vpop.f32.mrf.mxu1  ;;  %4322 = vadd.xlane.f32.xlu0 %v4307_v17 }
 0x73c   : > { %4610 = vmatpush.bf16.msra.mxu3 %v5621_v63 }
 0x73e   : > { %v4171_v20 = vpop.f32.mrf.mxu3 }
 0x73f   : > { %v4172_v2 = vadd.f32 %v8514_v0, %v4171_v20  ;;  %v4294_v42 = vpop.f32.mrf.mxu2  ;;  %v5617_v20 = vld [vmem:[%s6923_s11 + $0x10] sm:$0xff] }
 0x740   : > { %v4214_v30 = vpop.f32.mrf.mxu0  ;;  %4611 = vmatpush.bf16.msra.mxu3 %v5620_v23 }
 0x741   : > { %v4213_v4 = vadd.f32 %v4212_v52, %v4172_v2  ;;  %v4255_v22 = vpop.f32.mrf.mxu1  ;;  %v5618_v52 = vld [vmem:[%s6923_s11 + $0x18] sm:$0xff] }
 0x743   : > { %v4254_v27 = vadd.f32 %v4253_v24, %v4213_v4 }
 0x745   : > { %v4295_v56 = vadd.f32 %v4294_v42, %v4254_v27 }
 0x746   : > { %v4173_v11 = vpop.f32.mrf.mxu3 }
 0x747   : > { %v4296_v8 = vpop.f32.mrf.mxu2  ;;  %v4308_v48 = vadd.f32 %v4295_v56, %v8944_v10 }
 0x749   : > { %4324 = vadd.xlane.f32.xlu1 %v4308_v48 }
 0x75c   : > { %v4313_v39 = vpop.xlane.xlu0 %4312 }
 0x75d   : > { %v4328_v61 = vmul.f32 %v4313_v39, %v8945_v28 }
 0x75f   : > { %v8576_v19 = vsub.f32 %v8527_v34, %v4328_v61 }
 0x761   : > { %v4344_v44 = vmul.f32 %v8576_v19, %v8576_v19 }
 0x767   : > { %v4216_v5 = vpop.f32.mrf.mxu0 }
 0x768   : > { %v4257_v49 = vpop.f32.mrf.mxu1 }
 0x76c   : > { %v4315_v58 = vpop.xlane.xlu1 %4314 }
 0x76d   : > { %v4329_v16 = vmul.f32 %v4315_v58, %v8945_v28 }
 0x76f   : > { %v8564_v33 = vsub.f32 %v8536_v9, %v4329_v16  ;;  %v4218_v6 = vpop.f32.mrf.mxu0 }
 0x770   : > { %v4259_v57 = vpop.f32.mrf.mxu1 }
 0x771   : > { %v4345_v40 = vmul.f32 %v8564_v33, %v8564_v33 }
 0x773   : > { %4354 = vadd.xlane.f32.xlu0 %v4345_v40  ;;  %v4175_v55 = vpop.f32.mrf.mxu3 }
 0x774   : > { %v4298_v46 = vpop.f32.mrf.mxu2  ;;  %v4176_v25 = vadd.f32 %v8514_v0, %v4175_v55 }
 0x776   : > { %v4217_v47 = vadd.f32 %v4216_v5, %v4176_v25 }
 0x778   : > { %v4258_v54 = vadd.f32 %v4257_v49, %v4217_v47 }
 0x77a   : > { %v4299_v62 = vadd.f32 %v4298_v46, %v4258_v54 }
 0x77b   : > { %v4177_v31 = vpop.f32.mrf.mxu3 }
 0x77c   : > { %v4300_v41 = vpop.f32.mrf.mxu2  ;;  %v4317_v9 = vpop.xlane.xlu2 %4316  ;;  %v4309_v3 = vadd.f32 %v4299_v62, %v7965_v35 }
 0x77d   : > { %v4330_v18 = vmul.f32 %v4317_v9, %v8945_v28 }
 0x77e   : > { %4326 = vadd.xlane.f32.xlu2 %v4309_v3 }
 0x77f   : > { %v8573_v60 = vsub.f32 %v8541_v51, %v4330_v18 }
 0x781   : > { %v4346_v0 = vmul.f32 %v8573_v60, %v8573_v60 }
 0x783   : > { %4356 = vadd.xlane.f32.xlu1 %v4346_v0 }
 0x786   : > { %4352 = vadd.xlane.f32.xlu2 %v4344_v44 }
 0x78c   : > { %v4319_v59 = vpop.xlane.xlu1 %4318 }
 0x78d   : > { %v4331_v35 = vmul.f32 %v4319_v59, %v8945_v28 }
 0x78f   : > { %v8584_v21 = vsub.f32 %v8546_v14, %v4331_v35 }
 0x791   : > { %v4347_v51 = vmul.f32 %v8584_v21, %v8584_v21 }
 0x793   : > { %4358 = vadd.xlane.f32.xlu0 %v4347_v51 }
 0x79c   : > { %v4321_v34 = vpop.xlane.xlu2 %4320 }
 0x79d   : > { %v4332_v15 = vmul.f32 %v4321_v34, %v8945_v28 }
 0x79f   : > { %v8590_v53 = vsub.f32 %v8551_v13, %v4332_v15 }
 0x7a1   : > { %v4348_v12 = vmul.f32 %v8590_v53, %v8590_v53 }
 0x7a3   : > { %4360 = vadd.xlane.f32.xlu1 %v4348_v12 }
 0x7ac   : > { %v4323_v43 = vpop.xlane.xlu0 %4322 }
 0x7ad   : > { %v4333_v38 = vmul.f32 %v4323_v43, %v8945_v28 }
 0x7af   : > { %v8595_v14 = vsub.f32 %v4307_v17, %v4333_v38  ;;  %v5619_v17 = vld [vmem:[%s6923_s11 + $0x20] sm:$0xff] }
 0x7b0   : > { %4612 = vmatpush.bf16.msra.mxu3 %v5619_v17 }
 0x7b1   : > { %v4349_v50 = vmul.f32 %v8595_v14, %v8595_v14 }
 0x7b3   : > { %4362 = vadd.xlane.f32.xlu2 %v4349_v50 }
 0x7b4   : > { %4613 = vmatpush.bf16.msra.mxu3 %v5618_v52 }
 0x7b8   : > { %4614 = vmatpush.bf16.msra.mxu3 %v5617_v20 }
 0x7bc   : > { %v4325_v7 = vpop.xlane.xlu1 %4324 }
 0x7bd   : > { %v4334_v13 = vmul.f32 %v4325_v7, %v8945_v28 }
 0x7bf   : > { %v8600_v32 = vsub.f32 %v4308_v48, %v4334_v13 }
 0x7c1   : > { %v4350_v45 = vmul.f32 %v8600_v32, %v8600_v32 }
 0x7c3   : > { %4364 = vadd.xlane.f32.xlu0 %v4350_v45 }
 0x7e6   : > { %v4355_v24 = vpop.xlane.xlu0 %4354 }
 0x7e7   : > { %v4369_v4 = vmul.f32 %v4355_v24, %v8945_v28 }
 0x7e9   : > { %v4377_v56 = vadd.f32 1e-12, %v4369_v4 }
 0x7eb   : > { %5965 = vrsqrt.f32 %v4377_v56  ;;  %vm4400_vm3 = vweird.f32 %v4377_v56 }
 0x7f1   : > { %v4327_v1 = vpop.xlane.xlu2 %4326  ;;  %v8641_v25 = vpop.eup %5965 }
 0x7f2   : > { %v4335_v37 = vmul.f32 %v4327_v1, %v8945_v28  ;;  %v4395_v54 = vmul.f32 %v8641_v25, %v4377_v56  ;;  %vm4401_vm2 = vweird.f32 %v8641_v25 }
 0x7f3   : > { %vm8680_vm4 = vmor %vm4400_vm3, %vm4401_vm2 }
 0x7f4   : > { %v8605_v26 = vsub.f32 %v4309_v3, %v4335_v37  ;;  %v4396_v41 = vmul.f32 %v8641_v25, %v4395_v54 }
 0x7f6   : > { %v4351_v36 = vmul.f32 %v8605_v26, %v8605_v26  ;;  %v4357_v2 = vpop.xlane.xlu1 %4356  ;;  %v4397_v35 = vmul.f32 0.5, %v4396_v41 }
 0x7f7   : > { %v4370_v22 = vmul.f32 %v4357_v2, %v8945_v28 }
 0x7f8   : > { %4366 = vadd.xlane.f32.xlu1 %v4351_v36  ;;  %v4398_v50 = vsub.f32 1.5, %v4397_v35 }
 0x7f9   : > { %v4353_v42 = vpop.xlane.xlu2 %4352  ;;  %v8624_v49 = vadd.f32 1e-12, %v4370_v22 }
 0x7fa   : > { %v4368_v11 = vmul.f32 %v4353_v42, %v8945_v28  ;;  %v4399_v29 = vmul.f32 %v8641_v25, %v4398_v50 }
 0x7fb   : > { %5967 = vrsqrt.f32 %v8624_v49  ;;  %vm4410_vm6 = vweird.f32 %v8624_v49 }
 0x7fc   : > { %v8627_v16 = vadd.f32 1e-12, %v4368_v11  ;;  %v4403_v42 = vsel %vm8680_vm4, %v8641_v25, %v4399_v29 }
 0x7fd   : > { %v4465_v25 = vmul.f32 %v4403_v42, %v8564_v33 }
 0x7fe   : > { %5969 = vrsqrt.f32 %v8627_v16  ;;  %vm4390_vm8 = vweird.f32 %v8627_v16 }
 0x801   : > { %v8646_v47 = vpop.eup %5967 }
 0x802   : > { %v4405_v0 = vmul.f32 %v8646_v47, %v8624_v49  ;;  %vm4411_vm5 = vweird.f32 %v8646_v47 }
 0x803   : > { %vm8695_vm10 = vmor %vm4410_vm6, %vm4411_vm5 }
 0x804   : > { %v8649_v39 = vpop.eup %5969  ;;  %v4406_v12 = vmul.f32 %v8646_v47, %v4405_v0 }
 0x805   : > { %v4385_v3 = vmul.f32 %v8649_v39, %v8627_v16  ;;  %vm4391_vm7 = vweird.f32 %v8649_v39 }
 0x806   : > { %v4359_v30 = vpop.xlane.xlu0 %4358  ;;  %v4407_v1 = vmul.f32 0.5, %v4406_v12  ;;  %vm8703_vm12 = vmor %vm4390_vm8, %vm4391_vm7 }
 0x807   : > { %v4371_v10 = vmul.f32 %v4359_v30, %v8945_v28  ;;  %v4386_v34 = vmul.f32 %v8649_v39, %v4385_v3 }
 0x808   : > { %v4408_v52 = vsub.f32 1.5, %v4407_v1 }
 0x809   : > { %v8630_v57 = vadd.f32 1e-12, %v4371_v10  ;;  %v4387_v13 = vmul.f32 0.5, %v4386_v34 }
 0x80a   : > { %v4409_v56 = vmul.f32 %v8646_v47, %v4408_v52 }
 0x80b   : > { %5971 = vrsqrt.f32 %v8630_v57  ;;  %v4388_v23 = vsub.f32 1.5, %v4387_v13  ;;  %vm4420_vm13 = vweird.f32 %v8630_v57 }
 0x80c   : > { %v4413_v33 = vsel %vm8695_vm10, %v8646_v47, %v4409_v56  ;;  %vm4539_vm10 = vcmask 1041409  }
 0x80d   : > { %v4389_v4 = vmul.f32 %v8649_v39, %v4388_v23  ;;  %v4466_v47 = vmul.f32 %v4413_v33, %v8573_v60 }
 0x811   : > { %v8651_v62 = vpop.eup %5971 }
 0x812   : > { %v4415_v18 = vmul.f32 %v8651_v62, %v8630_v57  ;;  %vm4421_vm9 = vweird.f32 %v8651_v62  ;;  %v4393_v57 = vsel %vm8703_vm12, %v8649_v39, %v4389_v4  ;;  %vm4545_vm12 = vcmask 1043459  }
 0x813   : > { %vm8710_vm15 = vmor %vm4420_vm13, %vm4421_vm9  ;;  %vm4548_vm13 = vcmask 1044484  }
 0x814   : > { %v4416_v15 = vmul.f32 %v8651_v62, %v4415_v18 }
 0x816   : > { %v4361_v27 = vpop.xlane.xlu1 %4360  ;;  %v4417_v45 = vmul.f32 0.5, %v4416_v15 }
 0x817   : > { %v4372_v5 = vmul.f32 %v4361_v27, %v8945_v28 }
 0x818   : > { %v4418_v17 = vsub.f32 1.5, %v4417_v45 }
 0x819   : > { %v8632_v40 = vadd.f32 1e-12, %v4372_v5 }
 0x81a   : > { %v4419_v22 = vmul.f32 %v8651_v62, %v4418_v17 }
 0x81b   : > { %5973 = vrsqrt.f32 %v8632_v40  ;;  %vm4430_vm0 = vweird.f32 %v8632_v40 }
 0x81c   : > { %v4423_v54 = vsel %vm8710_vm15, %v8651_v62, %v4419_v22  ;;  %vm4554_vm15 = vcmask 1046534  }
 0x81d   : > { %v4467_v62 = vmul.f32 %v4423_v54, %v8584_v21 }
 0x821   : > { %v8653_v31 = vpop.eup %5973 }
 0x822   : > { %v4425_v44 = vmul.f32 %v8653_v31, %v8632_v40  ;;  %vm4431_vm11 = vweird.f32 %v8653_v31  ;;  %v5736_v40 = vld [vmem:[%s1083_s8] ss:$0 sm:$0xff] }
 0x823   : > { %vm4432_vm2 = vmor %vm4430_vm0, %vm4431_vm11  ;;  %v4478_v21 = vmul.f32 %v5736_v40, %v4467_v62  ;;  %vm4542_vm11 = vcmask 1042434   ;;  %vm4557_vm0 = vcmask 1047559  }
 0x824   : > { %v4426_v43 = vmul.f32 %v8653_v31, %v4425_v44 }
 0x826   : > { %v4363_v8 = vpop.xlane.xlu2 %4362  ;;  %v4427_v37 = vmul.f32 0.5, %v4426_v43 }
 0x827   : > { %v4373_v58 = vmul.f32 %v4363_v8, %v8945_v28 }
 0x828   : > { %v4428_v24 = vsub.f32 1.5, %v4427_v37 }
 0x829   : > { %v8635_v55 = vadd.f32 1e-12, %v4373_v58 }
 0x82a   : > { %v4429_v8 = vmul.f32 %v8653_v31, %v4428_v24 }
 0x82b   : > { %5975 = vrsqrt.f32 %v8635_v55  ;;  %vm4440_vm3 = vweird.f32 %v8635_v55 }
 0x82c   : > { %v4433_v41 = vsel %vm4432_vm2, %v8653_v31, %v4429_v8 }
 0x82d   : > { %v4468_v31 = vmul.f32 %v4433_v41, %v8590_v53 }
 0x831   : > { %v8655_v61 = vpop.eup %5975 }
 0x832   : > { %v4435_v59 = vmul.f32 %v8655_v61, %v8635_v55  ;;  %vm4441_vm14 = vweird.f32 %v8655_v61  ;;  %v4464_v55 = vmul.f32 %v4393_v57, %v8576_v19 }
 0x833   : > { %vm4442_vm4 = vmor %vm4440_vm3, %vm4441_vm14  ;;  %vm4551_vm14 = vcmask 1045509  }
 0x834   : > { %v4436_v38 = vmul.f32 %v8655_v61, %v4435_v59  ;;  %v4475_v44 = vmul.f32 %v5736_v40, %v4464_v55  ;;  %v4477_v59 = vmul.f32 %v5736_v40, %v4466_v47 }
 0x836   : > { %v4365_v48 = vpop.xlane.xlu0 %4364  ;;  %v4437_v36 = vmul.f32 0.5, %v4436_v38 }
 0x837   : > { %v4374_v6 = vmul.f32 %v4365_v48, %v8945_v28  ;;  %v5616_v48 = vld [vmem:[%s6923_s11 + $0x8] sm:$0xff] }
 0x838   : > { %v4438_v2 = vsub.f32 1.5, %v4437_v36  ;;  %4615 = vmatpush.bf16.msra.mxu3 %v5616_v48 }
 0x839   : > { %v8638_v46 = vadd.f32 1e-12, %v4374_v6  ;;  %v5615_v6 = vld [vmem:[%s6923_s11] sm:$0xff] }
 0x83a   : > { %v4439_v49 = vmul.f32 %v8655_v61, %v4438_v2 }
 0x83b   : > { %5977 = vrsqrt.f32 %v8638_v46  ;;  %vm4450_vm5 = vweird.f32 %v8638_v46 }
 0x83c   : > { %v4443_v39 = vsel %vm4442_vm4, %v8655_v61, %v4439_v49  ;;  %4616 = vmatpush.bf16.msra.mxu3 %v5615_v6  ;;  %v4476_v61 = vmul.f32 %v5736_v40, %v4465_v25 }
 0x83d   : > { %v4469_v18 = vmul.f32 %v4443_v39, %v8595_v14  ;;  %v5738_v39 = vld [vmem:[%s1249_s17] ss:$0 sm:$0xff]  ;;  %s6411_s17 = scalar_lea.hbm %s8956_s9, 16 }
 0x83f   : > { %v4480_v60 = vmul.f32 %v5736_v40, %v4469_v18 }
 0x841   : > { %v8658_v9 = vpop.eup %5977 }
 0x842   : > { %v4445_v51 = vmul.f32 %v8658_v9, %v8638_v46  ;;  %vm4451_vm1 = vweird.f32 %v8658_v9  ;;  %v5737_v46 = vld [vmem:[%s1246_s6] ss:$0 sm:$0xff]  ;;  %s4639_s6 = sshll.u32 %s4635_s20, 4  ;;  %s4640_s6 = int_to_ptr.hbm [resolvable:$true] %s4639_s6 }
 0x843   : > { %vm4452_vm6 = vmor %vm4450_vm5, %vm4451_vm1  ;;  %v4486_v15 = vadd.f32 %v5737_v46, %v4475_v44  ;;  %v4489_v12 = vadd.f32 %v5737_v46, %v4478_v21  ;;  %v4488_v43 = vadd.f32 %v5737_v46, %v4477_v59  ;;  %v4491_v13 = vadd.f32 %v5737_v46, %v4480_v60  ;;  %s6405_s0 = sshra.s32 %s4640_s6, 4  ;;  %s6406_s0 = int_to_ptr.hbm [resolvable:$true] %s6405_s0 }
 0x844   : > { %v4446_v7 = vmul.f32 %v8658_v9, %v4445_v51  ;;  %v4487_v51 = vadd.f32 %v5737_v46, %v4476_v61  ;;  %s6407_s7 = scalar_lea.hbm %s6406_s0, 8  ;;  %p6412_p6 = scmp.lt.s32.totalorder %s6406_s0, %s8956_s9 }
 0x845   : > { %v4497_v1 = vpack.c.bf16 %v4489_v12, %v4489_v12  ;;  %v4496_v37 = vpack.c.bf16 %v4488_v43, %v4488_v43  ;;  %v4499_v23 = vpack.c.bf16 %v4491_v13, %v4491_v13  ;;  %p6408_p3 = scmp.ne.s32.totalorder %s6406_s0, %s6407_s7  ;;  %p6413_p7 = scmp.lt.s32.totalorder %s6411_s17, %s6407_s7 }
 0x846   : > { %v4447_v63 = vmul.f32 0.5, %v4446_v7  ;;  %v4495_v7 = vpack.c.bf16 %v4487_v51, %v4487_v51 }
 0x847   : > { %v4533_v20 = vunpack.c.l.b16 %v4497_v1  ;;  %v4532_v42 = vunpack.c.l.b16 %v4496_v37  ;;  %v4535_v22 = vunpack.c.l.b16 %v4499_v23  ;;  %p6409_p4 = pnand %p6408_p3, %p6670_p9  ;;  %p6414_p8 = por %p6413_p7, %p6412_p6 }
 0x848   : > { %v4448_v30 = vsub.f32 1.5, %v4447_v63  ;;  %v4531_v63 = vunpack.c.l.b16 %v4495_v7 }
 0x849   : > { %v4544_v8 = vrot.slane %v4533_v20, 5  ;;  %v4541_v48 = vrot.slane %v4532_v42, 6  ;;  %v4550_v49 = vrot.slane %v4535_v22, 3  ;;  %p6410_p5 = pneg %p6409_p4 }
 0x84a   : > { %v4538_v4 = vrot.slane %v4531_v63, 7 }
 0x84b   : > { %p6415_p10 = pnand %p6414_p8, %p6410_p5 }
 0x86b   : > { %v4367_v27 = vpop.xlane.xlu1 %4366 }
 0x86c   : > { %v4375_v10 = vmul.f32 %v4367_v27, %v8945_v28  ;;  %v4449_v28 = vmul.f32 %v8658_v9, %v4448_v30 }
 0x86e   : > { %v4383_v16 = vadd.f32 1e-12, %v4375_v10  ;;  %v4453_v3 = vsel %vm4452_vm6, %v8658_v9, %v4449_v28  ;;  %v4479_v9 = vmul.f32 %v5736_v40, %v4468_v31 }
 0x86f   : > { %v4470_v0 = vmul.f32 %v4453_v3, %v8600_v32  ;;  %v4494_v32 = vpack.c.bf16 %v4486_v15, %v4486_v15 }
 0x870   : > { %5979 = vrsqrt.f32 %v4383_v16  ;;  %v4490_v38 = vadd.f32 %v5737_v46, %v4479_v9  ;;  %vm4460_vm8 = vweird.f32 %v4383_v16 }
 0x871   : > { %v4481_v34 = vmul.f32 %v5736_v40, %v4470_v0  ;;  %v4530_v24 = vunpack.c.l.b16 %v4494_v32 }
 0x872   : > { %v4498_v36 = vpack.c.bf16 %v4490_v38, %v4490_v38 }
 0x873   : > { %v4492_v14 = vadd.f32 %v5737_v46, %v4481_v34  ;;  %v4540_v11 = vsel %vm4539_vm10, %v4538_v4, %v4530_v24 }
 0x874   : > { %v4534_v30 = vunpack.c.l.b16 %v4498_v36  ;;  %v4543_v28 = vsel %vm4542_vm11, %v4541_v48, %v4540_v11 }
 0x875   : > { %v4500_v17 = vpack.c.bf16 %v4492_v14, %v4492_v14 }
 0x876   : > { %v5980_v19 = vpop.eup %5979  ;;  %v4547_v5 = vrot.slane %v4534_v30, 4 }
 0x877   : > { %v4455_v35 = vmul.f32 %v5980_v19, %v4383_v16  ;;  %vm4461_vm7 = vweird.f32 %v5980_v19  ;;  %v4536_v56 = vunpack.c.l.b16 %v4500_v17  ;;  %v4546_v16 = vsel %vm4545_vm12, %v4544_v8, %v4543_v28 }
 0x878   : > { %vm4462_vm9 = vmor %vm4460_vm8, %vm4461_vm7  ;;  %v4549_v25 = vsel %vm4548_vm13, %v4547_v5, %v4546_v16 }
 0x879   : > { %v4456_v53 = vmul.f32 %v5980_v19, %v4455_v35  ;;  %v4552_v54 = vsel %vm4551_vm14, %v4550_v49, %v4549_v25 }
 0x87b   : > { %v4457_v50 = vmul.f32 0.5, %v4456_v53 }
 0x87d   : > { %v4458_v45 = vsub.f32 1.5, %v4457_v50 }
 0x87f   : > { %v4459_v29 = vmul.f32 %v5980_v19, %v4458_v45 }
 0x881   : > { %v4463_v52 = vsel %vm4462_vm9, %v5980_v19, %v4459_v29 }
 0x882   : > { %v4471_v2 = vmul.f32 %v4463_v52, %v8605_v26  ;;  %v4553_v26 = vrot.slane %v4536_v56, 2 }
 0x884   : > { %v4482_v27 = vmul.f32 %v5736_v40, %v4471_v2  ;;  %v4555_v40 = vsel %vm4554_vm15, %v4553_v26, %v4552_v54 }
 0x886   : > { %v4493_v10 = vadd.f32 %v5737_v46, %v4482_v27 }
 0x888   : > { %v4501_v58 = vpack.c.bf16 %v4493_v10, %v4493_v10 }
 0x88a   : > { %v4537_v6 = vunpack.c.l.b16 %v4501_v58 }
 0x88c   : > { %v4556_v57 = vrot.slane %v4537_v6, 1 }
 0x88e   : > { %v4558_v33 = vsel %vm4557_vm0, %v4556_v57, %v4555_v40 }
 0x88f   : > { %v4559_v41 = vpack.c.b16 %v4558_v33, %v4558_v33 }
 0x891   : > { %4617 = vmatmul.bf16.vlgmr.msra.gmra.mxu3 %v4559_v41 }
 0x914   : > { %v4618_v55 = vpop.f32.mrf.mxu3 }
 0x915   : > { %v4619_v62 = vadd.f32 %v5738_v39, %v4618_v55 }
 0x917   : > { %4622 = vst [vmem:[%s1229_s30] sm:$0xff] %v4619_v62 }
 0x918   : > { %6418 = shalt.err (!%p6415_p10)
}
 0x919   : > { %5667 = dma.vmem_to_hbm [thread:$0]  (%p6670_p9), %s4638_s24, 128, %s4640_s6, %s4624_s29  }
 0x91c   : > { %v4620_v3 = vpop.f32.mrf.mxu3 }
 0x91d PF: > { %s8958_s26 = sld [smem:[#allocation35_spill]]  ;;  %p5670_p13 = pnand %p5044_p12, %p6677_p11 }
 0x91f   : > { %p5671_p0 = pneg %p5670_p13 }
 0x923   : > { %s4651_s12 = sand.u32 1, %s8958_s26  }
 0x924   : > { %s4652_s21 = scalar_lea.sflag [#allocation4], %s4651_s12 }
 0x925   : > { %6476 = dma.done.wait (%p5671_p0), %s4652_s21, 128  }
 0x926   : > { %6478 = vsyncadd (%p5671_p0), %s4652_s21, 4294967168  ;;  %s57_s25 = sadd.s32 1, %s6501_s25   ;;  %s8960_s28 = sld [smem:[#allocation36_spill]] }
 0x927   : > { %p54_p1 = scmp.ge.s32.totalorder %s57_s25, 4   ;;  %s8961_s23 = sld [smem:[#allocation42_spill]] }
 0x928   : > { %s8962_s19 = sld [smem:[#allocation39_spill]]  ;;  %s8963_s1 = smov %s6485_s22 }
 0x929   : > { %s8965_s24 = smov %s6497_s2 }
 0x92a   :  { %56 = sbr.rel (!%p54_p1) target bundleno = 39 (0x27), region = 320 }
 0x92c   : > { %s8964_s22 = smov %s8960_s28 }
 0x92e   : > { %s8966_s2 = smov %s8962_s19 }
 0x92f   :  { %4658 = vsyncpa [#allocation3], 1 }
 0x930   :  { %4660 = vsyncpa [#allocation3 + $0x1], 1 }
 0x931   :  { %4661 = vsyncpa [#allocation6], 1 }
 0x932   :  { %4663 = vsyncpa [#allocation6 + $0x1], 1 }
 0x933   :  { %4664 = vsyncpa [#allocation9], 1 }
 0x934   :  { %4666 = vsyncpa [#allocation9 + $0x1], 1 }
 0x935   :  { %4667 = vsyncpa [#allocation12], 1 }
 0x936   :  { %4669 = vsyncpa [#allocation12 + $0x1], 1 }
 0x937   :  { %4670 = vsyncpa [#allocation15], 1 }
 0x938   :  { %4672 = vsyncpa [#allocation15 + $0x1], 1 }
 0x939   :  { %4673 = vsyncpa [#allocation18], 1 }
 0x93a   :  { %4675 = vsyncpa [#allocation18 + $0x1], 1 }
 0x93b   :  { %4676 = vsyncpa [#allocation21], 1 }
 0x93c   :  { %4678 = vsyncpa [#allocation21 + $0x1], 1 }
 0x93d   :  { %4679 = vsyncpa [#allocation24], 1 }
 0x93e   :  { %4681 = vsyncpa [#allocation24 + $0x1], 1 }
 0x93f   :  { %4682 = vsyncpa [#allocation4], 1 }
 0x940   :  { %4684 = vsyncpa [#allocation4 + $0x1], 1 }

</bundles_post_ra>
